<compile_context>
chip_gen: v6e
topology: v6e:2x2x1
jax: 0.10.0
libtpu: 0.0.40
codegen_flags: <defaults>
</compile_context>

<pallas_src>
import functools

import jax
import jax.numpy as jnp
from jax.experimental import pallas as pl
from jax.experimental.pallas import tpu as pltpu

BN_EPS = 1e-5
NUM_FILTERS = 80
C_PAD = 128          # lane-padded channel width (80 -> 128)
LIN_SIZE = 320       # cifar config
TM_CONV1 = 256       # pooled-row tile for the tiled conv1 grid


def _round_up(x, m):
    return ((x + m - 1) // m) * m


def _full_spec(shape):
    n = len(shape)
    return pl.BlockSpec(shape, lambda *_: (0,) * n)


# ----------------------------- Pallas kernels ------------------------------ #

def conv_relu_pool_kernel(p_ref, w_ref, o_ref):
    """conv1 stage: 4 corner matmuls -> max (pool) -> relu.

    p_ref: [4, TM, K] bf16 (corner-major im2col rows), w_ref: [K, 128] bf16,
    o_ref: [TM, 128] bf16 pooled output rows.
    """
    w = w_ref[...]
    y = None
    for j in range(4):                       # static unroll over the 4 pool corners
        yj = jnp.dot(p_ref[j], w, preferred_element_type=jnp.float32)
        y = yj if y is None else jnp.maximum(y, yj)
    o_ref[...] = jnp.maximum(y, 0.0).astype(o_ref.dtype)


def conv_bn_relu_pool_kernel(p_ref, w_ref, gamma_ref, beta_ref, o_ref, *, m_pool):
    """conv + train-mode BatchNorm + relu + 2x2 max-pool, fused.

    p_ref: [M, K] bf16 im2col rows. The first 4*m_pool rows are the 4 pool-corner
    blocks (corner-major); any remaining rows are conv positions cropped by the
    pool -- they participate in the BatchNorm batch statistics only.
    Conv bias is folded away (mean subtraction cancels it exactly).
    """
    y = jnp.dot(p_ref[...], w_ref[...], preferred_element_type=jnp.float32)  # [M, 128] f32
    mean = jnp.mean(y, axis=0, keepdims=True)                 # biased batch stats over (N,H,W)
    var = jnp.mean((y - mean) ** 2, axis=0, keepdims=True)
    y = (y - mean) * jax.lax.rsqrt(var + BN_EPS) * gamma_ref[...] + beta_ref[...]
    p0 = y[0 * m_pool:1 * m_pool]
    p1 = y[1 * m_pool:2 * m_pool]
    p2 = y[2 * m_pool:3 * m_pool]
    p3 = y[3 * m_pool:4 * m_pool]
    pooled = jnp.maximum(jnp.maximum(p0, p1), jnp.maximum(p2, p3))
    o_ref[...] = jnp.maximum(pooled, 0.0).astype(o_ref.dtype)   # relu o max == max o relu


def linear_kernel(x_ref, w_ref, b_ref, o_ref):
    o_ref[...] = jnp.dot(x_ref[...], w_ref[...],
                         preferred_element_type=jnp.float32) + b_ref[...]


# --------------------------- Host-side im2col ------------------------------ #

def _taps_3x3(x_nhwc):
    """x: [B,H,W,C] -> tap-concat [B,Ho,Wo,9*C] in (kh, kw, c) order."""
    B, H, W, C = x_nhwc.shape
    Ho, Wo = H - 2, W - 2
    cols = [x_nhwc[:, kh:kh + Ho, kw:kw + Wo, :] for kh in range(3) for kw in range(3)]
    return jnp.concatenate(cols, axis=-1)


def _corner_blocks(full):
    """Split conv-position rows into 4 pool-corner blocks + leftover (cropped) rows."""
    B, Ho, Wo, K = full.shape
    Hp, Wp = Ho // 2, Wo // 2
    blocks = [full[:, dh:2 * Hp:2, dw:2 * Wp:2, :].reshape(B * Hp * Wp, K)
              for dh in (0, 1) for dw in (0, 1)]
    rest = []
    if Ho > 2 * Hp:
        rest.append(full[:, 2 * Hp:, :, :].reshape(-1, K))
    if Wo > 2 * Wp:
        rest.append(full[:, :2 * Hp, 2 * Wp:, :].reshape(-1, K))
    return blocks, rest, Hp, Wp


def _prep_conv_w(w_oihw, cin_eff, k_pad, cout_pad=C_PAD):
    """[Cout,Cin,3,3] -> [k_pad, cout_pad] matching (kh, kw, c) patch order, zero-padded."""
    co, ci = w_oihw.shape[0], w_oihw.shape[1]
    w = jnp.transpose(w_oihw, (2, 3, 1, 0))                     # [3,3,ci,co]
    w = jnp.pad(w, ((0, 0), (0, 0), (0, cin_eff - ci), (0, cout_pad - co)))
    w = w.reshape(9 * cin_eff, cout_pad)
    if k_pad > 9 * cin_eff:
        w = jnp.pad(w, ((0, k_pad - 9 * cin_eff), (0, 0)))
    return w


def _pad_vec(v, n):
    return jnp.pad(v.astype(jnp.float32), (0, n - v.shape[0])).reshape(1, n)


# ------------------------------ Stage wrappers ------------------------------ #

def conv1_relu_pool(x_nhwc, w1):
    """conv1 (bias=False) + relu + 2x2 pool. x: [B,H,W,3] f32 -> [B,Hp,Wp,128] bf16."""
    B = x_nhwc.shape[0]
    full = _taps_3x3(x_nhwc)                                    # [B,Ho,Wo,27]
    k_raw = full.shape[-1]
    K = _round_up(k_raw, 32)                                    # 27 -> 32
    full = jnp.pad(full, ((0, 0), (0, 0), (0, 0), (0, K - k_raw)))
    blocks, _, Hp, Wp = _corner_blocks(full)                    # conv1 has no cropped rows
    corners = jnp.stack(blocks, axis=0).astype(jnp.bfloat16)    # [4, Mp, K]
    Mp = B * Hp * Wp
    Mp_pad = _round_up(Mp, TM_CONV1)
    corners = jnp.pad(corners, ((0, 0), (0, Mp_pad - Mp), (0, 0)))
    w_mat = _prep_conv_w(w1, cin_eff=w1.shape[1], k_pad=K).astype(jnp.bfloat16)  # [K,128]

    out = pl.pallas_call(
        conv_relu_pool_kernel,
        out_shape=jax.ShapeDtypeStruct((Mp_pad, C_PAD), jnp.bfloat16),
        grid=(Mp_pad // TM_CONV1,),
        in_specs=[pl.BlockSpec((4, TM_CONV1, K), lambda i: (0, i, 0)),
                  pl.BlockSpec((K, C_PAD), lambda i: (0, 0))],
        out_specs=pl.BlockSpec((TM_CONV1, C_PAD), lambda i: (i, 0)),
        compiler_params=pltpu.CompilerParams(dimension_semantics=("parallel",)),
    )(corners, w_mat)
    return out[:Mp].reshape(B, Hp, Wp, C_PAD)


def conv_bn_relu_pool(x_pad_nhwc, w, gamma, beta):
    """conv (+bias folded into BN) + BN + relu + 2x2 pool. x: [B,H,W,128] bf16 -> [B,Hp,Wp,128] bf16.

    Whole batch in one block so BN batch statistics are exact over (N, H, W).
    # TODO(synk): for large batches, switch to a two-pass BN (sum/sumsq accumulators
    # across an 'arbitrary' M-tiled grid) so this stage can be tiled/pipelined too.
    """
    B = x_pad_nhwc.shape[0]
    full = _taps_3x3(x_pad_nhwc)                                # [B,Ho,Wo,9*128] bf16
    blocks, rest, Hp, Wp = _corner_blocks(full)
    patches = jnp.concatenate(blocks + rest, axis=0)            # [M, 1152] bf16
    M, K = patches.shape
    Mp = B * Hp * Wp
    w_mat = _prep_conv_w(w, cin_eff=C_PAD, k_pad=K).astype(jnp.bfloat16)

    kernel = functools.partial(conv_bn_relu_pool_kernel, m_pool=Mp)
    out = pl.pallas_call(
        kernel,
        out_shape=jax.ShapeDtypeStruct((Mp, C_PAD), jnp.bfloat16),
        grid=(1,),
        in_specs=[_full_spec((M, K)), _full_spec((K, C_PAD)),
                  _full_spec((1, C_PAD)), _full_spec((1, C_PAD))],
        out_specs=_full_spec((Mp, C_PAD)),
    )(patches, w_mat, _pad_vec(gamma, C_PAD), _pad_vec(beta, C_PAD))
    return out.reshape(B, Hp, Wp, C_PAD)


def linear_head(pooled, last_w, last_b):
    """Final Linear. Weight rows are permuted once to the (h, w, c_pad) flatten order
    so no activation transpose is needed (padded channels map to zero weight rows)."""
    B, Hp, Wp, Cp = pooled.shape
    num_cls = last_w.shape[0]
    n_pad = _round_up(num_cls, 128)
    feat = pooled.reshape(B, Hp * Wp * Cp).astype(jnp.float32)

    wl = last_w.reshape(num_cls, NUM_FILTERS, Hp, Wp)           # feature idx = c*Hp*Wp + h*Wp + w
    wl = jnp.transpose(wl, (2, 3, 1, 0))                        # [h, w, c, n]
    wl = jnp.pad(wl, ((0, 0), (0, 0), (0, Cp - NUM_FILTERS), (0, n_pad - num_cls)))
    wl = wl.reshape(Hp * Wp * Cp, n_pad).astype(jnp.float32)
    bl = _pad_vec(last_b, n_pad)

    out = pl.pallas_call(
        linear_kernel,
        out_shape=jax.ShapeDtypeStruct((B, n_pad), jnp.float32),
        grid=(1,),
        in_specs=[_full_spec((B, Hp * Wp * Cp)), _full_spec((Hp * Wp * Cp, n_pad)),
                  _full_spec((1, n_pad))],
        out_specs=_full_spec((B, n_pad)),
    )(feat, wl, bl)
    return out[:, :num_cls]


# --------------------------- Model construction ---------------------------- #

def init_smallconv(key, in_chan, num_cls):
    k = jax.random.split(key, 6)
    f = NUM_FILTERS
    return {
        'conv1_w': 0.10 * jax.random.normal(k[0], (f, in_chan, 3, 3), jnp.float32),
        'conv2_w': 0.05 * jax.random.normal(k[1], (f, f, 3, 3), jnp.float32),
        'conv2_b': 0.05 * jax.random.normal(k[2], (f,), jnp.float32),  # folded away by BN
        'bn2_g': jnp.ones((f,), jnp.float32),
        'bn2_b': jnp.zeros((f,), jnp.float32),
        'conv3_w': 0.05 * jax.random.normal(k[3], (f, f, 3, 3), jnp.float32),
        'conv3_b': 0.05 * jax.random.normal(k[4], (f,), jnp.float32),  # folded away by BN
        'bn3_g': jnp.ones((f,), jnp.float32),
        'bn3_b': jnp.zeros((f,), jnp.float32),
        'last_w': 0.05 * jax.random.normal(k[5], (num_cls, LIN_SIZE), jnp.float32),
        'last_b': jnp.zeros((num_cls,), jnp.float32),  # m.bias.data.zero_()
    }


def smallconv_forward(params, x_nchw):
    """SmallConv.forward. x_nchw: [B, Cin, H, W] f32 -> logits [B, num_cls] f32."""
    x = jnp.transpose(x_nchw, (0, 2, 3, 1)).astype(jnp.float32)   # NCHW -> NHWC
    # conv1 (bias=False) -> relu -> maxpool
    h = conv1_relu_pool(x, params['conv1_w'])
    # conv2 -> bn2 -> relu -> maxpool   (conv2 bias cancels exactly under BN)
    h = conv_bn_relu_pool(h, params['conv2_w'], params['bn2_g'], params['bn2_b'])
    # conv3 -> bn3 -> relu -> maxpool
    h = conv_bn_relu_pool(h, params['conv3_w'], params['bn3_g'], params['bn3_b'])
    # x.view(-1, linsize) + Linear, with the flatten permutation folded into the weight
    assert h.shape[1] * h.shape[2] * NUM_FILTERS == LIN_SIZE
    return linear_head(h, params['last_w'], params['last_b'])


def init_teacher_network(key, n_tasks, in_chan, num_cls):
    keys = jax.random.split(key, n_tasks)
    return [init_smallconv(keys[t], in_chan, num_cls) for t in range(n_tasks)]


def teacher_network_forward(teachers, x_nchw, task_id):
    """TeacherNetwork.forward: dispatch to teachers[task_id].

    # TODO(synk): BatchNorm running-stat (buffer) updates are a training side effect
    # and are not reproduced; normalization uses batch statistics exactly as the
    # PyTorch training-mode forward does.
    """
    return smallconv_forward(teachers[task_id], x_nchw)


# --------------------------------- Main ------------------------------------ #

if __name__ == "__main__":
    key = jax.random.PRNGKey(0)
    k_param, k_x = jax.random.split(key)

    N_TASKS = 2
    NUM_CLS = 10
    IN_CHAN = 3          # 'cifar'
    B, H, W = 2, 32, 32

    teachers = init_teacher_network(k_param, N_TASKS, IN_CHAN, NUM_CLS)
    x = jax.random.normal(k_x, (B, IN_CHAN, H, W), jnp.float32)

    fwd = jax.jit(teacher_network_forward, static_argnums=2)
    logits = fwd(teachers, x, 1)
    logits = jax.block_until_ready(logits)

    assert logits.shape == (B, NUM_CLS) and logits.dtype == jnp.float32
    assert bool(jnp.all(jnp.isfinite(logits)))
    print("KERNEL_OK")
</pallas_src>

<mosaic_0001>
module attributes {stable_mosaic.version = 11 : i64} {
  func.func @conv_relu_pool_kernel(%arg0: i32, %arg1: memref<4x256x32xbf16, #tpu.memory_space<vmem>>, %arg2: memref<32x128xbf16, #tpu.memory_space<vmem>>, %arg3: memref<256x128xbf16, #tpu.memory_space<vmem>>) attributes {dimension_semantics = [#tpu.dimension_semantics<parallel>], iteration_bounds = array<i64: 2>, scalar_prefetch = 0 : i64, scratch_operands = 0 : i64, tpu.core_type = #tpu.core_type<tc>, window_params = [{transform_indices = @transform_0, window_bounds = array<i64: 4, 256, 32>}, {pipeline_mode = #tpu.pipeline_mode<synchronous>, transform_indices = @transform_1, window_bounds = array<i64: 32, 128>}, {transform_indices = @transform_2, window_bounds = array<i64: 256, 128>}]} {
    %c0 = arith.constant 0 : index
    %c0_0 = arith.constant 0 : index
    %0 = vector.load %arg2[%c0, %c0_0] : memref<32x128xbf16, #tpu.memory_space<vmem>>, vector<32x128xbf16>
    %c0_1 = arith.constant 0 : index
    %c0_2 = arith.constant 0 : index
    %c0_3 = arith.constant 0 : index
    %1 = vector.load %arg1[%c0_1, %c0_2, %c0_3] : memref<4x256x32xbf16, #tpu.memory_space<vmem>>, vector<1x256x32xbf16>
    %2 = vector.shape_cast %1 : vector<1x256x32xbf16> to vector<256x32xbf16>
    %cst = arith.constant dense<0.000000e+00> : vector<256x128xf32>
    %3 = tpu.matmul %2, %0, %cst {dimension_numbers = #tpu.dot_dimension_numbers<[1], [0], [0], [1], [0, 0, 1, 1], [], []>} : vector<256x32xbf16>, vector<32x128xbf16>, vector<256x128xf32> -> vector<256x128xf32>
    %c1 = arith.constant 1 : index
    %c0_4 = arith.constant 0 : index
    %c0_5 = arith.constant 0 : index
    %4 = vector.load %arg1[%c1, %c0_4, %c0_5] : memref<4x256x32xbf16, #tpu.memory_space<vmem>>, vector<1x256x32xbf16>
    %5 = vector.shape_cast %4 : vector<1x256x32xbf16> to vector<256x32xbf16>
    %cst_6 = arith.constant dense<0.000000e+00> : vector<256x128xf32>
    %6 = tpu.matmul %5, %0, %cst_6 {dimension_numbers = #tpu.dot_dimension_numbers<[1], [0], [0], [1], [0, 0, 1, 1], [], []>} : vector<256x32xbf16>, vector<32x128xbf16>, vector<256x128xf32> -> vector<256x128xf32>
    %7 = arith.maximumf %3, %6 : vector<256x128xf32>
    %c2 = arith.constant 2 : index
    %c0_7 = arith.constant 0 : index
    %c0_8 = arith.constant 0 : index
    %8 = vector.load %arg1[%c2, %c0_7, %c0_8] : memref<4x256x32xbf16, #tpu.memory_space<vmem>>, vector<1x256x32xbf16>
    %9 = vector.shape_cast %8 : vector<1x256x32xbf16> to vector<256x32xbf16>
    %cst_9 = arith.constant dense<0.000000e+00> : vector<256x128xf32>
    %10 = tpu.matmul %9, %0, %cst_9 {dimension_numbers = #tpu.dot_dimension_numbers<[1], [0], [0], [1], [0, 0, 1, 1], [], []>} : vector<256x32xbf16>, vector<32x128xbf16>, vector<256x128xf32> -> vector<256x128xf32>
    %11 = arith.maximumf %7, %10 : vector<256x128xf32>
    %c3 = arith.constant 3 : index
    %c0_10 = arith.constant 0 : index
    %c0_11 = arith.constant 0 : index
    %12 = vector.load %arg1[%c3, %c0_10, %c0_11] : memref<4x256x32xbf16, #tpu.memory_space<vmem>>, vector<1x256x32xbf16>
    %13 = vector.shape_cast %12 : vector<1x256x32xbf16> to vector<256x32xbf16>
    %cst_12 = arith.constant dense<0.000000e+00> : vector<256x128xf32>
    %14 = tpu.matmul %13, %0, %cst_12 {dimension_numbers = #tpu.dot_dimension_numbers<[1], [0], [0], [1], [0, 0, 1, 1], [], []>} : vector<256x32xbf16>, vector<32x128xbf16>, vector<256x128xf32> -> vector<256x128xf32>
    %15 = arith.maximumf %11, %14 : vector<256x128xf32>
    %cst_13 = arith.constant 0.000000e+00 : f32
    %16 = vector.broadcast %cst_13 : f32 to vector<256x128xf32>
    %17 = arith.maximumf %15, %16 : vector<256x128xf32>
    %18 = arith.truncf %17 : vector<256x128xf32> to vector<256x128xbf16>
    %c0_14 = arith.constant 0 : index
    %c0_15 = arith.constant 0 : index
    %19 = vector.load %arg3[%c0_14, %c0_15] : memref<256x128xbf16, #tpu.memory_space<vmem>>, vector<256x128xbf16>
    tpu.vector_store %arg3[%c0_14, %c0_15], %18 {strides = array<i32>} : memref<256x128xbf16, #tpu.memory_space<vmem>>, vector<256x128xbf16>,
    return
  }
  func.func @transform_0(%arg0: i32) -> (i32, i32, i32) {
    %c0_i32 = arith.constant 0 : i32
    %c0_i32_0 = arith.constant 0 : i32
    %c0_i32_1 = arith.constant 0 : i32
    return %c0_i32, %arg0, %c0_i32_0 : i32, i32, i32
  }
  func.func @transform_1(%arg0: i32) -> (i32, i32) {
    %c0_i32 = arith.constant 0 : i32
    %c0_i32_0 = arith.constant 0 : i32
    %c0_i32_1 = arith.constant 0 : i32
    return %c0_i32, %c0_i32_0 : i32, i32
  }
  func.func @transform_2(%arg0: i32) -> (i32, i32) {
    %c0_i32 = arith.constant 0 : i32
    %c0_i32_0 = arith.constant 0 : i32
    return %arg0, %c0_i32 : i32, i32
  }
}

module attributes {stable_mosaic.version = 11 : i64} {
  func.func @conv_bn_relu_pool_kernel(%arg0: i32, %arg1: memref<338x1152xbf16, #tpu.memory_space<vmem>>, %arg2: memref<1152x128xbf16, #tpu.memory_space<vmem>>, %arg3: memref<1x128xf32, #tpu.memory_space<vmem>>, %arg4: memref<1x128xf32, #tpu.memory_space<vmem>>, %arg5: memref<72x128xbf16, #tpu.memory_space<vmem>>) attributes {dimension_semantics = [#tpu.dimension_semantics<arbitrary>], iteration_bounds = array<i64: 1>, scalar_prefetch = 0 : i64, scratch_operands = 0 : i64, tpu.core_type = #tpu.core_type<tc>, window_params = [{pipeline_mode = #tpu.pipeline_mode<synchronous>, transform_indices = @transform_0, window_bounds = array<i64: 338, 1152>}, {pipeline_mode = #tpu.pipeline_mode<synchronous>, transform_indices = @transform_1, window_bounds = array<i64: 1152, 128>}, {pipeline_mode = #tpu.pipeline_mode<synchronous>, transform_indices = @transform_2, window_bounds = array<i64: 1, 128>}, {pipeline_mode = #tpu.pipeline_mode<synchronous>, transform_indices = @transform_3, window_bounds = array<i64: 1, 128>}, {pipeline_mode = #tpu.pipeline_mode<synchronous>, transform_indices = @transform_4, window_bounds = array<i64: 72, 128>}]} {
    %c0 = arith.constant 0 : index
    %c0_0 = arith.constant 0 : index
    %0 = vector.load %arg1[%c0, %c0_0] : memref<338x1152xbf16, #tpu.memory_space<vmem>>, vector<338x1152xbf16>
    %c0_1 = arith.constant 0 : index
    %c0_2 = arith.constant 0 : index
    %1 = vector.load %arg2[%c0_1, %c0_2] : memref<1152x128xbf16, #tpu.memory_space<vmem>>, vector<1152x128xbf16>
    %cst = arith.constant dense<0.000000e+00> : vector<338x128xf32>
    %2 = tpu.matmul %0, %1, %cst {dimension_numbers = #tpu.dot_dimension_numbers<[1], [0], [0], [1], [0, 0, 1, 1], [], []>} : vector<338x1152xbf16>, vector<1152x128xbf16>, vector<338x128xf32> -> vector<338x128xf32>
    %cst_3 = arith.constant dense<0.000000e+00> : vector<128xf32>
    %3 = vector.multi_reduction <add>, %2, %cst_3 [0] : vector<338x128xf32> to vector<128xf32>
    %4 = vector.shape_cast %3 : vector<128xf32> to vector<1x128xf32>
    %cst_4 = arith.constant 3.380000e+02 : f32
    %5 = vector.broadcast %cst_4 : f32 to vector<1x128xf32>
    %6 = arith.divf %4, %5 : vector<1x128xf32>
    %7 = vector.broadcast %6 : vector<1x128xf32> to vector<338x128xf32>
    %8 = arith.subf %2, %7 : vector<338x128xf32>
    %9 = arith.mulf %8, %8 : vector<338x128xf32>
    %cst_5 = arith.constant dense<0.000000e+00> : vector<128xf32>
    %10 = vector.multi_reduction <add>, %9, %cst_5 [0] : vector<338x128xf32> to vector<128xf32>
    %11 = vector.shape_cast %10 : vector<128xf32> to vector<1x128xf32>
    %cst_6 = arith.constant 3.380000e+02 : f32
    %12 = vector.broadcast %cst_6 : f32 to vector<1x128xf32>
    %13 = arith.divf %11, %12 : vector<1x128xf32>
    %14 = vector.broadcast %6 : vector<1x128xf32> to vector<338x128xf32>
    %15 = arith.subf %2, %14 : vector<338x128xf32>
    %cst_7 = arith.constant 9.99999974E-6 : f32
    %16 = vector.broadcast %cst_7 : f32 to vector<1x128xf32>
    %17 = arith.addf %13, %16 : vector<1x128xf32>
    %18 = math.rsqrt %17 : vector<1x128xf32>
    %19 = vector.broadcast %18 : vector<1x128xf32> to vector<338x128xf32>
    %20 = arith.mulf %15, %19 : vector<338x128xf32>
    %c0_8 = arith.constant 0 : index
    %c0_9 = arith.constant 0 : index
    %21 = vector.load %arg3[%c0_8, %c0_9] : memref<1x128xf32, #tpu.memory_space<vmem>>, vector<1x128xf32>
    %22 = vector.broadcast %21 : vector<1x128xf32> to vector<338x128xf32>
    %23 = arith.mulf %20, %22 : vector<338x128xf32>
    %c0_10 = arith.constant 0 : index
    %c0_11 = arith.constant 0 : index
    %24 = vector.load %arg4[%c0_10, %c0_11] : memref<1x128xf32, #tpu.memory_space<vmem>>, vector<1x128xf32>
    %25 = vector.broadcast %24 : vector<1x128xf32> to vector<338x128xf32>
    %26 = arith.addf %23, %25 : vector<338x128xf32>
    %27 = vector.extract_strided_slice %26 {offsets = [0, 0], sizes = [72, 128], strides = [1, 1]} : vector<338x128xf32> to vector<72x128xf32>
    %28 = vector.extract_strided_slice %26 {offsets = [72, 0], sizes = [72, 128], strides = [1, 1]} : vector<338x128xf32> to vector<72x128xf32>
    %29 = vector.extract_strided_slice %26 {offsets = [144, 0], sizes = [72, 128], strides = [1, 1]} : vector<338x128xf32> to vector<72x128xf32>
    %30 = vector.extract_strided_slice %26 {offsets = [216, 0], sizes = [72, 128], strides = [1, 1]} : vector<338x128xf32> to vector<72x128xf32>
    %31 = arith.maximumf %27, %28 : vector<72x128xf32>
    %32 = arith.maximumf %29, %30 : vector<72x128xf32>
    %33 = arith.maximumf %31, %32 : vector<72x128xf32>
    %cst_12 = arith.constant 0.000000e+00 : f32
    %34 = vector.broadcast %cst_12 : f32 to vector<72x128xf32>
    %35 = arith.maximumf %33, %34 : vector<72x128xf32>
    %36 = arith.truncf %35 : vector<72x128xf32> to vector<72x128xbf16>
    %c0_13 = arith.constant 0 : index
    %c0_14 = arith.constant 0 : index
    %37 = vector.load %arg5[%c0_13, %c0_14] : memref<72x128xbf16, #tpu.memory_space<vmem>>, vector<72x128xbf16>
    tpu.vector_store %arg5[%c0_13, %c0_14], %36 {strides = array<i32>} : memref<72x128xbf16, #tpu.memory_space<vmem>>, vector<72x128xbf16>,
    return
  }
  func.func @transform_0(%arg0: i32) -> (i32, i32) {
    %c0_i32 = arith.constant 0 : i32
    %c0_i32_0 = arith.constant 0 : i32
    %c0_i32_1 = arith.constant 0 : i32
    return %c0_i32, %c0_i32_0 : i32, i32
  }
  func.func @transform_1(%arg0: i32) -> (i32, i32) {
    %c0_i32 = arith.constant 0 : i32
    %c0_i32_0 = arith.constant 0 : i32
    %c0_i32_1 = arith.constant 0 : i32
    return %c0_i32, %c0_i32_0 : i32, i32
  }
  func.func @transform_2(%arg0: i32) -> (i32, i32) {
    %c0_i32 = arith.constant 0 : i32
    %c0_i32_0 = arith.constant 0 : i32
    %c0_i32_1 = arith.constant 0 : i32
    return %c0_i32, %c0_i32_0 : i32, i32
  }
  func.func @transform_3(%arg0: i32) -> (i32, i32) {
    %c0_i32 = arith.constant 0 : i32
    %c0_i32_0 = arith.constant 0 : i32
    %c0_i32_1 = arith.constant 0 : i32
    return %c0_i32, %c0_i32_0 : i32, i32
  }
  func.func @transform_4(%arg0: i32) -> (i32, i32) {
    %c0_i32 = arith.constant 0 : i32
    %c0_i32_0 = arith.constant 0 : i32
    %c0_i32_1 = arith.constant 0 : i32
    return %c0_i32, %c0_i32_0 : i32, i32
  }
}

module attributes {stable_mosaic.version = 11 : i64} {
  func.func @conv_bn_relu_pool_kernel(%arg0: i32, %arg1: memref<32x1152xbf16, #tpu.memory_space<vmem>>, %arg2: memref<1152x128xbf16, #tpu.memory_space<vmem>>, %arg3: memref<1x128xf32, #tpu.memory_space<vmem>>, %arg4: memref<1x128xf32, #tpu.memory_space<vmem>>, %arg5: memref<8x128xbf16, #tpu.memory_space<vmem>>) attributes {dimension_semantics = [#tpu.dimension_semantics<arbitrary>], iteration_bounds = array<i64: 1>, scalar_prefetch = 0 : i64, scratch_operands = 0 : i64, tpu.core_type = #tpu.core_type<tc>, window_params = [{pipeline_mode = #tpu.pipeline_mode<synchronous>, transform_indices = @transform_0, window_bounds = array<i64: 32, 1152>}, {pipeline_mode = #tpu.pipeline_mode<synchronous>, transform_indices = @transform_1, window_bounds = array<i64: 1152, 128>}, {pipeline_mode = #tpu.pipeline_mode<synchronous>, transform_indices = @transform_2, window_bounds = array<i64: 1, 128>}, {pipeline_mode = #tpu.pipeline_mode<synchronous>, transform_indices = @transform_3, window_bounds = array<i64: 1, 128>}, {pipeline_mode = #tpu.pipeline_mode<synchronous>, transform_indices = @transform_4, window_bounds = array<i64: 8, 128>}]} {
    %c0 = arith.constant 0 : index
    %c0_0 = arith.constant 0 : index
    %0 = vector.load %arg1[%c0, %c0_0] : memref<32x1152xbf16, #tpu.memory_space<vmem>>, vector<32x1152xbf16>
    %c0_1 = arith.constant 0 : index
    %c0_2 = arith.constant 0 : index
    %1 = vector.load %arg2[%c0_1, %c0_2] : memref<1152x128xbf16, #tpu.memory_space<vmem>>, vector<1152x128xbf16>
    %cst = arith.constant dense<0.000000e+00> : vector<32x128xf32>
    %2 = tpu.matmul %0, %1, %cst {dimension_numbers = #tpu.dot_dimension_numbers<[1], [0], [0], [1], [0, 0, 1, 1], [], []>} : vector<32x1152xbf16>, vector<1152x128xbf16>, vector<32x128xf32> -> vector<32x128xf32>
    %cst_3 = arith.constant dense<0.000000e+00> : vector<128xf32>
    %3 = vector.multi_reduction <add>, %2, %cst_3 [0] : vector<32x128xf32> to vector<128xf32>
    %4 = vector.shape_cast %3 : vector<128xf32> to vector<1x128xf32>
    %cst_4 = arith.constant 3.200000e+01 : f32
    %5 = vector.broadcast %cst_4 : f32 to vector<1x128xf32>
    %6 = arith.divf %4, %5 : vector<1x128xf32>
    %7 = vector.broadcast %6 : vector<1x128xf32> to vector<32x128xf32>
    %8 = arith.subf %2, %7 : vector<32x128xf32>
    %9 = arith.mulf %8, %8 : vector<32x128xf32>
    %cst_5 = arith.constant dense<0.000000e+00> : vector<128xf32>
    %10 = vector.multi_reduction <add>, %9, %cst_5 [0] : vector<32x128xf32> to vector<128xf32>
    %11 = vector.shape_cast %10 : vector<128xf32> to vector<1x128xf32>
    %cst_6 = arith.constant 3.200000e+01 : f32
    %12 = vector.broadcast %cst_6 : f32 to vector<1x128xf32>
    %13 = arith.divf %11, %12 : vector<1x128xf32>
    %14 = vector.broadcast %6 : vector<1x128xf32> to vector<32x128xf32>
    %15 = arith.subf %2, %14 : vector<32x128xf32>
    %cst_7 = arith.constant 9.99999974E-6 : f32
    %16 = vector.broadcast %cst_7 : f32 to vector<1x128xf32>
    %17 = arith.addf %13, %16 : vector<1x128xf32>
    %18 = math.rsqrt %17 : vector<1x128xf32>
    %19 = vector.broadcast %18 : vector<1x128xf32> to vector<32x128xf32>
    %20 = arith.mulf %15, %19 : vector<32x128xf32>
    %c0_8 = arith.constant 0 : index
    %c0_9 = arith.constant 0 : index
    %21 = vector.load %arg3[%c0_8, %c0_9] : memref<1x128xf32, #tpu.memory_space<vmem>>, vector<1x128xf32>
    %22 = vector.broadcast %21 : vector<1x128xf32> to vector<32x128xf32>
    %23 = arith.mulf %20, %22 : vector<32x128xf32>
    %c0_10 = arith.constant 0 : index
    %c0_11 = arith.constant 0 : index
    %24 = vector.load %arg4[%c0_10, %c0_11] : memref<1x128xf32, #tpu.memory_space<vmem>>, vector<1x128xf32>
    %25 = vector.broadcast %24 : vector<1x128xf32> to vector<32x128xf32>
    %26 = arith.addf %23, %25 : vector<32x128xf32>
    %27 = vector.extract_strided_slice %26 {offsets = [0, 0], sizes = [8, 128], strides = [1, 1]} : vector<32x128xf32> to vector<8x128xf32>
    %28 = vector.extract_strided_slice %26 {offsets = [8, 0], sizes = [8, 128], strides = [1, 1]} : vector<32x128xf32> to vector<8x128xf32>
    %29 = vector.extract_strided_slice %26 {offsets = [16, 0], sizes = [8, 128], strides = [1, 1]} : vector<32x128xf32> to vector<8x128xf32>
    %30 = vector.extract_strided_slice %26 {offsets = [24, 0], sizes = [8, 128], strides = [1, 1]} : vector<32x128xf32> to vector<8x128xf32>
    %31 = arith.maximumf %27, %28 : vector<8x128xf32>
    %32 = arith.maximumf %29, %30 : vector<8x128xf32>
    %33 = arith.maximumf %31, %32 : vector<8x128xf32>
    %cst_12 = arith.constant 0.000000e+00 : f32
    %34 = vector.broadcast %cst_12 : f32 to vector<8x128xf32>
    %35 = arith.maximumf %33, %34 : vector<8x128xf32>
    %36 = arith.truncf %35 : vector<8x128xf32> to vector<8x128xbf16>
    %c0_13 = arith.constant 0 : index
    %c0_14 = arith.constant 0 : index
    %37 = vector.load %arg5[%c0_13, %c0_14] : memref<8x128xbf16, #tpu.memory_space<vmem>>, vector<8x128xbf16>
    tpu.vector_store %arg5[%c0_13, %c0_14], %36 {strides = array<i32>} : memref<8x128xbf16, #tpu.memory_space<vmem>>, vector<8x128xbf16>,
    return
  }
  func.func @transform_0(%arg0: i32) -> (i32, i32) {
    %c0_i32 = arith.constant 0 : i32
    %c0_i32_0 = arith.constant 0 : i32
    %c0_i32_1 = arith.constant 0 : i32
    return %c0_i32, %c0_i32_0 : i32, i32
  }
  func.func @transform_1(%arg0: i32) -> (i32, i32) {
    %c0_i32 = arith.constant 0 : i32
    %c0_i32_0 = arith.constant 0 : i32
    %c0_i32_1 = arith.constant 0 : i32
    return %c0_i32, %c0_i32_0 : i32, i32
  }
  func.func @transform_2(%arg0: i32) -> (i32, i32) {
    %c0_i32 = arith.constant 0 : i32
    %c0_i32_0 = arith.constant 0 : i32
    %c0_i32_1 = arith.constant 0 : i32
    return %c0_i32, %c0_i32_0 : i32, i32
  }
  func.func @transform_3(%arg0: i32) -> (i32, i32) {
    %c0_i32 = arith.constant 0 : i32
    %c0_i32_0 = arith.constant 0 : i32
    %c0_i32_1 = arith.constant 0 : i32
    return %c0_i32, %c0_i32_0 : i32, i32
  }
  func.func @transform_4(%arg0: i32) -> (i32, i32) {
    %c0_i32 = arith.constant 0 : i32
    %c0_i32_0 = arith.constant 0 : i32
    %c0_i32_1 = arith.constant 0 : i32
    return %c0_i32, %c0_i32_0 : i32, i32
  }
}

module attributes {stable_mosaic.version = 11 : i64} {
  func.func @linear_kernel(%arg0: i32, %arg1: memref<2x512xf32, #tpu.memory_space<vmem>>, %arg2: memref<512x128xf32, #tpu.memory_space<vmem>>, %arg3: memref<1x128xf32, #tpu.memory_space<vmem>>, %arg4: memref<2x128xf32, #tpu.memory_space<vmem>>) attributes {dimension_semantics = [#tpu.dimension_semantics<arbitrary>], iteration_bounds = array<i64: 1>, scalar_prefetch = 0 : i64, scratch_operands = 0 : i64, tpu.core_type = #tpu.core_type<tc>, window_params = [{pipeline_mode = #tpu.pipeline_mode<synchronous>, transform_indices = @transform_0, window_bounds = array<i64: 2, 512>}, {pipeline_mode = #tpu.pipeline_mode<synchronous>, transform_indices = @transform_1, window_bounds = array<i64: 512, 128>}, {pipeline_mode = #tpu.pipeline_mode<synchronous>, transform_indices = @transform_2, window_bounds = array<i64: 1, 128>}, {pipeline_mode = #tpu.pipeline_mode<synchronous>, transform_indices = @transform_3, window_bounds = array<i64: 2, 128>}]} {
    %c0 = arith.constant 0 : index
    %c0_0 = arith.constant 0 : index
    %0 = vector.load %arg1[%c0, %c0_0] : memref<2x512xf32, #tpu.memory_space<vmem>>, vector<2x512xf32>
    %c0_1 = arith.constant 0 : index
    %c0_2 = arith.constant 0 : index
    %1 = vector.load %arg2[%c0_1, %c0_2] : memref<512x128xf32, #tpu.memory_space<vmem>>, vector<512x128xf32>
    %cst = arith.constant dense<0.000000e+00> : vector<2x128xf32>
    %2 = tpu.matmul %0, %1, %cst {dimension_numbers = #tpu.dot_dimension_numbers<[1], [0], [0], [1], [0, 0, 1, 1], [], []>} : vector<2x512xf32>, vector<512x128xf32>, vector<2x128xf32> -> vector<2x128xf32>
    %c0_3 = arith.constant 0 : index
    %c0_4 = arith.constant 0 : index
    %3 = vector.load %arg3[%c0_3, %c0_4] : memref<1x128xf32, #tpu.memory_space<vmem>>, vector<1x128xf32>
    %4 = vector.broadcast %3 : vector<1x128xf32> to vector<2x128xf32>
    %5 = arith.addf %2, %4 : vector<2x128xf32>
    %c0_5 = arith.constant 0 : index
    %c0_6 = arith.constant 0 : index
    %6 = vector.load %arg4[%c0_5, %c0_6] : memref<2x128xf32, #tpu.memory_space<vmem>>, vector<2x128xf32>
    tpu.vector_store %arg4[%c0_5, %c0_6], %5 {strides = array<i32>} : memref<2x128xf32, #tpu.memory_space<vmem>>, vector<2x128xf32>,
    return
  }
  func.func @transform_0(%arg0: i32) -> (i32, i32) {
    %c0_i32 = arith.constant 0 : i32
    %c0_i32_0 = arith.constant 0 : i32
    %c0_i32_1 = arith.constant 0 : i32
    return %c0_i32, %c0_i32_0 : i32, i32
  }
  func.func @transform_1(%arg0: i32) -> (i32, i32) {
    %c0_i32 = arith.constant 0 : i32
    %c0_i32_0 = arith.constant 0 : i32
    %c0_i32_1 = arith.constant 0 : i32
    return %c0_i32, %c0_i32_0 : i32, i32
  }
  func.func @transform_2(%arg0: i32) -> (i32, i32) {
    %c0_i32 = arith.constant 0 : i32
    %c0_i32_0 = arith.constant 0 : i32
    %c0_i32_1 = arith.constant 0 : i32
    return %c0_i32, %c0_i32_0 : i32, i32
  }
  func.func @transform_3(%arg0: i32) -> (i32, i32) {
    %c0_i32 = arith.constant 0 : i32
    %c0_i32_0 = arith.constant 0 : i32
    %c0_i32_1 = arith.constant 0 : i32
    return %c0_i32, %c0_i32_0 : i32, i32
  }
}

</mosaic_0001>

<bundles_post_ra>
// kernel: teacher_network_forward.4
= control target key start
LH: loop header
LB: loop body
LE: loop exit
PB: predicated region body
PF: predicated region fallthrough
CT: control target
= control target key end

     0   :  { %s3097_s9 = smov 0   ;;  %s3099_s10 = smov 0   ;;  %s3675_s0 = inlined_call_operand.vmem [shape: bf16[4,512,32], index: 0, kind: input, shape index: {}]   ;;  %s3676_s1 = inlined_call_operand.vmem [shape: bf16[32,128], index: 1, kind: input, shape index: {}]   ;;  %s3677_s2 = inlined_call_operand.vmem [shape: bf16[512,128], index: 2, kind: output, shape index: {}]  }
   0x1   :  { %s3101_s11 = smov 0  }
   0x2 LB: > { %s2353_s12 = sadd.s32 4294967295, %s3080_s11   ;;  %s3114_s13 = sadd.s32 1, %s3080_s11   ;;  %s3080_s11 = sphi %s3101_s11, %s3738_s11   ;;  %s3076_s10 = sphi %s3099_s10, %s3737_s10   ;;  %s3072_s9 = sphi %s3097_s9, %s3736_s9  }
   0x3   : > { %s16_s14 = ssub.s32 %s3080_s11, %s3114_s13  ;;  %s19_s15 = sadd.s32 1, %s3076_s10 }
   0x4   : > { %p17_p0 = scmp.eq.s32.totalorder %s16_s14, 0  ;;  %p26_p1 = scmp.ne.s32.totalorder %s3076_s10, %s3072_s9 }
   0x5   : > { %p27_p2 = scmp.eq.s32.totalorder %s3080_s11, 0  ;;  %p2356_p4 = scmp.ge.s32.totalorder %s3080_s11, 2 }
   0x6   : > { %s3123_s16 = scalar_select %p17_p0, %s3076_s10, %s19_s15  }
   0x7   : > { %p28_p3 = por %p27_p2, %p26_p1  ;;  %102 = sbr.rel (%p2356_p4) target bundleno = 48 (0x30), region = 20 }
   0xc   : > { %105 = sbr.rel (!%p28_p3) target bundleno = 48 (0x30), region = 24  ;;  %s107_s17 = sand.u32 (%p28_p3), 1, %s3076_s10  }
   0xd   : > { %s2624_s18 = sshll.u32 (%p28_p3), %s3080_s11, 7  ;;  %s2357_s19 = sshll.u32 (%p28_p3), %s107_s17, 9 }
   0xe   : > { %s3131_s22 = scalar_lea.vmem (%p28_p3), %s3675_s0, %s2624_s18  ;;  %s3136_s23 = scalar_lea.vmem (%p28_p3), [#allocation2], %s2357_s19 }
   0xf   : > { %v129_v0 = vld [vmem:[%s3131_s22] sm:$0xff] (%p28_p3)   ;;  %v133_v1 = vld [vmem:[%s3131_s22 + $0x8] sm:$0xff] (%p28_p3)   ;;  %v137_v2 = vld [vmem:[%s3131_s22 + $0x10] sm:$0xff] (%p28_p3)  }
  0x10   : > { %130 = vst [vmem:[%s3136_s23] sm:$0xff] (%p28_p3), %v129_v0   ;;  %134 = vst [vmem:[%s3136_s23 + $0x8] sm:$0xff] (%p28_p3), %v133_v1   ;;  %v141_v3 = vld [vmem:[%s3131_s22 + $0x18] sm:$0xff] (%p28_p3)   ;;  %v145_v4 = vld [vmem:[%s3131_s22 + $0x20] sm:$0xff] (%p28_p3)  }
  0x11   : > { %138 = vst [vmem:[%s3136_s23 + $0x10] sm:$0xff] %v137_v2   ;;  %v149_v5 = vld [vmem:[%s3131_s22 + $0x28] sm:$0xff]   ;;  %142 = vst [vmem:[%s3136_s23 + $0x18] sm:$0xff] %v141_v3   ;;  %v153_v6 = vld [vmem:[%s3131_s22 + $0x30] sm:$0xff]  }
  0x12   : > { %146 = vst [vmem:[%s3136_s23 + $0x20] sm:$0xff] %v145_v4   ;;  %150 = vst [vmem:[%s3136_s23 + $0x28] sm:$0xff] %v149_v5   ;;  %v157_v7 = vld [vmem:[%s3131_s22 + $0x38] sm:$0xff]   ;;  %v161_v8 = vld [vmem:[%s3131_s22 + $0x40] sm:$0xff]  }
  0x13   : > { %154 = vst [vmem:[%s3136_s23 + $0x30] sm:$0xff] %v153_v6   ;;  %158 = vst [vmem:[%s3136_s23 + $0x38] sm:$0xff] %v157_v7   ;;  %v165_v9 = vld [vmem:[%s3131_s22 + $0x48] sm:$0xff]   ;;  %v169_v10 = vld [vmem:[%s3131_s22 + $0x50] sm:$0xff]  }
  0x14   : > { %162 = vst [vmem:[%s3136_s23 + $0x40] sm:$0xff] %v161_v8   ;;  %v173_v11 = vld [vmem:[%s3131_s22 + $0x58] sm:$0xff]   ;;  %166 = vst [vmem:[%s3136_s23 + $0x48] sm:$0xff] %v165_v9   ;;  %v177_v12 = vld [vmem:[%s3131_s22 + $0x60] sm:$0xff]  }
  0x15   : > { %170 = vst [vmem:[%s3136_s23 + $0x50] sm:$0xff] %v169_v10   ;;  %174 = vst [vmem:[%s3136_s23 + $0x58] sm:$0xff] %v173_v11   ;;  %v181_v13 = vld [vmem:[%s3131_s22 + $0x68] sm:$0xff]   ;;  %v185_v14 = vld [vmem:[%s3131_s22 + $0x70] sm:$0xff]  }
  0x16   : > { %178 = vst [vmem:[%s3136_s23 + $0x60] sm:$0xff] %v177_v12   ;;  %182 = vst [vmem:[%s3136_s23 + $0x68] sm:$0xff] %v181_v13   ;;  %v189_v15 = vld [vmem:[%s3131_s22 + $0x78] sm:$0xff]   ;;  %v193_v16 = vld [vmem:[%s3131_s22 + $0x100] sm:$0xff]  }
  0x17   : > { %186 = vst [vmem:[%s3136_s23 + $0x70] sm:$0xff] %v185_v14   ;;  %v197_v17 = vld [vmem:[%s3131_s22 + $0x108] sm:$0xff]   ;;  %190 = vst [vmem:[%s3136_s23 + $0x78] sm:$0xff] %v189_v15   ;;  %v201_v18 = vld [vmem:[%s3131_s22 + $0x110] sm:$0xff]  }
  0x18   : > { %194 = vst [vmem:[%s3136_s23 + $0x80] sm:$0xff] %v193_v16   ;;  %198 = vst [vmem:[%s3136_s23 + $0x88] sm:$0xff] %v197_v17   ;;  %v205_v19 = vld [vmem:[%s3131_s22 + $0x118] sm:$0xff]   ;;  %v209_v20 = vld [vmem:[%s3131_s22 + $0x120] sm:$0xff]  }
  0x19   : > { %202 = vst [vmem:[%s3136_s23 + $0x90] sm:$0xff] %v201_v18   ;;  %206 = vst [vmem:[%s3136_s23 + $0x98] sm:$0xff] %v205_v19   ;;  %v213_v21 = vld [vmem:[%s3131_s22 + $0x128] sm:$0xff]   ;;  %v217_v22 = vld [vmem:[%s3131_s22 + $0x130] sm:$0xff]  }
  0x1a   : > { %210 = vst [vmem:[%s3136_s23 + $0xa0] sm:$0xff] %v209_v20   ;;  %v221_v23 = vld [vmem:[%s3131_s22 + $0x138] sm:$0xff]   ;;  %214 = vst [vmem:[%s3136_s23 + $0xa8] sm:$0xff] %v213_v21   ;;  %v225_v24 = vld [vmem:[%s3131_s22 + $0x140] sm:$0xff]  }
  0x1b   : > { %218 = vst [vmem:[%s3136_s23 + $0xb0] sm:$0xff] %v217_v22   ;;  %222 = vst [vmem:[%s3136_s23 + $0xb8] sm:$0xff] %v221_v23   ;;  %v229_v25 = vld [vmem:[%s3131_s22 + $0x148] sm:$0xff]   ;;  %v233_v26 = vld [vmem:[%s3131_s22 + $0x150] sm:$0xff]  }
  0x1c   : > { %226 = vst [vmem:[%s3136_s23 + $0xc0] sm:$0xff] %v225_v24   ;;  %230 = vst [vmem:[%s3136_s23 + $0xc8] sm:$0xff] %v229_v25   ;;  %v237_v27 = vld [vmem:[%s3131_s22 + $0x158] sm:$0xff]   ;;  %v241_v28 = vld [vmem:[%s3131_s22 + $0x160] sm:$0xff]  }
  0x1d   : > { %234 = vst [vmem:[%s3136_s23 + $0xd0] sm:$0xff] %v233_v26   ;;  %v245_v29 = vld [vmem:[%s3131_s22 + $0x168] sm:$0xff]   ;;  %238 = vst [vmem:[%s3136_s23 + $0xd8] sm:$0xff] %v237_v27   ;;  %v249_v30 = vld [vmem:[%s3131_s22 + $0x170] sm:$0xff]  }
  0x1e   : > { %242 = vst [vmem:[%s3136_s23 + $0xe0] sm:$0xff] %v241_v28   ;;  %246 = vst [vmem:[%s3136_s23 + $0xe8] sm:$0xff] %v245_v29   ;;  %v253_v31 = vld [vmem:[%s3131_s22 + $0x178] sm:$0xff]   ;;  %v257_v32 = vld [vmem:[%s3131_s22 + $0x200] sm:$0xff]  }
  0x1f   : > { %250 = vst [vmem:[%s3136_s23 + $0xf0] sm:$0xff] %v249_v30   ;;  %254 = vst [vmem:[%s3136_s23 + $0xf8] sm:$0xff] %v253_v31   ;;  %v261_v33 = vld [vmem:[%s3131_s22 + $0x208] sm:$0xff]   ;;  %v265_v34 = vld [vmem:[%s3131_s22 + $0x210] sm:$0xff]  }
  0x20   : > { %258 = vst [vmem:[%s3136_s23 + $0x100] sm:$0xff] %v257_v32   ;;  %v269_v35 = vld [vmem:[%s3131_s22 + $0x218] sm:$0xff]   ;;  %262 = vst [vmem:[%s3136_s23 + $0x108] sm:$0xff] %v261_v33   ;;  %v273_v36 = vld [vmem:[%s3131_s22 + $0x220] sm:$0xff]  }
  0x21   : > { %266 = vst [vmem:[%s3136_s23 + $0x110] sm:$0xff] %v265_v34   ;;  %270 = vst [vmem:[%s3136_s23 + $0x118] sm:$0xff] %v269_v35   ;;  %v277_v37 = vld [vmem:[%s3131_s22 + $0x228] sm:$0xff]   ;;  %v281_v38 = vld [vmem:[%s3131_s22 + $0x230] sm:$0xff]  }
  0x22   : > { %274 = vst [vmem:[%s3136_s23 + $0x120] sm:$0xff] %v273_v36   ;;  %278 = vst [vmem:[%s3136_s23 + $0x128] sm:$0xff] %v277_v37   ;;  %v285_v39 = vld [vmem:[%s3131_s22 + $0x238] sm:$0xff]   ;;  %v289_v40 = vld [vmem:[%s3131_s22 + $0x240] sm:$0xff]  }
  0x23   : > { %282 = vst [vmem:[%s3136_s23 + $0x130] sm:$0xff] %v281_v38   ;;  %v293_v41 = vld [vmem:[%s3131_s22 + $0x248] sm:$0xff]   ;;  %286 = vst [vmem:[%s3136_s23 + $0x138] sm:$0xff] %v285_v39   ;;  %v297_v42 = vld [vmem:[%s3131_s22 + $0x250] sm:$0xff]  }
  0x24   : > { %290 = vst [vmem:[%s3136_s23 + $0x140] sm:$0xff] %v289_v40   ;;  %294 = vst [vmem:[%s3136_s23 + $0x148] sm:$0xff] %v293_v41   ;;  %v301_v43 = vld [vmem:[%s3131_s22 + $0x258] sm:$0xff]   ;;  %v305_v44 = vld [vmem:[%s3131_s22 + $0x260] sm:$0xff]  }
  0x25   : > { %298 = vst [vmem:[%s3136_s23 + $0x150] sm:$0xff] %v297_v42   ;;  %302 = vst [vmem:[%s3136_s23 + $0x158] sm:$0xff] %v301_v43   ;;  %v309_v45 = vld [vmem:[%s3131_s22 + $0x268] sm:$0xff]   ;;  %v313_v46 = vld [vmem:[%s3131_s22 + $0x270] sm:$0xff]  }
  0x26   : > { %306 = vst [vmem:[%s3136_s23 + $0x160] sm:$0xff] %v305_v44   ;;  %v317_v47 = vld [vmem:[%s3131_s22 + $0x278] sm:$0xff]   ;;  %310 = vst [vmem:[%s3136_s23 + $0x168] sm:$0xff] %v309_v45   ;;  %v321_v48 = vld [vmem:[%s3131_s22 + $0x300] sm:$0xff]  }
  0x27   : > { %314 = vst [vmem:[%s3136_s23 + $0x170] sm:$0xff] %v313_v46   ;;  %318 = vst [vmem:[%s3136_s23 + $0x178] sm:$0xff] %v317_v47   ;;  %v325_v49 = vld [vmem:[%s3131_s22 + $0x308] sm:$0xff]   ;;  %v329_v50 = vld [vmem:[%s3131_s22 + $0x310] sm:$0xff]  }
  0x28   : > { %322 = vst [vmem:[%s3136_s23 + $0x180] sm:$0xff] %v321_v48   ;;  %326 = vst [vmem:[%s3136_s23 + $0x188] sm:$0xff] %v325_v49   ;;  %v333_v51 = vld [vmem:[%s3131_s22 + $0x318] sm:$0xff]   ;;  %v337_v52 = vld [vmem:[%s3131_s22 + $0x320] sm:$0xff]  }
  0x29   : > { %330 = vst [vmem:[%s3136_s23 + $0x190] sm:$0xff] %v329_v50   ;;  %v341_v53 = vld [vmem:[%s3131_s22 + $0x328] sm:$0xff]   ;;  %334 = vst [vmem:[%s3136_s23 + $0x198] sm:$0xff] %v333_v51   ;;  %v345_v54 = vld [vmem:[%s3131_s22 + $0x330] sm:$0xff]  }
  0x2a   : > { %338 = vst [vmem:[%s3136_s23 + $0x1a0] sm:$0xff] %v337_v52   ;;  %342 = vst [vmem:[%s3136_s23 + $0x1a8] sm:$0xff] %v341_v53   ;;  %v349_v55 = vld [vmem:[%s3131_s22 + $0x338] sm:$0xff]   ;;  %v353_v56 = vld [vmem:[%s3131_s22 + $0x340] sm:$0xff]  }
  0x2b   : > { %346 = vst [vmem:[%s3136_s23 + $0x1b0] sm:$0xff] %v345_v54   ;;  %350 = vst [vmem:[%s3136_s23 + $0x1b8] sm:$0xff] %v349_v55   ;;  %v357_v57 = vld [vmem:[%s3131_s22 + $0x348] sm:$0xff]   ;;  %v361_v58 = vld [vmem:[%s3131_s22 + $0x350] sm:$0xff]  }
  0x2c   : > { %354 = vst [vmem:[%s3136_s23 + $0x1c0] sm:$0xff] %v353_v56   ;;  %v365_v59 = vld [vmem:[%s3131_s22 + $0x358] sm:$0xff]   ;;  %358 = vst [vmem:[%s3136_s23 + $0x1c8] sm:$0xff] %v357_v57   ;;  %v369_v60 = vld [vmem:[%s3131_s22 + $0x360] sm:$0xff]  }
  0x2d   : > { %362 = vst [vmem:[%s3136_s23 + $0x1d0] sm:$0xff] %v361_v58   ;;  %366 = vst [vmem:[%s3136_s23 + $0x1d8] sm:$0xff] %v365_v59   ;;  %v373_v61 = vld [vmem:[%s3131_s22 + $0x368] sm:$0xff]   ;;  %v377_v62 = vld [vmem:[%s3131_s22 + $0x370] sm:$0xff]  }
  0x2e   : > { %370 = vst [vmem:[%s3136_s23 + $0x1e0] sm:$0xff] %v369_v60   ;;  %374 = vst [vmem:[%s3136_s23 + $0x1e8] sm:$0xff] %v373_v61   ;;  %v381_v63 = vld [vmem:[%s3131_s22 + $0x378] sm:$0xff]  }
  0x2f   : > { %378 = vst [vmem:[%s3136_s23 + $0x1f0] sm:$0xff] %v377_v62   ;;  %382 = vst [vmem:[%s3136_s23 + $0x1f8] sm:$0xff] %v381_v63  }
  0x30 PF: > { %p2360_p5 = scmp.ge.s32.totalorder %s3080_s11, 1  ;;  %p663_p6 = scmp.lt.s32.totalorder %s3080_s11, 3 }
  0x32   : > { %p664_p7 = pnand %p2360_p5, %p663_p6 }
  0x34   : > { %667 = sbr.rel (%p664_p7) target bundleno = 394 (0x18a), region = 65 }
  0x39   : > { %v2992_v0 = vld [vmem:[%s3676_s1 + $0x8] sm:$0xff]   ;;  %s670_s26 = sand.u32 1, %s3072_s9   ;;  %v2993_v1 = vld [vmem:[%s3676_s1] sm:$0xff]   ;;  %vm827_vm0 = vcmask 261120   ;;  %s2362_s3 = sshll.u32 %s2353_s12, 5 }
  0x3a   : > { %s2361_s29 = sshll.u32 %s670_s26, 9  ;;  %2824 = vmatprep.subr.bf16.mxu0 %v2992_v0  ;;  %2860 = vmatprep.subr.bf16.mxu1 %v2992_v0  ;;  %p693_p8 = scmp.lt.s32.totalorder %s2362_s3, 63 }
  0x3b   : > { %2825 = vmatpush3.bf16.msra.mxu0 %v2992_v0  ;;  %2861 = vmatpush3.bf16.msra.mxu1 %v2992_v0  ;;  %s3272_s30 = scalar_lea.vmem [#allocation2], %s2361_s29 }
  0x3c   : > { %v2994_v2 = vld [vmem:[%s3272_s30] sm:$0xff]   ;;  %2826 = vmatprep.subr.bf16.mxu0 %v2993_v1  ;;  %2862 = vmatprep.subr.bf16.mxu1 %v2993_v1  ;;  %v2996_v4 = vld [vmem:[%s3272_s30 + $0x8] sm:$0xff]   ;;  %v2998_v6 = vld [vmem:[%s3272_s30 + $0x10] sm:$0xff]   ;;  %s3740_s3 = smov (!%p693_p8, %s2362_s3), 63 }
  0x3d   : > { %v2995_v3 = vld [vmem:[%s3272_s30 + $0x80] sm:$0xff]   ;;  %2828 = vmatprep.mubr.msk.bf16.mxu0 %vm827_vm0, %v2994_v2  ;;  %v2997_v5 = vld [vmem:[%s3272_s30 + $0x88] sm:$0xff]   ;;  %v2999_v7 = vld [vmem:[%s3272_s30 + $0x90] sm:$0xff]   ;;  %s2363_s4 = sshll.u32 %s3740_s3, 2 }
  0x3e   : > { %2864 = vmatprep.mubr.msk.bf16.mxu1 %vm827_vm0, %v2995_v3  ;;  %v3000_v8 = vld [vmem:[%s3272_s30 + $0x18] sm:$0xff]   ;;  %v3002_v10 = vld [vmem:[%s3272_s30 + $0x20] sm:$0xff]   ;;  %v3004_v12 = vld [vmem:[%s3272_s30 + $0x28] sm:$0xff]   ;;  %s3582_s7 = scalar_lea.vmem %s3677_s2, %s2363_s4 }
  0x3f   : > { %2827 = vmatpush3.bf16.msra.mxu0 %v2993_v1  ;;  %2863 = vmatpush3.bf16.msra.mxu1 %v2993_v1  ;;  %v3001_v9 = vld [vmem:[%s3272_s30 + $0x98] sm:$0xff]   ;;  %v3003_v11 = vld [vmem:[%s3272_s30 + $0xa0] sm:$0xff]   ;;  %v3005_v13 = vld [vmem:[%s3272_s30 + $0xa8] sm:$0xff]  }
  0x40   : > { %2896 = vmatprep.subr.bf16.mxu0 %v2992_v0  ;;  %2932 = vmatprep.subr.bf16.mxu1 %v2992_v0  ;;  %v3006_v14 = vld [vmem:[%s3272_s30 + $0x30] sm:$0xff]   ;;  %v3008_v16 = vld [vmem:[%s3272_s30 + $0x38] sm:$0xff]   ;;  %v3010_v18 = vld [vmem:[%s3272_s30 + $0x40] sm:$0xff]  }
  0x41   : > { %v3007_v15 = vld [vmem:[%s3272_s30 + $0xb0] sm:$0xff]   ;;  %v3009_v17 = vld [vmem:[%s3272_s30 + $0xb8] sm:$0xff]   ;;  %v3011_v19 = vld [vmem:[%s3272_s30 + $0xc0] sm:$0xff]  }
  0x42   : > { %2829 = vmatmul.mubr.msk.bf16.vlgmr.msra.gmra.mxu0 %vm827_vm0, %v2996_v4  ;;  %2865 = vmatmul.mubr.msk.bf16.vlgmr.msra.gmra.mxu1 %vm827_vm0, %v2997_v5  ;;  %v3012_v20 = vld [vmem:[%s3272_s30 + $0x48] sm:$0xff]   ;;  %v3014_v22 = vld [vmem:[%s3272_s30 + $0x50] sm:$0xff]   ;;  %v3016_v24 = vld [vmem:[%s3272_s30 + $0x58] sm:$0xff]  }
  0x43   : > { %2897 = vmatpush3.bf16.msra.mxu0 %v2992_v0  ;;  %2933 = vmatpush3.bf16.msra.mxu1 %v2992_v0  ;;  %v3013_v21 = vld [vmem:[%s3272_s30 + $0xc8] sm:$0xff]   ;;  %v3015_v23 = vld [vmem:[%s3272_s30 + $0xd0] sm:$0xff]   ;;  %v3017_v25 = vld [vmem:[%s3272_s30 + $0xd8] sm:$0xff]  }
  0x44   : > { %2832 = vmatprep.mubr.msk.bf16.mxu0 %vm827_vm0, %v2998_v6  ;;  %2868 = vmatprep.mubr.msk.bf16.mxu1 %vm827_vm0, %v2999_v7  ;;  %v3018_v26 = vld [vmem:[%s3272_s30 + $0x60] sm:$0xff]   ;;  %v3020_v28 = vld [vmem:[%s3272_s30 + $0x68] sm:$0xff]   ;;  %v3022_v30 = vld [vmem:[%s3272_s30 + $0x70] sm:$0xff]  }
  0x45   : > { %2898 = vmatprep.subr.bf16.mxu0 %v2993_v1  ;;  %2934 = vmatprep.subr.bf16.mxu1 %v2993_v1  ;;  %v3019_v27 = vld [vmem:[%s3272_s30 + $0xe0] sm:$0xff]   ;;  %v3021_v29 = vld [vmem:[%s3272_s30 + $0xe8] sm:$0xff]   ;;  %v3023_v31 = vld [vmem:[%s3272_s30 + $0xf0] sm:$0xff]  }
  0x46   : > { %v3024_v32 = vld [vmem:[%s3272_s30 + $0x78] sm:$0xff]   ;;  %v3026_v34 = vld [vmem:[%s3272_s30 + $0x100] sm:$0xff]   ;;  %v3028_v36 = vld [vmem:[%s3272_s30 + $0x108] sm:$0xff]  }
  0x47   : > { %2899 = vmatpush3.bf16.msra.mxu0 %v2993_v1  ;;  %2935 = vmatpush3.bf16.msra.mxu1 %v2993_v1  ;;  %v3025_v33 = vld [vmem:[%s3272_s30 + $0xf8] sm:$0xff]   ;;  %v3027_v35 = vld [vmem:[%s3272_s30 + $0x180] sm:$0xff]   ;;  %v3029_v37 = vld [vmem:[%s3272_s30 + $0x188] sm:$0xff]  }
  0x48   : > { %v3030_v38 = vld [vmem:[%s3272_s30 + $0x110] sm:$0xff]   ;;  %v3032_v40 = vld [vmem:[%s3272_s30 + $0x118] sm:$0xff]   ;;  %v3034_v42 = vld [vmem:[%s3272_s30 + $0x120] sm:$0xff]  }
  0x49   : > { %v3031_v39 = vld [vmem:[%s3272_s30 + $0x190] sm:$0xff]   ;;  %v3033_v41 = vld [vmem:[%s3272_s30 + $0x198] sm:$0xff]   ;;  %v3035_v43 = vld [vmem:[%s3272_s30 + $0x1a0] sm:$0xff]  }
  0x4a   : > { %2833 = vmatmul.mubr.msk.bf16.gmra.mxu0 %vm827_vm0, %v3000_v8  ;;  %2869 = vmatmul.mubr.msk.bf16.gmra.mxu1 %vm827_vm0, %v3001_v9  ;;  %v3036_v44 = vld [vmem:[%s3272_s30 + $0x128] sm:$0xff]   ;;  %v3038_v46 = vld [vmem:[%s3272_s30 + $0x130] sm:$0xff]   ;;  %v3040_v48 = vld [vmem:[%s3272_s30 + $0x138] sm:$0xff]  }
  0x4b   : > { %2836 = vmatprep.mubr.msk.bf16.mxu0 %vm827_vm0, %v3002_v10  ;;  %2872 = vmatprep.mubr.msk.bf16.mxu1 %vm827_vm0, %v3003_v11  ;;  %v3037_v45 = vld [vmem:[%s3272_s30 + $0x1a8] sm:$0xff]   ;;  %v3039_v47 = vld [vmem:[%s3272_s30 + $0x1b0] sm:$0xff]   ;;  %v3041_v49 = vld [vmem:[%s3272_s30 + $0x1b8] sm:$0xff]  }
  0x4c   : > { %v3042_v50 = vld [vmem:[%s3272_s30 + $0x140] sm:$0xff]   ;;  %v3044_v52 = vld [vmem:[%s3272_s30 + $0x148] sm:$0xff]   ;;  %v3046_v54 = vld [vmem:[%s3272_s30 + $0x150] sm:$0xff]  }
  0x4d   : > { %v3043_v51 = vld [vmem:[%s3272_s30 + $0x1c0] sm:$0xff]   ;;  %v3045_v53 = vld [vmem:[%s3272_s30 + $0x1c8] sm:$0xff]   ;;  %v3047_v55 = vld [vmem:[%s3272_s30 + $0x1d0] sm:$0xff]  }
  0x4e   : > { %v3048_v56 = vld [vmem:[%s3272_s30 + $0x158] sm:$0xff]   ;;  %v3050_v58 = vld [vmem:[%s3272_s30 + $0x160] sm:$0xff]   ;;  %v3052_v60 = vld [vmem:[%s3272_s30 + $0x168] sm:$0xff]  }
  0x4f   : > { %v3049_v57 = vld [vmem:[%s3272_s30 + $0x1d8] sm:$0xff]   ;;  %v3051_v59 = vld [vmem:[%s3272_s30 + $0x1e0] sm:$0xff]   ;;  %v3053_v61 = vld [vmem:[%s3272_s30 + $0x1e8] sm:$0xff]  }
  0x50   : > { %v3054_v62 = vld [vmem:[%s3272_s30 + $0x170] sm:$0xff]   ;;  %v3056_v0 = vld [vmem:[%s3272_s30 + $0x178] sm:$0xff]  }
  0x51   : > { %v3055_v63 = vld [vmem:[%s3272_s30 + $0x1f0] sm:$0xff]   ;;  %v3057_v1 = vld [vmem:[%s3272_s30 + $0x1f8] sm:$0xff]  }
  0x52   : > { %2837 = vmatmul.mubr.msk.bf16.gmra.mxu0 %vm827_vm0, %v3004_v12  ;;  %2873 = vmatmul.mubr.msk.bf16.gmra.mxu1 %vm827_vm0, %v3005_v13 }
  0x53   : > { %2840 = vmatprep.mubr.msk.bf16.mxu0 %vm827_vm0, %v3006_v14  ;;  %2876 = vmatprep.mubr.msk.bf16.mxu1 %vm827_vm0, %v3007_v15 }
  0x5a   : > { %2841 = vmatmul.mubr.msk.bf16.gmra.mxu0 %vm827_vm0, %v3008_v16  ;;  %2877 = vmatmul.mubr.msk.bf16.gmra.mxu1 %vm827_vm0, %v3009_v17 }
  0x5b   : > { %2844 = vmatprep.mubr.msk.bf16.mxu0 %vm827_vm0, %v3010_v18  ;;  %2880 = vmatprep.mubr.msk.bf16.mxu1 %vm827_vm0, %v3011_v19 }
  0x62   : > { %2845 = vmatmul.mubr.msk.bf16.gmra.mxu0 %vm827_vm0, %v3012_v20  ;;  %2881 = vmatmul.mubr.msk.bf16.gmra.mxu1 %vm827_vm0, %v3013_v21 }
  0x63   : > { %2848 = vmatprep.mubr.msk.bf16.mxu0 %vm827_vm0, %v3014_v22  ;;  %2884 = vmatprep.mubr.msk.bf16.mxu1 %vm827_vm0, %v3015_v23 }
  0x6a   : > { %2849 = vmatmul.mubr.msk.bf16.gmra.mxu0 %vm827_vm0, %v3016_v24  ;;  %2885 = vmatmul.mubr.msk.bf16.gmra.mxu1 %vm827_vm0, %v3017_v25 }
  0x6b   : > { %2852 = vmatprep.mubr.msk.bf16.mxu0 %vm827_vm0, %v3018_v26  ;;  %2888 = vmatprep.mubr.msk.bf16.mxu1 %vm827_vm0, %v3019_v27 }
  0x72   : > { %2853 = vmatmul.mubr.msk.bf16.gmra.mxu0 %vm827_vm0, %v3020_v28  ;;  %2889 = vmatmul.mubr.msk.bf16.gmra.mxu1 %vm827_vm0, %v3021_v29 }
  0x73   : > { %2856 = vmatprep.mubr.msk.bf16.mxu0 %vm827_vm0, %v3022_v30  ;;  %2892 = vmatprep.mubr.msk.bf16.mxu1 %vm827_vm0, %v3023_v31 }
  0x7a   : > { %2857 = vmatmul.mubr.msk.bf16.gmra.mxu0 %vm827_vm0, %v3024_v32  ;;  %2893 = vmatmul.mubr.msk.bf16.gmra.mxu1 %vm827_vm0, %v3025_v33 }
  0x7b   : > { %2900 = vmatprep.mubr.msk.bf16.mxu0 %vm827_vm0, %v3026_v34  ;;  %2936 = vmatprep.mubr.msk.bf16.mxu1 %vm827_vm0, %v3027_v35 }
  0x82   : > { %2901 = vmatmul.mubr.msk.bf16.vlgmr.msra.gmra.mxu0 %vm827_vm0, %v3028_v36  ;;  %2937 = vmatmul.mubr.msk.bf16.vlgmr.msra.gmra.mxu1 %vm827_vm0, %v3029_v37 }
  0x83   : > { %2904 = vmatprep.mubr.msk.bf16.mxu0 %vm827_vm0, %v3030_v38  ;;  %2940 = vmatprep.mubr.msk.bf16.mxu1 %vm827_vm0, %v3031_v39 }
  0x8a   : > { %2905 = vmatmul.mubr.msk.bf16.gmra.mxu0 %vm827_vm0, %v3032_v40  ;;  %2941 = vmatmul.mubr.msk.bf16.gmra.mxu1 %vm827_vm0, %v3033_v41 }
  0x8b   : > { %2908 = vmatprep.mubr.msk.bf16.mxu0 %vm827_vm0, %v3034_v42  ;;  %2944 = vmatprep.mubr.msk.bf16.mxu1 %vm827_vm0, %v3035_v43 }
  0x92   : > { %2909 = vmatmul.mubr.msk.bf16.gmra.mxu0 %vm827_vm0, %v3036_v44  ;;  %2945 = vmatmul.mubr.msk.bf16.gmra.mxu1 %vm827_vm0, %v3037_v45 }
  0x93   : > { %2912 = vmatprep.mubr.msk.bf16.mxu0 %vm827_vm0, %v3038_v46  ;;  %2948 = vmatprep.mubr.msk.bf16.mxu1 %vm827_vm0, %v3039_v47 }
  0x9a   : > { %2913 = vmatmul.mubr.msk.bf16.gmra.mxu0 %vm827_vm0, %v3040_v48  ;;  %2949 = vmatmul.mubr.msk.bf16.gmra.mxu1 %vm827_vm0, %v3041_v49 }
  0x9b   : > { %2916 = vmatprep.mubr.msk.bf16.mxu0 %vm827_vm0, %v3042_v50  ;;  %2952 = vmatprep.mubr.msk.bf16.mxu1 %vm827_vm0, %v3043_v51 }
  0xa2   : > { %2917 = vmatmul.mubr.msk.bf16.gmra.mxu0 %vm827_vm0, %v3044_v52  ;;  %2953 = vmatmul.mubr.msk.bf16.gmra.mxu1 %vm827_vm0, %v3045_v53 }
  0xa3   : > { %2920 = vmatprep.mubr.msk.bf16.mxu0 %vm827_vm0, %v3046_v54  ;;  %2956 = vmatprep.mubr.msk.bf16.mxu1 %vm827_vm0, %v3047_v55 }
  0xaa   : > { %2921 = vmatmul.mubr.msk.bf16.gmra.mxu0 %vm827_vm0, %v3048_v56  ;;  %2957 = vmatmul.mubr.msk.bf16.gmra.mxu1 %vm827_vm0, %v3049_v57 }
  0xab   : > { %2924 = vmatprep.mubr.msk.bf16.mxu0 %vm827_vm0, %v3050_v58  ;;  %2960 = vmatprep.mubr.msk.bf16.mxu1 %vm827_vm0, %v3051_v59 }
  0xb2   : > { %2925 = vmatmul.mubr.msk.bf16.gmra.mxu0 %vm827_vm0, %v3052_v60  ;;  %2961 = vmatmul.mubr.msk.bf16.gmra.mxu1 %vm827_vm0, %v3053_v61 }
  0xb3   : > { %2928 = vmatprep.mubr.msk.bf16.mxu0 %vm827_vm0, %v3054_v62  ;;  %2964 = vmatprep.mubr.msk.bf16.mxu1 %vm827_vm0, %v3055_v63 }
  0xba   : > { %2929 = vmatmul.mubr.msk.bf16.gmra.mxu0 %vm827_vm0, %v3056_v0  ;;  %2965 = vmatmul.mubr.msk.bf16.gmra.mxu1 %vm827_vm0, %v3057_v1 }
 0x102   : > { %v3402_v2 = vpop.f32.mrf.mxu0  ;;  %v3404_v3 = vpop.f32.mrf.mxu1 }
 0x104   : > { %v3408_v5 = vpop.f32.mrf.mxu0  ;;  %v3410_v6 = vpop.f32.mrf.mxu1 }
 0x106   : > { %v3414_v8 = vpop.f32.mrf.mxu0  ;;  %v3416_v9 = vpop.f32.mrf.mxu1 }
 0x107   : > { %v1362_v57 = vmax.f32 %v3414_v8, %v3416_v9 }
 0x108   : > { %v3418_v10 = vpop.f32.mrf.mxu0  ;;  %v3420_v11 = vpop.f32.mrf.mxu1 }
 0x10a   : > { %v3422_v12 = vpop.f32.mrf.mxu0  ;;  %v3424_v13 = vpop.f32.mrf.mxu1 }
 0x10c   : > { %v3428_v15 = vpop.f32.mrf.mxu0  ;;  %v3430_v16 = vpop.f32.mrf.mxu1 }
 0x10e   : > { %v3434_v18 = vpop.f32.mrf.mxu0  ;;  %v3436_v19 = vpop.f32.mrf.mxu1 }
 0x110   : > { %v3438_v20 = vpop.f32.mrf.mxu0  ;;  %v3440_v21 = vpop.f32.mrf.mxu1 }
 0x112   : > { %v3442_v22 = vpop.f32.mrf.mxu0  ;;  %v3444_v23 = vpop.f32.mrf.mxu1 }
 0x114   : > { %v3448_v25 = vpop.f32.mrf.mxu0  ;;  %v3450_v26 = vpop.f32.mrf.mxu1 }
 0x116   : > { %v3454_v28 = vpop.f32.mrf.mxu0  ;;  %v3456_v29 = vpop.f32.mrf.mxu1 }
 0x118   : > { %v3458_v30 = vpop.f32.mrf.mxu0  ;;  %v3460_v31 = vpop.f32.mrf.mxu1 }
 0x11a   : > { %v3462_v32 = vpop.f32.mrf.mxu0  ;;  %v3464_v33 = vpop.f32.mrf.mxu1 }
 0x11c   : > { %v3468_v35 = vpop.f32.mrf.mxu0  ;;  %v3470_v36 = vpop.f32.mrf.mxu1 }
 0x11e   : > { %v3474_v38 = vpop.f32.mrf.mxu0  ;;  %v3476_v39 = vpop.f32.mrf.mxu1 }
 0x120   : > { %v3478_v40 = vpop.f32.mrf.mxu0  ;;  %v3480_v41 = vpop.f32.mrf.mxu1 }
 0x122   : > { %v3482_v42 = vpop.f32.mrf.mxu0  ;;  %v3484_v43 = vpop.f32.mrf.mxu1 }
 0x124   : > { %v3488_v45 = vpop.f32.mrf.mxu0  ;;  %v3490_v46 = vpop.f32.mrf.mxu1 }
 0x126   : > { %v3494_v48 = vpop.f32.mrf.mxu0  ;;  %v3496_v49 = vpop.f32.mrf.mxu1 }
 0x128   : > { %v3498_v50 = vpop.f32.mrf.mxu0  ;;  %v3500_v51 = vpop.f32.mrf.mxu1 }
 0x12a   : > { %v3502_v52 = vpop.f32.mrf.mxu0  ;;  %v3504_v53 = vpop.f32.mrf.mxu1 }
 0x12c   : > { %v3508_v55 = vpop.f32.mrf.mxu0  ;;  %v3510_v56 = vpop.f32.mrf.mxu1 }
 0x12e   : > { %v3514_v58 = vpop.f32.mrf.mxu0  ;;  %v3516_v59 = vpop.f32.mrf.mxu1 }
 0x130   : > { %v3518_v60 = vpop.f32.mrf.mxu0  ;;  %v3520_v61 = vpop.f32.mrf.mxu1 }
 0x131   : > { %3686 = vst [vmem:[#allocation3_spill] sm:$0xff] %v3518_v60 }
 0x132   : > { %v3522_v62 = vpop.f32.mrf.mxu0  ;;  %v3524_v63 = vpop.f32.mrf.mxu1 }
 0x133   : > { %3687 = vst [vmem:[#allocation4_spill] sm:$0xff] %v3522_v62  ;;  %3688 = vst [vmem:[#allocation5_spill] sm:$0xff] %v3524_v63 }
 0x134   : > { %v3528_v1 = vpop.f32.mrf.mxu0  ;;  %v3530_v54 = vpop.f32.mrf.mxu1 }
 0x135   : > { %3689 = vst [vmem:[#allocation6_spill] sm:$0xff] %v3528_v1  ;;  %3690 = vst [vmem:[#allocation7_spill] sm:$0xff] %v3530_v54 }
 0x136   : > { %v3534_v47 = vpop.f32.mrf.mxu0  ;;  %v3536_v44 = vpop.f32.mrf.mxu1 }
 0x137   : > { %3691 = vst [vmem:[#allocation8_spill] sm:$0xff] %v3534_v47  ;;  %3692 = vst [vmem:[#allocation9_spill] sm:$0xff] %v3536_v44 }
 0x138   : > { %v3538_v37 = vpop.f32.mrf.mxu0  ;;  %v3540_v34 = vpop.f32.mrf.mxu1 }
 0x139   : > { %3693 = vst [vmem:[#allocation10_spill] sm:$0xff] %v3538_v37  ;;  %3694 = vst [vmem:[#allocation11_spill] sm:$0xff] %v3540_v34 }
 0x13a   : > { %v3542_v27 = vpop.f32.mrf.mxu0  ;;  %v3544_v24 = vpop.f32.mrf.mxu1 }
 0x13b   : > { %3695 = vst [vmem:[#allocation12_spill] sm:$0xff] %v3542_v27  ;;  %3696 = vst [vmem:[#allocation13_spill] sm:$0xff] %v3544_v24  ;;  %v3703_v24 = vmax.f32 %v3402_v2, %v3404_v3 }
 0x13c   : > { %v3548_v17 = vpop.f32.mrf.mxu0  ;;  %v3550_v14 = vpop.f32.mrf.mxu1 }
 0x13d   : > { %3697 = vst [vmem:[#allocation14_spill] sm:$0xff] %v3548_v17  ;;  %3698 = vst [vmem:[#allocation15_spill] sm:$0xff] %v3550_v14  ;;  %v3704_v14 = vmax.f32 %v3408_v5, %v3410_v6  ;;  %v3705_v6 = vmax.f32 %v3422_v12, %v3424_v13 }
 0x13e   : > { %v3554_v7 = vpop.f32.mrf.mxu0  ;;  %v3556_v4 = vpop.f32.mrf.mxu1 }
 0x13f   : > { %3699 = vst [vmem:[#allocation16_spill] sm:$0xff] %v3554_v7  ;;  %3700 = vst [vmem:[#allocation17_spill] sm:$0xff] %v3556_v4 }
 0x140   : > { %v3560_v37 = vpop.f32.mrf.mxu0  ;;  %v3562_v34 = vpop.f32.mrf.mxu1 }
 0x141   : > { %3701 = vst [vmem:[#allocation18_spill] sm:$0xff] %v3560_v37  ;;  %3702 = vst [vmem:[#allocation19_spill] sm:$0xff] %v3562_v34  ;;  %v1360_v34 = vmax.f32 %v3418_v10, %v3420_v11  ;;  %v1366_v10 = vmax.f32 %v3434_v18, %v3436_v19  ;;  %v1364_v18 = vmax.f32 %v3438_v20, %v3440_v21 }
 0x142   : > { %v2902_v54 = vpop.f32.mrf.mxu0  ;;  %v2938_v0 = vpop.f32.mrf.mxu1  ;;  %v1370_v21 = vmax.f32 %v3454_v28, %v3456_v29 }
 0x143   : > { %v1715_v27 = vmax.f32 %v3703_v24, %v2902_v54 }
 0x144   : > { %v1586_v1 = vpop.f32.mrf.mxu0  ;;  %v1940_v47 = vpop.f32.mrf.mxu1 }
 0x145   : > { %v1713_v17 = vmax.f32 %v3704_v14, %v1586_v1  ;;  %v2069_v4 = vmax.f32 %v1715_v27, %v2938_v0 }
 0x146   : > { %v2903_v37 = vpop.f32.mrf.mxu0  ;;  %v2939_v7 = vpop.f32.mrf.mxu1 }
 0x147   : > { %v1716_v44 = vmax.f32 %v1362_v57, %v2903_v37  ;;  %v2067_v3 = vmax.f32 %v1713_v17, %v1940_v47  ;;  %v2101_v9 = vmax.f32 %v2069_v4, 0.0 }
 0x148   : > { %v1589_v63 = vpop.f32.mrf.mxu0  ;;  %v1943_v2 = vpop.f32.mrf.mxu1 }
 0x149   : > { %v2070_v24 = vmax.f32 %v1716_v44, %v2939_v7  ;;  %v1714_v54 = vmax.f32 %v1360_v34, %v1589_v63  ;;  %v2099_v17 = vmax.f32 %v2067_v3, 0.0  ;;  %v3706_v34 = vmax.f32 %v3428_v15, %v3430_v16 }
 0x14a   : > { %v2906_v62 = vpop.f32.mrf.mxu0  ;;  %v2942_v8 = vpop.f32.mrf.mxu1 }
 0x14b   : > { %v2102_v60 = vmax.f32 %v2070_v24, 0.0  ;;  %v2068_v5 = vmax.f32 %v1714_v54, %v1943_v2  ;;  %v1719_v14 = vmax.f32 %v3705_v6, %v2906_v62  ;;  %v3707_v24 = vmax.f32 %v3442_v22, %v3444_v23 }
 0x14c   : > { %v1602_v7 = vpop.f32.mrf.mxu0  ;;  %v1956_v11 = vpop.f32.mrf.mxu1 }
 0x14d   : > { %v2665_v4 = vpack.c.bf16 %v2102_v60, %v2101_v9  ;;  %v2100_v27 = vmax.f32 %v2068_v5, 0.0  ;;  %v1717_v12 = vmax.f32 %v3706_v34, %v1602_v7  ;;  %v2073_v44 = vmax.f32 %v1719_v14, %v2942_v8 }
 0x14e   : > { %v2907_v13 = vpop.f32.mrf.mxu0  ;;  %v2943_v37 = vpop.f32.mrf.mxu1  ;;  %v3708_v14 = vmax.f32 %v3448_v25, %v3450_v26 }
 0x14f   : > { %2737 = vst [vmem:[%s3582_s7 + $0x8] sm:$0xff] %v2665_v4   ;;  %v2660_v19 = vpack.c.bf16 %v2100_v27, %v2099_v17  ;;  %v1720_v47 = vmax.f32 %v1366_v10, %v2907_v13  ;;  %v2071_v63 = vmax.f32 %v1717_v12, %v1956_v11  ;;  %v2105_v15 = vmax.f32 %v2073_v44, 0.0 }
 0x150   : > { %v1605_v57 = vpop.f32.mrf.mxu0  ;;  %v1959_v62 = vpop.f32.mrf.mxu1  ;;  %v1368_v17 = vmax.f32 %v3458_v30, %v3460_v31  ;;  %v1374_v31 = vmax.f32 %v3474_v38, %v3476_v39 }
 0x151   : > { %2661 = vst [vmem:[%s3582_s7] sm:$0xff] %v2660_v19   ;;  %v2074_v0 = vmax.f32 %v1720_v47, %v2943_v37  ;;  %v1718_v60 = vmax.f32 %v1364_v18, %v1605_v57  ;;  %v2103_v9 = vmax.f32 %v2071_v63, 0.0  ;;  %v3709_v19 = vmax.f32 %v3462_v32, %v3464_v33 }
 0x152   : > { %v2910_v1 = vpop.f32.mrf.mxu0  ;;  %v2946_v2 = vpop.f32.mrf.mxu1 }
 0x153   : > { %v2106_v16 = vmax.f32 %v2074_v0, 0.0  ;;  %v2072_v3 = vmax.f32 %v1718_v60, %v1959_v62  ;;  %v1723_v20 = vmax.f32 %v3707_v24, %v2910_v1  ;;  %v3710_v0 = vmax.f32 %v3468_v35, %v3470_v36 }
 0x154   : > { %v1618_v54 = vpop.f32.mrf.mxu0  ;;  %v1972_v8 = vpop.f32.mrf.mxu1 }
 0x155   : > { %v2675_v5 = vpack.c.bf16 %v2106_v16, %v2105_v15  ;;  %v2104_v6 = vmax.f32 %v2072_v3, 0.0  ;;  %v1721_v10 = vmax.f32 %v3708_v14, %v1618_v54  ;;  %v2077_v23 = vmax.f32 %v1723_v20, %v2946_v2 }
 0x156   : > { %v2911_v7 = vpop.f32.mrf.mxu0  ;;  %v2947_v11 = vpop.f32.mrf.mxu1  ;;  %v1372_v15 = vmax.f32 %v3478_v40, %v3480_v41  ;;  %v1378_v41 = vmax.f32 %v3494_v48, %v3496_v49 }
 0x157   : > { %2739 = vst [vmem:[%s3582_s7 + $0x18] sm:$0xff] %v2675_v5   ;;  %v2670_v22 = vpack.c.bf16 %v2104_v6, %v2103_v9  ;;  %v1724_v4 = vmax.f32 %v1370_v21, %v2911_v7  ;;  %v2075_v27 = vmax.f32 %v1721_v10, %v1972_v8  ;;  %v2109_v25 = vmax.f32 %v2077_v23, 0.0 }
 0x158   : > { %v1621_v28 = vpop.f32.mrf.mxu0  ;;  %v1975_v29 = vpop.f32.mrf.mxu1  ;;  %v3711_v9 = vmax.f32 %v3482_v42, %v3484_v43 }
 0x159   : > { %2738 = vst [vmem:[%s3582_s7 + $0x10] sm:$0xff] %v2670_v22   ;;  %v2078_v34 = vmax.f32 %v1724_v4, %v2947_v11  ;;  %v1722_v12 = vmax.f32 %v1368_v17, %v1621_v28  ;;  %v2107_v57 = vmax.f32 %v2075_v27, 0.0  ;;  %v3712_v11 = vmax.f32 %v3488_v45, %v3490_v46 }
 0x15a   : > { %v2914_v13 = vpop.f32.mrf.mxu0  ;;  %v2950_v37 = vpop.f32.mrf.mxu1  ;;  %v1376_v4 = vmax.f32 %v3498_v50, %v3500_v51  ;;  %v1382_v51 = vmax.f32 %v3514_v58, %v3516_v59 }
 0x15b   : > { %v2110_v26 = vmax.f32 %v2078_v34, 0.0  ;;  %v2076_v18 = vmax.f32 %v1722_v12, %v1975_v29  ;;  %v1727_v30 = vmax.f32 %v3709_v19, %v2914_v13 }
 0x15c   : > { %v1634_v44 = vpop.f32.mrf.mxu0  ;;  %v1988_v47 = vpop.f32.mrf.mxu1 }
 0x15d   : > { %v2685_v62 = vpack.c.bf16 %v2110_v26, %v2109_v25  ;;  %v2108_v63 = vmax.f32 %v2076_v18, 0.0  ;;  %v1725_v60 = vmax.f32 %v3710_v0, %v1634_v44  ;;  %v2081_v33 = vmax.f32 %v1727_v30, %v2950_v37 }
 0x15e   : > { %v2915_v1 = vpop.f32.mrf.mxu0  ;;  %v2951_v2 = vpop.f32.mrf.mxu1  ;;  %v3713_v25 = vmax.f32 %v3502_v52, %v3504_v53  ;;  %v3714_v44 = vmax.f32 %v3508_v55, %v3510_v56 }
 0x15f   : > { %2741 = vst [vmem:[%s3582_s7 + $0x28] sm:$0xff] %v2685_v62   ;;  %v2680_v32 = vpack.c.bf16 %v2108_v63, %v2107_v57  ;;  %v1728_v16 = vmax.f32 %v1374_v31, %v2915_v1  ;;  %v2079_v3 = vmax.f32 %v1725_v60, %v1988_v47  ;;  %v2113_v35 = vmax.f32 %v2081_v33, 0.0  ;;  %v3715_v63 = vld [vmem:[#allocation3_spill] sm:$0xff] }
 0x160   : > { %v1637_v38 = vpop.f32.mrf.mxu0  ;;  %v1991_v39 = vpop.f32.mrf.mxu1  ;;  %v1380_v0 = vmax.f32 %v3715_v63, %v3520_v61 }
 0x161   : > { %2740 = vst [vmem:[%s3582_s7 + $0x20] sm:$0xff] %v2680_v32   ;;  %v2082_v24 = vmax.f32 %v1728_v16, %v2951_v2  ;;  %v1726_v20 = vmax.f32 %v1372_v15, %v1637_v38  ;;  %v2111_v14 = vmax.f32 %v2079_v3, 0.0  ;;  %v3716_v38 = vld [vmem:[#allocation4_spill] sm:$0xff] }
 0x162   : > { %v2918_v21 = vpop.f32.mrf.mxu0  ;;  %v2954_v54 = vpop.f32.mrf.mxu1 }
 0x163   : > { %v2114_v36 = vmax.f32 %v2082_v24, 0.0  ;;  %v2080_v8 = vmax.f32 %v1726_v20, %v1991_v39  ;;  %v1731_v40 = vmax.f32 %v3711_v9, %v2918_v21  ;;  %v3717_v39 = vld [vmem:[#allocation5_spill] sm:$0xff]  ;;  %v3720_v20 = vld [vmem:[#allocation8_spill] sm:$0xff] }
 0x164   : > { %v1650_v5 = vpop.f32.mrf.mxu0  ;;  %v2004_v6 = vpop.f32.mrf.mxu1  ;;  %v3718_v3 = vmax.f32 %v3716_v38, %v3717_v39  ;;  %v3719_v24 = vld [vmem:[#allocation9_spill] sm:$0xff] }
 0x165   : > { %v2695_v10 = vpack.c.bf16 %v2114_v36, %v2113_v35  ;;  %v2112_v7 = vmax.f32 %v2080_v8, 0.0  ;;  %v1729_v17 = vmax.f32 %v3712_v11, %v1650_v5  ;;  %v2085_v43 = vmax.f32 %v1731_v40, %v2954_v54  ;;  %v3721_v40 = vld [vmem:[#allocation6_spill] sm:$0xff] }
 0x166   : > { %v2919_v22 = vpop.f32.mrf.mxu0  ;;  %v2955_v23 = vpop.f32.mrf.mxu1  ;;  %v1386_v21 = vmax.f32 %v3720_v20, %v3719_v24  ;;  %v3725_v11 = vld [vmem:[#allocation10_spill] sm:$0xff] }
 0x167   : > { %2743 = vst [vmem:[%s3582_s7 + $0x38] sm:$0xff] %v2695_v10   ;;  %v2690_v42 = vpack.c.bf16 %v2112_v7, %v2111_v14  ;;  %v1732_v28 = vmax.f32 %v1378_v41, %v2919_v22  ;;  %v2083_v29 = vmax.f32 %v1729_v17, %v2004_v6  ;;  %v2117_v45 = vmax.f32 %v2085_v43, 0.0  ;;  %v3722_v41 = vld [vmem:[#allocation7_spill] sm:$0xff] }
 0x168   : > { %v1653_v48 = vpop.f32.mrf.mxu0  ;;  %v2007_v49 = vpop.f32.mrf.mxu1  ;;  %v3723_v5 = vmax.f32 %v3721_v40, %v3722_v41  ;;  %v3724_v7 = vld [vmem:[#allocation11_spill] sm:$0xff] }
 0x169   : > { %2742 = vst [vmem:[%s3582_s7 + $0x30] sm:$0xff] %v2690_v42   ;;  %v2086_v27 = vmax.f32 %v1732_v28, %v2955_v23  ;;  %v1730_v34 = vmax.f32 %v1376_v4, %v1653_v48  ;;  %v2115_v19 = vmax.f32 %v2083_v29, 0.0  ;;  %v1384_v17 = vmax.f32 %v3725_v11, %v3724_v7 }
 0x16a   : > { %v2922_v12 = vpop.f32.mrf.mxu0  ;;  %v2958_v13 = vpop.f32.mrf.mxu1 }
 0x16b   : > { %v2118_v46 = vmax.f32 %v2086_v27, 0.0  ;;  %v2084_v37 = vmax.f32 %v1730_v34, %v2007_v49  ;;  %v1735_v50 = vmax.f32 %v3713_v25, %v2922_v12 }
 0x16c   : > { %v1666_v26 = vpop.f32.mrf.mxu0  ;;  %v2020_v18 = vpop.f32.mrf.mxu1 }
 0x16d   : > { %v2705_v30 = vpack.c.bf16 %v2118_v46, %v2117_v45  ;;  %v2116_v31 = vmax.f32 %v2084_v37, 0.0  ;;  %v1733_v47 = vmax.f32 %v3714_v44, %v1666_v26  ;;  %v2089_v53 = vmax.f32 %v1735_v50, %v2958_v13  ;;  %v3726_v45 = vld [vmem:[#allocation12_spill] sm:$0xff]  ;;  %v3727_v46 = vld [vmem:[#allocation13_spill] sm:$0xff] }
 0x16e   : > { %v2923_v57 = vpop.f32.mrf.mxu0  ;;  %v2959_v62 = vpop.f32.mrf.mxu1  ;;  %v3728_v37 = vmax.f32 %v3726_v45, %v3727_v46  ;;  %v3729_v50 = vld [vmem:[#allocation17_spill] sm:$0xff] }
 0x16f   : > { %2745 = vst [vmem:[%s3582_s7 + $0x48] sm:$0xff] %v2705_v30   ;;  %v2700_v52 = vpack.c.bf16 %v2116_v31, %v2115_v19  ;;  %v1736_v60 = vmax.f32 %v1382_v51, %v2923_v57  ;;  %v2087_v1 = vmax.f32 %v1733_v47, %v2020_v18  ;;  %v2121_v55 = vmax.f32 %v2089_v53, 0.0  ;;  %v3730_v51 = vld [vmem:[#allocation16_spill] sm:$0xff]  ;;  %v3731_v47 = vld [vmem:[#allocation14_spill] sm:$0xff]  ;;  %v3732_v57 = vld [vmem:[#allocation15_spill] sm:$0xff] }
 0x170   : > { %v1669_v58 = vpop.f32.mrf.mxu0  ;;  %v2023_v59 = vpop.f32.mrf.mxu1  ;;  %v1390_v26 = vmax.f32 %v3730_v51, %v3729_v50  ;;  %v3734_v53 = vld [vmem:[#allocation19_spill] sm:$0xff] }
 0x171   : > { %2744 = vst [vmem:[%s3582_s7 + $0x40] sm:$0xff] %v2700_v52   ;;  %v2090_v2 = vmax.f32 %v1736_v60, %v2959_v62  ;;  %v1734_v15 = vmax.f32 %v1380_v0, %v1669_v58  ;;  %v2119_v36 = vmax.f32 %v2087_v1, 0.0  ;;  %v3733_v62 = vmax.f32 %v3731_v47, %v3732_v57  ;;  %v3735_v60 = vld [vmem:[#allocation18_spill] sm:$0xff] }
 0x172   : > { %v2926_v32 = vpop.f32.mrf.mxu0  ;;  %v2962_v33 = vpop.f32.mrf.mxu1  ;;  %v1388_v58 = vmax.f32 %v3735_v60, %v3734_v53 }
 0x173   : > { %v2122_v56 = vmax.f32 %v2090_v2, 0.0  ;;  %v2088_v16 = vmax.f32 %v1734_v15, %v2023_v59  ;;  %v1739_v61 = vmax.f32 %v3718_v3, %v2926_v32 }
 0x174   : > { %v1682_v54 = vpop.f32.mrf.mxu0  ;;  %v2036_v35 = vpop.f32.mrf.mxu1 }
 0x175   : > { %v2715_v8 = vpack.c.bf16 %v2122_v56, %v2121_v55  ;;  %v2120_v9 = vmax.f32 %v2088_v16, 0.0  ;;  %v1737_v6 = vmax.f32 %v3723_v5, %v1682_v54  ;;  %v2093_v23 = vmax.f32 %v1739_v61, %v2962_v33 }
 0x176   : > { %v2927_v14 = vpop.f32.mrf.mxu0  ;;  %v2963_v10 = vpop.f32.mrf.mxu1 }
 0x177   : > { %2747 = vst [vmem:[%s3582_s7 + $0x58] sm:$0xff] %v2715_v8   ;;  %v2710_v22 = vpack.c.bf16 %v2120_v9, %v2119_v36  ;;  %v1740_v4 = vmax.f32 %v1386_v21, %v2927_v14  ;;  %v2091_v28 = vmax.f32 %v1737_v6, %v2036_v35  ;;  %v2125_v34 = vmax.f32 %v2093_v23, 0.0 }
 0x178   : > { %v1685_v42 = vpop.f32.mrf.mxu0  ;;  %v2039_v43 = vpop.f32.mrf.mxu1 }
 0x179   : > { %2746 = vst [vmem:[%s3582_s7 + $0x50] sm:$0xff] %v2710_v22   ;;  %v2094_v48 = vmax.f32 %v1740_v4, %v2963_v10  ;;  %v1738_v49 = vmax.f32 %v1384_v17, %v1685_v42  ;;  %v2123_v30 = vmax.f32 %v2091_v28, 0.0 }
 0x17a   : > { %v2930_v29 = vpop.f32.mrf.mxu0  ;;  %v2966_v27 = vpop.f32.mrf.mxu1 }
 0x17b   : > { %v2126_v12 = vmax.f32 %v2094_v48, 0.0  ;;  %v2092_v13 = vmax.f32 %v1738_v49, %v2039_v43  ;;  %v1743_v25 = vmax.f32 %v3728_v37, %v2930_v29 }
 0x17c   : > { %v1698_v18 = vpop.f32.mrf.mxu0  ;;  %v2052_v19 = vpop.f32.mrf.mxu1 }
 0x17d   : > { %v2725_v31 = vpack.c.bf16 %v2126_v12, %v2125_v34  ;;  %v2124_v44 = vmax.f32 %v2092_v13, 0.0  ;;  %v1741_v63 = vmax.f32 %v3733_v62, %v1698_v18  ;;  %v2097_v1 = vmax.f32 %v1743_v25, %v2966_v27 }
 0x17e   : > { %v2931_v0 = vpop.f32.mrf.mxu0  ;;  %v2967_v52 = vpop.f32.mrf.mxu1 }
 0x17f   : > { %2749 = vst [vmem:[%s3582_s7 + $0x68] sm:$0xff] %v2725_v31   ;;  %v2720_v59 = vpack.c.bf16 %v2124_v44, %v2123_v30  ;;  %v1744_v2 = vmax.f32 %v1390_v26, %v2931_v0  ;;  %v2095_v32 = vmax.f32 %v1741_v63, %v2052_v19  ;;  %v2129_v16 = vmax.f32 %v2097_v1, 0.0 }
 0x180   : > { %v1701_v15 = vpop.f32.mrf.mxu0  ;;  %v2055_v56 = vpop.f32.mrf.mxu1 }
 0x181   : > { %2748 = vst [vmem:[%s3582_s7 + $0x60] sm:$0xff] %v2720_v59   ;;  %v2098_v33 = vmax.f32 %v1744_v2, %v2967_v52  ;;  %v1742_v55 = vmax.f32 %v1388_v58, %v1701_v15  ;;  %v2127_v3 = vmax.f32 %v2095_v32, 0.0 }
 0x183   : > { %v2130_v38 = vmax.f32 %v2098_v33, 0.0  ;;  %v2096_v39 = vmax.f32 %v1742_v55, %v2055_v56 }
 0x185   : > { %v2735_v61 = vpack.c.bf16 %v2130_v38, %v2129_v16  ;;  %v2128_v24 = vmax.f32 %v2096_v39, 0.0 }
 0x187   : > { %2751 = vst [vmem:[%s3582_s7 + $0x78] sm:$0xff] %v2735_v61   ;;  %v2730_v20 = vpack.c.bf16 %v2128_v24, %v2127_v3 }
 0x189   : > { %2750 = vst [vmem:[%s3582_s7 + $0x70] sm:$0xff] %v2730_v20  }
 0x18a PF: > { %p9_p9 = scmp.ge.s32.totalorder %s3114_s13, 4   ;;  %s3736_s9 = smov %s3076_s10 }
 0x18b   : > { %s3737_s10 = smov %s3123_s16  ;;  %s3738_s11 = smov %s3114_s13 }
 0x18c   :  { %11 = sbr.rel (!%p9_p9) target bundleno = 2 (0x2), region = 107 }

// kernel: teacher_network_forward.7
= control target key start
LH: loop header
LB: loop body
LE: loop exit
PB: predicated region body
PF: predicated region fallthrough
CT: control target
= control target key end

     0   :  { %v360_v30 = vmov 1983009808   ;;  %v92_v32 = vlaneseq  ;;  %s583_s0 = inlined_call_operand.vmem [shape: f32[2,512], index: 0, kind: input, shape index: {}]   ;;  %s584_s1 = inlined_call_operand.vmem [shape: f32[512,128], index: 1, kind: input, shape index: {}]   ;;  %s585_s2 = inlined_call_operand.vmem [shape: f32[1,128], index: 2, kind: input, shape index: {}]   ;;  %s586_s3 = inlined_call_operand.hbm [shape: f32[2,128], index: 3, kind: output, shape index: {}]  }
   0x1   :  { %v47_v0 = vld [vmem:[%s584_s1 + $0xf8] sm:$0xff]  ;;  %v46_v4 = vld [vmem:[%s584_s1 + $0xf0] sm:$0xff]  ;;  %v45_v8 = vld [vmem:[%s584_s1 + $0xe8] sm:$0xff]  ;;  %v90_v31 = vunpack.c.l.s4 %v360_v30 }
   0x2   :  { %v79_v1 = vld [vmem:[%s584_s1 + $0x1f8] sm:$0xff]  ;;  %265 = vmatprep.subr.mxu0 %v47_v0  ;;  %v78_v5 = vld [vmem:[%s584_s1 + $0x1f0] sm:$0xff]  ;;  %v77_v9 = vld [vmem:[%s584_s1 + $0x1e8] sm:$0xff]  ;;  %v93_v42 = vshrl.u32 %v92_v32, 7 }
   0x3   :  { %v31_v2 = vld [vmem:[%s584_s1 + $0x78] sm:$0xff]  ;;  %300 = vmatprep.subr.mxu1 %v79_v1  ;;  %v30_v6 = vld [vmem:[%s584_s1 + $0x70] sm:$0xff]  ;;  %v29_v10 = vld [vmem:[%s584_s1 + $0x68] sm:$0xff]  ;;  %v91_v41 = vunpack.c.0.s8 %v90_v31 }
   0x4   :  { %v63_v3 = vld [vmem:[%s584_s1 + $0x178] sm:$0xff]  ;;  %266 = vmatpush3.msra.mxu0 %v31_v2  ;;  %v62_v7 = vld [vmem:[%s584_s1 + $0x170] sm:$0xff]  ;;  %v61_v11 = vld [vmem:[%s584_s1 + $0x168] sm:$0xff] }
   0x5   :  { %301 = vmatpush3.msra.mxu1 %v63_v3  ;;  %267 = vmatprep.subr.mxu0 %v46_v4  ;;  %v44_v12 = vld [vmem:[%s584_s1 + $0xe0] sm:$0xff]  ;;  %v43_v16 = vld [vmem:[%s584_s1 + $0xd8] sm:$0xff]  ;;  %v42_v20 = vld [vmem:[%s584_s1 + $0xd0] sm:$0xff]  ;;  %v94_v52 = vsub.s32 %v91_v41, %v93_v42 }
   0x6   :  { %302 = vmatprep.subr.mxu1 %v78_v5  ;;  %268 = vmatpush3.msra.mxu0 %v30_v6  ;;  %v76_v13 = vld [vmem:[%s584_s1 + $0x1e0] sm:$0xff]  ;;  %v75_v17 = vld [vmem:[%s584_s1 + $0x1d8] sm:$0xff]  ;;  %v74_v21 = vld [vmem:[%s584_s1 + $0x1d0] sm:$0xff] }
   0x7   :  { %303 = vmatpush3.msra.mxu1 %v62_v7  ;;  %269 = vmatprep.subr.mxu0 %v45_v8  ;;  %v28_v14 = vld [vmem:[%s584_s1 + $0x60] sm:$0xff]  ;;  %v27_v18 = vld [vmem:[%s584_s1 + $0x58] sm:$0xff]  ;;  %v26_v22 = vld [vmem:[%s584_s1 + $0x50] sm:$0xff] }
   0x8   :  { %304 = vmatprep.subr.mxu1 %v77_v9  ;;  %v60_v15 = vld [vmem:[%s584_s1 + $0x160] sm:$0xff]  ;;  %270 = vmatpush3.msra.mxu0 %v29_v10  ;;  %v59_v19 = vld [vmem:[%s584_s1 + $0x158] sm:$0xff]  ;;  %v58_v23 = vld [vmem:[%s584_s1 + $0x150] sm:$0xff] }
   0x9   :  { %305 = vmatpush3.msra.mxu1 %v61_v11  ;;  %271 = vmatprep.subr.mxu0 %v44_v12  ;;  %v41_v24 = vld [vmem:[%s584_s1 + $0xc8] sm:$0xff]  ;;  %v40_v28 = vld [vmem:[%s584_s1 + $0xc0] sm:$0xff]  ;;  %v39_v35 = vld [vmem:[%s584_s1 + $0xb8] sm:$0xff] }
   0xa   :  { %306 = vmatprep.subr.mxu1 %v76_v13  ;;  %272 = vmatpush3.msra.mxu0 %v28_v14  ;;  %v73_v25 = vld [vmem:[%s584_s1 + $0x1c8] sm:$0xff]  ;;  %v72_v29 = vld [vmem:[%s584_s1 + $0x1c0] sm:$0xff]  ;;  %v71_v36 = vld [vmem:[%s584_s1 + $0x1b8] sm:$0xff] }
   0xb   :  { %307 = vmatpush3.msra.mxu1 %v60_v15  ;;  %273 = vmatprep.subr.mxu0 %v43_v16  ;;  %v25_v26 = vld [vmem:[%s584_s1 + $0x48] sm:$0xff]  ;;  %v24_v33 = vld [vmem:[%s584_s1 + $0x40] sm:$0xff]  ;;  %v23_v37 = vld [vmem:[%s584_s1 + $0x38] sm:$0xff] }
   0xc   :  { %308 = vmatprep.subr.mxu1 %v75_v17  ;;  %274 = vmatpush3.msra.mxu0 %v27_v18  ;;  %v57_v27 = vld [vmem:[%s584_s1 + $0x148] sm:$0xff]  ;;  %v56_v34 = vld [vmem:[%s584_s1 + $0x140] sm:$0xff]  ;;  %v55_v38 = vld [vmem:[%s584_s1 + $0x138] sm:$0xff] }
   0xd   :  { %309 = vmatpush3.msra.mxu1 %v59_v19  ;;  %275 = vmatprep.subr.mxu0 %v42_v20  ;;  %v38_v39 = vld [vmem:[%s584_s1 + $0xb0] sm:$0xff]  ;;  %v37_v45 = vld [vmem:[%s584_s1 + $0xa8] sm:$0xff]  ;;  %v36_v49 = vld [vmem:[%s584_s1 + $0xa0] sm:$0xff] }
   0xe   :  { %310 = vmatprep.subr.mxu1 %v74_v21  ;;  %276 = vmatpush3.msra.mxu0 %v26_v22  ;;  %v70_v40 = vld [vmem:[%s584_s1 + $0x1b0] sm:$0xff]  ;;  %v69_v46 = vld [vmem:[%s584_s1 + $0x1a8] sm:$0xff]  ;;  %v68_v50 = vld [vmem:[%s584_s1 + $0x1a0] sm:$0xff] }
   0xf   :  { %311 = vmatpush3.msra.mxu1 %v58_v23  ;;  %277 = vmatprep.subr.mxu0 %v41_v24  ;;  %v22_v43 = vld [vmem:[%s584_s1 + $0x30] sm:$0xff]  ;;  %v21_v47 = vld [vmem:[%s584_s1 + $0x28] sm:$0xff]  ;;  %v20_v51 = vld [vmem:[%s584_s1 + $0x20] sm:$0xff] }
  0x10   :  { %312 = vmatprep.subr.mxu1 %v73_v25  ;;  %278 = vmatpush3.msra.mxu0 %v25_v26  ;;  %v54_v44 = vld [vmem:[%s584_s1 + $0x130] sm:$0xff]  ;;  %v53_v48 = vld [vmem:[%s584_s1 + $0x128] sm:$0xff]  ;;  %v52_v53 = vld [vmem:[%s584_s1 + $0x120] sm:$0xff] }
  0x11   :  { %313 = vmatpush3.msra.mxu1 %v57_v27  ;;  %279 = vmatprep.subr.mxu0 %v40_v28  ;;  %v15_v54 = vld [vmem:[%s583_s0] sm:$0xff] }
  0x12   :  { %314 = vmatprep.subr.mxu1 %v72_v29  ;;  %280 = vmatpush3.msra.mxu0 %v24_v33 }
  0x13   :  { %315 = vmatpush3.msra.mxu1 %v56_v34  ;;  %281 = vmatprep.subr.mxu0 %v39_v35 }
  0x14   :  { %316 = vmatprep.subr.mxu1 %v71_v36  ;;  %282 = vmatpush3.msra.mxu0 %v23_v37 }
  0x15   :  { %317 = vmatpush3.msra.mxu1 %v55_v38  ;;  %283 = vmatprep.subr.mxu0 %v38_v39 }
  0x16   :  { %318 = vmatprep.subr.mxu1 %v70_v40  ;;  %284 = vmatpush3.msra.mxu0 %v22_v43 }
  0x17   :  { %319 = vmatpush3.msra.mxu1 %v54_v44  ;;  %285 = vmatprep.subr.mxu0 %v37_v45 }
  0x18   :  { %320 = vmatprep.subr.mxu1 %v69_v46 }
  0x19   :  { %8 = vsyncpa [#allocation3], 0  ;;  %286 = vmatpush3.msra.mxu0 %v21_v47  ;;  %321 = vmatpush3.msra.mxu1 %v53_v48  ;;  %v35_v55 = vld [vmem:[%s584_s1 + $0x98] sm:$0xff]  ;;  %v88_v57 = vcombine.high %v15_v54, %v15_v54  ;;  %v34_v60 = vld [vmem:[%s584_s1 + $0x90] sm:$0xff]  ;;  %v95_v62 = vrot.slane %v15_v54, %v94_v52  ;;  %s361_s8 = smov [#allocation2]  }
  0x1a   :  { %v67_v56 = vld [vmem:[%s584_s1 + $0x198] sm:$0xff]  ;;  %287 = vmatprep.subr.mxu0 %v36_v49  ;;  %322 = vmatprep.subr.mxu1 %v68_v50  ;;  %v66_v61 = vld [vmem:[%s584_s1 + $0x190] sm:$0xff]  ;;  %v33_v2 = vld [vmem:[%s584_s1 + $0x88] sm:$0xff]  ;;  %s256_s0 = sshll.u32 %s361_s8, 4  ;;  %s257_s0 = int_to_ptr.vmem [resolvable:$true] %s256_s0 }
  0x1b   :  { %v19_v58 = vld [vmem:[%s584_s1 + $0x18] sm:$0xff]  ;;  %288 = vmatpush3.msra.mxu0 %v20_v51  ;;  %323 = vmatpush3.msra.mxu1 %v52_v53  ;;  %v18_v63 = vld [vmem:[%s584_s1 + $0x10] sm:$0xff]  ;;  %v102_v1 = vrot.slane %v88_v57, %v94_v52  ;;  %v65_v3 = vld [vmem:[%s584_s1 + $0x188] sm:$0xff]  ;;  %v103_v8 = vcombine.high %v95_v62, %v95_v62  ;;  %p343_p1 = scmp.lt.s32.totalorder %s257_s0, %s257_s0 }
  0x1c   :  { %v51_v59 = vld [vmem:[%s584_s1 + $0x118] sm:$0xff]  ;;  %289 = vmatprep.subr.mxu0 %v35_v55  ;;  %324 = vmatprep.subr.mxu1 %v67_v56  ;;  %v50_v0 = vld [vmem:[%s584_s1 + $0x110] sm:$0xff]  ;;  %v17_v4 = vld [vmem:[%s584_s1 + $0x8] sm:$0xff] }
  0x1d   :  { %290 = vmatpush3.msra.mxu0 %v19_v58  ;;  %325 = vmatpush3.msra.mxu1 %v51_v59  ;;  %v49_v5 = vld [vmem:[%s584_s1 + $0x108] sm:$0xff]  ;;  %v32_v6 = vld [vmem:[%s584_s1 + $0x80] sm:$0xff]  ;;  %v104_v10 = vcombine.high %v102_v1, %v102_v1 }
  0x1e   :  { %291 = vmatprep.subr.mxu0 %v34_v60  ;;  %326 = vmatprep.subr.mxu1 %v66_v61  ;;  %v64_v7 = vld [vmem:[%s584_s1 + $0x180] sm:$0xff] }
  0x1f   :  { %292 = vmatpush3.msra.mxu0 %v18_v63  ;;  %327 = vmatpush3.msra.mxu1 %v50_v0  ;;  %v16_v9 = vld [vmem:[%s584_s1] sm:$0xff] }
  0x20   :  { %293 = vmatprep.subr.mxu0 %v33_v2  ;;  %328 = vmatprep.subr.mxu1 %v65_v3  ;;  %v48_v11 = vld [vmem:[%s584_s1 + $0x100] sm:$0xff]  ;;  %s338_s1 = scalar_lea.vmem %s257_s0, 32 }
  0x21   :  { %294 = vmatpush3.msra.mxu0 %v17_v4  ;;  %329 = vmatpush3.msra.mxu1 %v49_v5  ;;  %v264_v14 = vld [vmem:[%s585_s2] ss:$0 sm:$0xff]  ;;  %p339_p0 = scmp.ne.s32.totalorder %s257_s0, %s338_s1  ;;  %p344_p2 = scmp.lt.s32.totalorder %s338_s1, %s338_s1 }
  0x22   :  { %295 = vmatprep.subr.mxu0 %v32_v6  ;;  %330 = vmatprep.subr.mxu1 %v64_v7 }
  0x23   :  { %296 = vmatpush3.msra.mxu0 %v16_v9  ;;  %173 = vmatprep.mubr.f32.mxu0 %v103_v8  ;;  %p345_p3 = por %p344_p2, %p343_p1 }
  0x24   :  { %331 = vmatpush3.msra.mxu1 %v48_v11  ;;  %243 = vmatprep.mubr.f32.mxu1 %v104_v10 }
  0x25   :  { %174 = vmatmul.mubr.f32.vlgmr.msra.gmra.mxu0 %v95_v62  ;;  %244 = vmatmul.mubr.f32.vlgmr.msra.gmra.mxu1 %v102_v1  ;;  %p346_p4 = pnand %p345_p3, %p339_p0 }
  0xe5   :  { %v297_v12 = vpop.f32.mrf.mxu0  ;;  %v332_v13 = vpop.f32.mrf.mxu1 }
  0xe7   :  { %v298_v15 = vpop.f32.mrf.mxu0  ;;  %v333_v16 = vpop.f32.mrf.mxu1 }
  0xe8   :  { %v299_v17 = vadd.f32 %v298_v15, %v297_v12  ;;  %v334_v19 = vadd.f32 %v333_v16, %v332_v13 }
  0xea   :  { %v176_v18 = vadd.f32 %v299_v17, %v264_v14 }
  0xec   :  { %v246_v20 = vadd.f32 %v334_v19, %v176_v18 }
  0xee   :  { %249 = vst [vmem:[#allocation2] sm:$0x3] %v246_v20 }
  0xef   :  { %349 = shalt.err (!%p346_p4)
}
  0xf0   :  { %259 = dma.vmem_to_hbm [thread:$0]  %s257_s0, 32, %s586_s3, [#allocation3]  }
  0xf1   :  { %358 = dma.done.wait [#allocation3], 32  }
  0xf2   :  { %359 = vsyncadd [#allocation3], 4294967264 }
  0xf3   :  { %263 = vsyncpa [#allocation3], 1 }

// kernel: teacher_network_forward.6
= control target key start
LH: loop header
LB: loop body
LE: loop exit
PB: predicated region body
PF: predicated region fallthrough
CT: control target
= control target key end

     0   :  { %s1656_s1 = inlined_call_operand.vmem [shape: bf16[1152,128], index: 1, kind: input, shape index: {}]   ;;  %s1657_s0 = inlined_call_operand.vmem [shape: bf16[32,1152], index: 0, kind: input, shape index: {}]   ;;  %s1658_s2 = inlined_call_operand.vmem [shape: f32[1,128], index: 2, kind: input, shape index: {}]   ;;  %s1659_s3 = inlined_call_operand.vmem [shape: f32[1,128], index: 3, kind: input, shape index: {}]   ;;  %s1660_s4 = inlined_call_operand.vmem [shape: bf16[8,128], index: 4, kind: output, shape index: {}]  }
   0x1   :  { %v1252_v0 = vld [vmem:[%s1656_s1 + $0x78] sm:$0xff]   ;;  %v1256_v4 = vld [vmem:[%s1656_s1 + $0x70] sm:$0xff]   ;;  %v1260_v8 = vld [vmem:[%s1656_s1 + $0x68] sm:$0xff]  }
   0x2   :  { %v1253_v1 = vld [vmem:[%s1656_s1 + $0xf8] sm:$0xff]   ;;  %1110 = vmatprep.subr.bf16.mxu0 %v1252_v0  ;;  %v1257_v5 = vld [vmem:[%s1656_s1 + $0xf0] sm:$0xff]   ;;  %v1261_v9 = vld [vmem:[%s1656_s1 + $0xe8] sm:$0xff]  }
   0x3   :  { %v1254_v2 = vld [vmem:[%s1656_s1 + $0x38] sm:$0xff]   ;;  %1138 = vmatprep.subr.bf16.mxu1 %v1253_v1  ;;  %v1258_v6 = vld [vmem:[%s1656_s1 + $0x30] sm:$0xff]   ;;  %v1262_v10 = vld [vmem:[%s1656_s1 + $0x28] sm:$0xff]  }
   0x4   :  { %v1255_v3 = vld [vmem:[%s1656_s1 + $0xb8] sm:$0xff]   ;;  %1111 = vmatpush3.bf16.msra.mxu0 %v1254_v2  ;;  %v1259_v7 = vld [vmem:[%s1656_s1 + $0xb0] sm:$0xff]   ;;  %v1263_v11 = vld [vmem:[%s1656_s1 + $0xa8] sm:$0xff]  }
   0x5   :  { %1139 = vmatpush3.bf16.msra.mxu1 %v1255_v3  ;;  %1112 = vmatprep.subr.bf16.mxu0 %v1256_v4  ;;  %v1264_v12 = vld [vmem:[%s1656_s1 + $0x60] sm:$0xff]   ;;  %v1268_v16 = vld [vmem:[%s1656_s1 + $0x58] sm:$0xff]   ;;  %v1272_v20 = vld [vmem:[%s1656_s1 + $0x50] sm:$0xff]  }
   0x6   :  { %1140 = vmatprep.subr.bf16.mxu1 %v1257_v5  ;;  %v1265_v13 = vld [vmem:[%s1656_s1 + $0xe0] sm:$0xff]   ;;  %v1269_v17 = vld [vmem:[%s1656_s1 + $0xd8] sm:$0xff]   ;;  %v1273_v21 = vld [vmem:[%s1656_s1 + $0xd0] sm:$0xff]  }
   0x7   :  { %v1266_v14 = vld [vmem:[%s1656_s1 + $0x20] sm:$0xff]   ;;  %v1270_v18 = vld [vmem:[%s1656_s1 + $0x18] sm:$0xff]   ;;  %v1274_v22 = vld [vmem:[%s1656_s1 + $0x10] sm:$0xff]  }
   0x8   :  { %1113 = vmatpush3.bf16.msra.mxu0 %v1258_v6  ;;  %v1267_v15 = vld [vmem:[%s1656_s1 + $0xa0] sm:$0xff]   ;;  %v1271_v19 = vld [vmem:[%s1656_s1 + $0x98] sm:$0xff]   ;;  %v1275_v23 = vld [vmem:[%s1656_s1 + $0x90] sm:$0xff]  }
   0x9   :  { %1141 = vmatpush3.bf16.msra.mxu1 %v1259_v7  ;;  %1114 = vmatprep.subr.bf16.mxu0 %v1260_v8  ;;  %v1276_v24 = vld [vmem:[%s1656_s1 + $0x48] sm:$0xff]   ;;  %v1280_v28 = vld [vmem:[%s1656_s1 + $0x40] sm:$0xff]   ;;  %v1290_v36 = vld [vmem:[%s1656_s1 + $0x178] sm:$0xff]  }
   0xa   :  { %1142 = vmatprep.subr.bf16.mxu1 %v1261_v9  ;;  %v1277_v25 = vld [vmem:[%s1656_s1 + $0xc8] sm:$0xff]   ;;  %v1281_v29 = vld [vmem:[%s1656_s1 + $0xc0] sm:$0xff]   ;;  %v1291_v37 = vld [vmem:[%s1656_s1 + $0x138] sm:$0xff]  }
   0xb   :  { %v1278_v26 = vld [vmem:[%s1656_s1 + $0x8] sm:$0xff]   ;;  %v1282_v30 = vld [vmem:[%s1656_s1] sm:$0xff]   ;;  %v1292_v38 = vld [vmem:[%s1656_s1 + $0x1f8] sm:$0xff]  }
   0xc   :  { %1115 = vmatpush3.bf16.msra.mxu0 %v1262_v10  ;;  %v1279_v27 = vld [vmem:[%s1656_s1 + $0x88] sm:$0xff]   ;;  %v1283_v31 = vld [vmem:[%s1656_s1 + $0x80] sm:$0xff]   ;;  %v1293_v39 = vld [vmem:[%s1656_s1 + $0x1b8] sm:$0xff]  }
   0xd   :  { %1143 = vmatpush3.bf16.msra.mxu1 %v1263_v11  ;;  %1116 = vmatprep.subr.bf16.mxu0 %v1264_v12  ;;  %v1284_v32 = vld [vmem:[%s1657_s0] ss:$36 sps:$4 sm:$0xff]   ;;  %v1287_v34 = vld [vmem:[%s1657_s0 + $0x8] ss:$36 sps:$4 sm:$0xff]   ;;  %v1294_v40 = vld [vmem:[%s1656_s1 + $0x170] sm:$0xff]  }
   0xe   :  { %1144 = vmatprep.subr.bf16.mxu1 %v1265_v13  ;;  %v1286_v33 = vld [vmem:[%s1657_s0 + $0x4] ss:$36 sps:$4 sm:$0xff]   ;;  %v1289_v35 = vld [vmem:[%s1657_s0 + $0xc] ss:$36 sps:$4 sm:$0xff]   ;;  %v1306_v52 = vld [vmem:[%s1656_s1 + $0x158] sm:$0xff]  }
   0xf   :  { %738 = vmatprep.mubr.bf16.mxu0 %v1286_v33  ;;  %787 = vmatprep.mubr.bf16.mxu1 %v1289_v35  ;;  %v1295_v41 = vld [vmem:[%s1656_s1 + $0x130] sm:$0xff]   ;;  %v1298_v44 = vld [vmem:[%s1656_s1 + $0x168] sm:$0xff]   ;;  %v1302_v48 = vld [vmem:[%s1656_s1 + $0x160] sm:$0xff]  }
  0x10   :  { %1117 = vmatpush3.bf16.msra.mxu0 %v1266_v14  ;;  %v1296_v42 = vld [vmem:[%s1656_s1 + $0x1f0] sm:$0xff]   ;;  %v1299_v45 = vld [vmem:[%s1656_s1 + $0x128] sm:$0xff]   ;;  %v1303_v49 = vld [vmem:[%s1656_s1 + $0x120] sm:$0xff]  }
  0x11   :  { %1145 = vmatpush3.bf16.msra.mxu1 %v1267_v15  ;;  %1118 = vmatprep.subr.bf16.mxu0 %v1268_v16  ;;  %v1297_v43 = vld [vmem:[%s1656_s1 + $0x1b0] sm:$0xff]   ;;  %v1300_v46 = vld [vmem:[%s1656_s1 + $0x1e8] sm:$0xff]   ;;  %v1304_v50 = vld [vmem:[%s1656_s1 + $0x1e0] sm:$0xff]  }
  0x12   :  { %1146 = vmatprep.subr.bf16.mxu1 %v1269_v17  ;;  %v1301_v47 = vld [vmem:[%s1656_s1 + $0x1a8] sm:$0xff]   ;;  %v1305_v51 = vld [vmem:[%s1656_s1 + $0x1a0] sm:$0xff]   ;;  %v1307_v53 = vld [vmem:[%s1656_s1 + $0x118] sm:$0xff]  }
  0x13   :  { %v1308_v54 = vld [vmem:[%s1657_s0 + $0x4c] ss:$36 sps:$4 sm:$0xff]   ;;  %v1310_v55 = vld [vmem:[%s1657_s0 + $0x54] ss:$36 sps:$4 sm:$0xff]   ;;  %v1324_v4 = vld [vmem:[%s1656_s1 + $0x140] sm:$0xff]  }
  0x14   :  { %1119 = vmatpush3.bf16.msra.mxu0 %v1270_v18  ;;  %v1312_v56 = vld [vmem:[%s1656_s1 + $0x1d8] sm:$0xff]   ;;  %v1313_v57 = vld [vmem:[%s1657_s0 + $0x48] ss:$36 sps:$4 sm:$0xff]   ;;  %v1314_v58 = vld [vmem:[%s1657_s0 + $0x50] ss:$36 sps:$4 sm:$0xff]  }
  0x15   :  { %1147 = vmatpush3.bf16.msra.mxu1 %v1271_v19  ;;  %1120 = vmatprep.subr.bf16.mxu0 %v1272_v20  ;;  %v1315_v59 = vld [vmem:[%s1656_s1 + $0x198] sm:$0xff]   ;;  %v1316_v60 = vld [vmem:[%s1656_s1 + $0x150] sm:$0xff]   ;;  %v1320_v0 = vld [vmem:[%s1656_s1 + $0x148] sm:$0xff]  }
  0x16   :  { %1148 = vmatprep.subr.bf16.mxu1 %v1273_v21  ;;  %v1317_v61 = vld [vmem:[%s1656_s1 + $0x110] sm:$0xff]   ;;  %v1321_v1 = vld [vmem:[%s1656_s1 + $0x108] sm:$0xff]   ;;  %v1325_v5 = vld [vmem:[%s1656_s1 + $0x100] sm:$0xff]  }
  0x17   :  { %v1318_v62 = vld [vmem:[%s1656_s1 + $0x1d0] sm:$0xff]   ;;  %v1322_v2 = vld [vmem:[%s1656_s1 + $0x1c8] sm:$0xff]   ;;  %v1326_v6 = vld [vmem:[%s1656_s1 + $0x1c0] sm:$0xff]  }
  0x18   :  { %1121 = vmatpush3.bf16.msra.mxu0 %v1274_v22  ;;  %v1319_v63 = vld [vmem:[%s1656_s1 + $0x190] sm:$0xff]   ;;  %v1323_v3 = vld [vmem:[%s1656_s1 + $0x188] sm:$0xff]   ;;  %v1330_v9 = vld [vmem:[%s1656_s1 + $0x180] sm:$0xff]  }
  0x19   :  { %1149 = vmatpush3.bf16.msra.mxu1 %v1275_v23  ;;  %1122 = vmatprep.subr.bf16.mxu0 %v1276_v24  ;;  %v1327_v7 = vld [vmem:[%s1657_s0 + $0x10] ss:$36 sps:$4 sm:$0xff]   ;;  %v1331_v10 = vld [vmem:[%s1656_s1 + $0x238] sm:$0xff]   ;;  %v1339_v16 = vld [vmem:[%s1656_s1 + $0x228] sm:$0xff]  }
  0x1a   :  { %1150 = vmatprep.subr.bf16.mxu1 %v1277_v25  ;;  %v1329_v8 = vld [vmem:[%s1657_s0 + $0x14] ss:$36 sps:$4 sm:$0xff]   ;;  %v1334_v12 = vld [vmem:[%s1657_s0 + $0x1c] ss:$36 sps:$4 sm:$0xff]   ;;  %v1340_v17 = vld [vmem:[%s1657_s0 + $0x64] ss:$36 sps:$4 sm:$0xff]  }
  0x1b   :  { %v1332_v11 = vld [vmem:[%s1657_s0 + $0x18] ss:$36 sps:$4 sm:$0xff]   ;;  %v1335_v13 = vld [vmem:[%s1656_s1 + $0x230] sm:$0xff]   ;;  %v1342_v18 = vld [vmem:[%s1657_s0 + $0x60] ss:$36 sps:$4 sm:$0xff]  }
  0x1c   :  { %1123 = vmatpush3.bf16.msra.mxu0 %v1278_v26  ;;  %v1336_v14 = vld [vmem:[%s1657_s0 + $0x5c] ss:$36 sps:$4 sm:$0xff]   ;;  %v1345_v22 = vld [vmem:[%s1656_s1 + $0x210] sm:$0xff]   ;;  %v1346_v23 = vld [vmem:[%s1656_s1 + $0x208] sm:$0xff]  }
  0x1d   :  { %1151 = vmatpush3.bf16.msra.mxu1 %v1279_v27  ;;  %1124 = vmatprep.subr.bf16.mxu0 %v1280_v28  ;;  %v1338_v15 = vld [vmem:[%s1657_s0 + $0x58] ss:$36 sps:$4 sm:$0xff]   ;;  %v1343_v19 = vld [vmem:[%s1656_s1 + $0x220] sm:$0xff]   ;;  %v1349_v25 = vld [vmem:[%s1657_s0 + $0x68] ss:$36 sps:$4 sm:$0xff]  }
  0x1e   :  { %1152 = vmatprep.subr.bf16.mxu1 %v1281_v29  ;;  %v1344_v20 = vld [vmem:[%s1656_s1 + $0x218] sm:$0xff]   ;;  %v1348_v21 = vld [vmem:[%s1657_s0 + $0x20] ss:$36 sps:$4 sm:$0xff]  }
  0x1f   :  { %v1347_v24 = vld [vmem:[%s1656_s1 + $0x200] sm:$0xff]  }
  0x20   :  { %1125 = vmatpush3.bf16.msra.mxu0 %v1282_v30 }
  0x21   :  { %1153 = vmatpush3.bf16.msra.mxu1 %v1283_v31  ;;  %1166 = vmatprep.subr.bf16.mxu0 %v1290_v36 }
  0x22   :  { %1194 = vmatprep.subr.bf16.mxu1 %v1292_v38 }
  0x23   :  { %739 = vmatmul.mubr.bf16.vlgmr.msra.gmra.mxu0 %v1284_v32 }
  0x24   :  { %788 = vmatmul.mubr.bf16.vlgmr.msra.gmra.mxu1 %v1287_v34  ;;  %1167 = vmatpush3.bf16.msra.mxu0 %v1291_v37 }
  0x25   :  { %1195 = vmatpush3.bf16.msra.mxu1 %v1293_v39  ;;  %1168 = vmatprep.subr.bf16.mxu0 %v1294_v40 }
  0x26   :  { %1196 = vmatprep.subr.bf16.mxu1 %v1296_v42  ;;  %746 = vmatprep.mubr.bf16.mxu0 %v1308_v54 }
  0x27   :  { %795 = vmatprep.mubr.bf16.mxu1 %v1310_v55 }
  0x28   :  { %1169 = vmatpush3.bf16.msra.mxu0 %v1295_v41 }
  0x29   :  { %1197 = vmatpush3.bf16.msra.mxu1 %v1297_v43  ;;  %1170 = vmatprep.subr.bf16.mxu0 %v1298_v44 }
  0x2a   :  { %1198 = vmatprep.subr.bf16.mxu1 %v1300_v46 }
  0x2b   :  { %747 = vmatmul.mubr.bf16.gmra.mxu0 %v1313_v57 }
  0x2c   :  { %1171 = vmatpush3.bf16.msra.mxu0 %v1299_v45  ;;  %796 = vmatmul.mubr.bf16.gmra.mxu1 %v1314_v58 }
  0x2d   :  { %1199 = vmatpush3.bf16.msra.mxu1 %v1301_v47  ;;  %1172 = vmatprep.subr.bf16.mxu0 %v1302_v48 }
  0x2e   :  { %1200 = vmatprep.subr.bf16.mxu1 %v1304_v50  ;;  %836 = vmatprep.mubr.bf16.mxu0 %v1329_v8 }
  0x2f   :  { %885 = vmatprep.mubr.bf16.mxu1 %v1334_v12 }
  0x30   :  { %1173 = vmatpush3.bf16.msra.mxu0 %v1303_v49 }
  0x31   :  { %1201 = vmatpush3.bf16.msra.mxu1 %v1305_v51  ;;  %1174 = vmatprep.subr.bf16.mxu0 %v1306_v52 }
  0x32   :  { %1202 = vmatprep.subr.bf16.mxu1 %v1312_v56 }
  0x34   :  { %1175 = vmatpush3.bf16.msra.mxu0 %v1307_v53 }
  0x35   :  { %1203 = vmatpush3.bf16.msra.mxu1 %v1315_v59  ;;  %1176 = vmatprep.subr.bf16.mxu0 %v1316_v60 }
  0x36   :  { %1204 = vmatprep.subr.bf16.mxu1 %v1318_v62 }
  0x38   :  { %1177 = vmatpush3.bf16.msra.mxu0 %v1317_v61 }
  0x39   :  { %1205 = vmatpush3.bf16.msra.mxu1 %v1319_v63  ;;  %1178 = vmatprep.subr.bf16.mxu0 %v1320_v0 }
  0x3a   :  { %1206 = vmatprep.subr.bf16.mxu1 %v1322_v2 }
  0x3c   :  { %1179 = vmatpush3.bf16.msra.mxu0 %v1321_v1 }
  0x3d   :  { %1207 = vmatpush3.bf16.msra.mxu1 %v1323_v3  ;;  %1180 = vmatprep.subr.bf16.mxu0 %v1324_v4 }
  0x3e   :  { %1208 = vmatprep.subr.bf16.mxu1 %v1326_v6 }
  0x40   :  { %1181 = vmatpush3.bf16.msra.mxu0 %v1325_v5 }
  0x41   :  { %1209 = vmatpush3.bf16.msra.mxu1 %v1330_v9  ;;  %1232 = vmatprep.subr.bf16.mxu0 %v1331_v10 }
  0x43   :  { %837 = vmatmul.mubr.bf16.vlgmr.msra.gmra.mxu0 %v1327_v7 }
  0x44   :  { %1233 = vmatpush3.bf16.msra.mxu0 %v1331_v10  ;;  %886 = vmatmul.mubr.bf16.vlgmr.msra.gmra.mxu1 %v1332_v11 }
  0x45   :  { %1234 = vmatprep.subr.bf16.mxu0 %v1335_v13  ;;  %844 = vmatprep.mubr.bf16.mxu0 %v1336_v14 }
  0x46   :  { %893 = vmatprep.mubr.bf16.mxu1 %v1340_v17 }
  0x48   :  { %1235 = vmatpush3.bf16.msra.mxu0 %v1335_v13 }
  0x49   :  { %1236 = vmatprep.subr.bf16.mxu0 %v1339_v16 }
  0x4b   :  { %845 = vmatmul.mubr.bf16.gmra.mxu0 %v1338_v15 }
  0x4c   :  { %1237 = vmatpush3.bf16.msra.mxu0 %v1339_v16  ;;  %894 = vmatmul.mubr.bf16.gmra.mxu1 %v1342_v18 }
  0x4d   :  { %1238 = vmatprep.subr.bf16.mxu0 %v1343_v19  ;;  %1248 = vmatprep.mubr.bf16.mxu0 %v1348_v21 }
  0x50   :  { %1239 = vmatpush3.bf16.msra.mxu0 %v1343_v19 }
  0x51   :  { %1240 = vmatprep.subr.bf16.mxu0 %v1344_v20 }
  0x54   :  { %1241 = vmatpush3.bf16.msra.mxu0 %v1344_v20 }
  0x55   :  { %1242 = vmatprep.subr.bf16.mxu0 %v1345_v22 }
  0x58   :  { %1243 = vmatpush3.bf16.msra.mxu0 %v1345_v22 }
  0x59   :  { %1244 = vmatprep.subr.bf16.mxu0 %v1346_v23 }
  0x5c   :  { %1245 = vmatpush3.bf16.msra.mxu0 %v1346_v23 }
  0x5d   :  { %1246 = vmatprep.subr.bf16.mxu0 %v1347_v24 }
  0x60   :  { %1247 = vmatpush3.bf16.msra.mxu0 %v1347_v24 }
  0x63   :  { %1249 = vmatmul.mubr.bf16.vlgmr.msra.gmra.mxu0 %v1349_v25 }
  0xe3   :  { %v1126_v26 = vpop.f32.mrf.mxu0 }
  0xe4   :  { %v1154_v27 = vpop.f32.mrf.mxu1 }
  0xe5   :  { %v1127_v28 = vpop.f32.mrf.mxu0 }
  0xe6   :  { %v1155_v29 = vpop.f32.mrf.mxu1  ;;  %v1128_v53 = vadd.f32 %v1127_v28, %v1126_v26 }
  0xe7   :  { %v1129_v30 = vpop.f32.mrf.mxu0  ;;  %v1156_v54 = vadd.f32 %v1155_v29, %v1154_v27 }
  0xe8   :  { %v1157_v31 = vpop.f32.mrf.mxu1 }
  0xe9   :  { %v1130_v32 = vpop.f32.mrf.mxu0  ;;  %v790_v63 = vadd.f32 %v1156_v54, %v1128_v53 }
  0xea   :  { %v1158_v34 = vpop.f32.mrf.mxu1  ;;  %v1131_v57 = vadd.f32 %v1130_v32, %v1129_v30 }
  0xeb   :  { %v1132_v33 = vpop.f32.mrf.mxu0  ;;  %v1159_v58 = vadd.f32 %v1158_v34, %v1157_v31 }
  0xec   :  { %v1160_v35 = vpop.f32.mrf.mxu1 }
  0xed   :  { %v1133_v36 = vpop.f32.mrf.mxu0  ;;  %v793_v2 = vadd.f32 %v1159_v58, %v1131_v57 }
  0xee   :  { %v1161_v37 = vpop.f32.mrf.mxu1  ;;  %v1134_v59 = vadd.f32 %v1133_v36, %v1132_v33 }
  0xef   :  { %v1135_v38 = vpop.f32.mrf.mxu0  ;;  %v1162_v60 = vadd.f32 %v1161_v37, %v1160_v35 }
  0xf0   :  { %v1163_v39 = vpop.f32.mrf.mxu1 }
  0xf1   :  { %v1136_v40 = vpop.f32.mrf.mxu0  ;;  %v798_v6 = vadd.f32 %v1162_v60, %v1134_v59  ;;  %v1108_v60 = vld [vmem:[%s1658_s2] ss:$0 sm:$0xff] }
  0xf2   :  { %v1164_v42 = vpop.f32.mrf.mxu1  ;;  %v1137_v3 = vadd.f32 %v1136_v40, %v1135_v38 }
  0xf3   :  { %v1165_v4 = vadd.f32 %v1164_v42, %v1163_v39 }
  0xf5   :  { %v801_v15 = vadd.f32 %v1165_v4, %v1137_v3 }
 0x103   :  { %v1182_v41 = vpop.f32.mrf.mxu0 }
 0x104   :  { %v1210_v44 = vpop.f32.mrf.mxu1 }
 0x105   :  { %v1183_v43 = vpop.f32.mrf.mxu0 }
 0x106   :  { %v1211_v46 = vpop.f32.mrf.mxu1  ;;  %v1184_v61 = vadd.f32 %v1183_v43, %v1182_v41 }
 0x107   :  { %v1185_v45 = vpop.f32.mrf.mxu0  ;;  %v1212_v9 = vadd.f32 %v1211_v46, %v1210_v44 }
 0x108   :  { %v1213_v48 = vpop.f32.mrf.mxu1  ;;  %v839_v7 = vadd.f32 %v1184_v61, %v790_v63 }
 0x109   :  { %v1186_v47 = vpop.f32.mrf.mxu0 }
 0x10a   :  { %v1214_v50 = vpop.f32.mrf.mxu1  ;;  %v1187_v62 = vadd.f32 %v1186_v47, %v1185_v45  ;;  %v888_v21 = vadd.f32 %v1212_v9, %v839_v7 }
 0x10b   :  { %v1188_v49 = vpop.f32.mrf.mxu0  ;;  %v1215_v11 = vadd.f32 %v1214_v50, %v1213_v48 }
 0x10c   :  { %v1216_v52 = vpop.f32.mrf.mxu1  ;;  %v842_v10 = vadd.f32 %v1187_v62, %v793_v2 }
 0x10d   :  { %v1189_v51 = vpop.f32.mrf.mxu0 }
 0x10e   :  { %v1217_v56 = vpop.f32.mrf.mxu1  ;;  %v1190_v5 = vadd.f32 %v1189_v51, %v1188_v49  ;;  %v891_v22 = vadd.f32 %v1215_v11, %v842_v10 }
 0x10f   :  { %v1191_v55 = vpop.f32.mrf.mxu0  ;;  %v1218_v17 = vadd.f32 %v1217_v56, %v1216_v52 }
 0x110   :  { %v1219_v1 = vpop.f32.mrf.mxu1  ;;  %v847_v16 = vadd.f32 %v1190_v5, %v798_v6 }
 0x111   :  { %v1192_v0 = vpop.f32.mrf.mxu0 }
 0x112   :  { %v1193_v12 = vadd.f32 %v1192_v0, %v1191_v55  ;;  %v1220_v13 = vpop.f32.mrf.mxu1  ;;  %v896_v24 = vadd.f32 %v1218_v17, %v847_v16 }
 0x113   :  { %v1221_v20 = vadd.f32 %v1220_v13, %v1219_v1  ;;  %v1109_v1 = vld [vmem:[%s1659_s3] ss:$0 sm:$0xff] }
 0x114   :  { %v850_v19 = vadd.f32 %v1193_v12, %v801_v15 }
 0x116   :  { %v899_v28 = vadd.f32 %v1221_v20, %v850_v19 }
 0x123   :  { %v1250_v8 = vpop.f32.mrf.mxu0 }
 0x124   :  { %v945_v27 = vadd.f32 %v1250_v8, %v896_v24 }
 0x125   :  { %v936_v14 = vpop.f32.mrf.mxu0 }
 0x126   :  { %v937_v25 = vadd.f32 %v936_v14, %v888_v21 }
 0x127   :  { %v1251_v18 = vpop.f32.mrf.mxu0 }
 0x128   :  { %v948_v30 = vadd.f32 %v1251_v18, %v899_v28 }
 0x129   :  { %v939_v23 = vpop.f32.mrf.mxu0 }
 0x12a   :  { %v940_v26 = vadd.f32 %v939_v23, %v891_v22 }
 0x12c   :  { %v951_v29 = vadd.f32 %v940_v26, %v937_v25 }
 0x12e   :  { %v952_v31 = vadd.f32 %v951_v29, %v945_v27 }
 0x130   :  { %v953_v32 = vadd.f32 %v952_v31, %v948_v30 }
 0x132   :  { %v954_v33 = vrot.slane %v953_v32, 4 }
 0x134   :  { %v955_v34 = vadd.f32 %v954_v33, %v953_v32 }
 0x136   :  { %v956_v35 = vrot.slane %v955_v34, 2 }
 0x138   :  { %v957_v36 = vadd.f32 %v956_v35, %v955_v34 }
 0x13a   :  { %v958_v37 = vrot.slane %v957_v36, 1 }
 0x13c   :  { %v959_v38 = vadd.f32 %v958_v37, %v957_v36 }
 0x13e   :  { %v961_v39 = vmul.f32 0.03125, %v959_v38 }
 0x140   :  { %v962_v40 = vsub.f32 %v937_v25, %v961_v39  ;;  %v963_v41 = vsub.f32 %v940_v26, %v961_v39  ;;  %v964_v42 = vsub.f32 %v945_v27, %v961_v39  ;;  %v965_v43 = vsub.f32 %v948_v30, %v961_v39 }
 0x142   :  { %v966_v44 = vmul.f32 %v962_v40, %v962_v40  ;;  %v967_v45 = vmul.f32 %v963_v41, %v963_v41  ;;  %v968_v46 = vmul.f32 %v964_v42, %v964_v42  ;;  %v969_v48 = vmul.f32 %v965_v43, %v965_v43 }
 0x144   :  { %v970_v47 = vadd.f32 %v967_v45, %v966_v44 }
 0x146   :  { %v971_v49 = vadd.f32 %v970_v47, %v968_v46 }
 0x148   :  { %v972_v50 = vadd.f32 %v971_v49, %v969_v48 }
 0x14a   :  { %v973_v51 = vrot.slane %v972_v50, 4 }
 0x14c   :  { %v974_v52 = vadd.f32 %v973_v51, %v972_v50 }
 0x14e   :  { %v975_v53 = vrot.slane %v974_v52, 2 }
 0x150   :  { %v976_v54 = vadd.f32 %v975_v53, %v974_v52 }
 0x152   :  { %v977_v55 = vrot.slane %v976_v54, 1 }
 0x154   :  { %v978_v56 = vadd.f32 %v977_v55, %v976_v54 }
 0x156   :  { %v979_v57 = vmul.f32 0.03125, %v978_v56 }
 0x158   :  { %v980_v58 = vadd.f32 1e-05, %v979_v57 }
 0x15a   :  { %1350 = vrsqrt.f32 %v980_v58 }
 0x167   :  { %v1351_v59 = vpop.eup %1350 }
 0x168   :  { %v982_v61 = vmul.f32 %v1351_v59, %v962_v40  ;;  %v983_v62 = vmul.f32 %v1351_v59, %v963_v41  ;;  %v984_v63 = vmul.f32 %v1351_v59, %v964_v42  ;;  %v985_v0 = vmul.f32 %v1351_v59, %v965_v43 }
 0x16a   :  { %v993_v2 = vmul.f32 %v1108_v60, %v982_v61  ;;  %v994_v3 = vmul.f32 %v1108_v60, %v983_v62  ;;  %v995_v4 = vmul.f32 %v1108_v60, %v984_v63  ;;  %v996_v5 = vmul.f32 %v1108_v60, %v985_v0 }
 0x16c   :  { %v1004_v6 = vadd.f32 %v1109_v1, %v993_v2  ;;  %v1005_v7 = vadd.f32 %v1109_v1, %v994_v3  ;;  %v1006_v8 = vadd.f32 %v1109_v1, %v995_v4  ;;  %v1007_v9 = vadd.f32 %v1109_v1, %v996_v5 }
 0x16e   :  { %v1008_v10 = vmax.f32 %v1004_v6, %v1005_v7  ;;  %v1009_v11 = vmax.f32 %v1006_v8, %v1007_v9 }
 0x170   :  { %v1010_v12 = vmax.f32 %v1008_v10, %v1009_v11 }
 0x172   :  { %v1011_v13 = vmax.f32 %v1010_v12, 0.0 }
 0x174   :  { %v1012_v14 = vpack.c.bf16 %v1011_v13, %v1011_v13 }
 0x176   :  { %1013 = vst [vmem:[%s1660_s4] sm:$0xf] %v1012_v14 }

// kernel: teacher_network_forward.5
= control target key start
LH: loop header
LB: loop body
LE: loop exit
PB: predicated region body
PF: predicated region fallthrough
CT: control target
= control target key end

     0   :  { %v4021_v0 = vmov 0   ;;  %vm2888_vm0 = vcmask 1041408   ;;  %s5601_s1 = inlined_call_operand.vmem [shape: bf16[1152,128], index: 1, kind: input, shape index: {}]   ;;  %s5602_s0 = inlined_call_operand.vmem [shape: bf16[338,1152], index: 0, kind: input, shape index: {}]   ;;  %s5603_s2 = inlined_call_operand.vmem [shape: f32[1,128], index: 2, kind: input, shape index: {}]   ;;  %s5604_s3 = inlined_call_operand.vmem [shape: f32[1,128], index: 3, kind: input, shape index: {}]   ;;  %s5605_s4 = inlined_call_operand.vmem [shape: bf16[72,128], index: 4, kind: output, shape index: {}]  }
   0x1   :  { %1807 = vmatprep.subr.bf16.mxu0 %v4021_v0  ;;  %2015 = vmatprep.subr.bf16.mxu1 %v4021_v0  ;;  %v3665_v1 = vld [vmem:[%s5601_s1 + $0x38] sm:$0xff]   ;;  %v3667_v3 = vld [vmem:[%s5601_s1 + $0x30] sm:$0xff]   ;;  %v3669_v5 = vld [vmem:[%s5601_s1 + $0x28] sm:$0xff]  }
   0x2   :  { %v3666_v2 = vld [vmem:[%s5601_s1 + $0xb8] sm:$0xff]   ;;  %1808 = vmatpush1.bf16.msra.mxu0 %v3665_v1  ;;  %v3668_v4 = vld [vmem:[%s5601_s1 + $0xb0] sm:$0xff]   ;;  %v3670_v6 = vld [vmem:[%s5601_s1 + $0xa8] sm:$0xff]  }
   0x3   :  { %2016 = vmatpush1.bf16.msra.mxu1 %v3666_v2  ;;  %1809 = vmatprep.subr.bf16.mxu0 %v4021_v0  ;;  %v3671_v7 = vld [vmem:[%s5601_s1 + $0x20] sm:$0xff]   ;;  %v3673_v9 = vld [vmem:[%s5601_s1 + $0x18] sm:$0xff]   ;;  %v3675_v11 = vld [vmem:[%s5601_s1 + $0x10] sm:$0xff]  }
   0x4   :  { %2017 = vmatprep.subr.bf16.mxu1 %v4021_v0  ;;  %v3672_v8 = vld [vmem:[%s5601_s1 + $0xa0] sm:$0xff]   ;;  %v3674_v10 = vld [vmem:[%s5601_s1 + $0x98] sm:$0xff]   ;;  %v3676_v12 = vld [vmem:[%s5601_s1 + $0x90] sm:$0xff]  }
   0x5   :  { %v3677_v13 = vld [vmem:[%s5601_s1 + $0x8] sm:$0xff]   ;;  %v3679_v15 = vld [vmem:[%s5601_s1] sm:$0xff]   ;;  %v3681_v17 = vld [vmem:[%s5601_s1 + $0x78] sm:$0xff]  }
   0x6   :  { %1810 = vmatpush1.bf16.msra.mxu0 %v3667_v3  ;;  %v3678_v14 = vld [vmem:[%s5601_s1 + $0x88] sm:$0xff]   ;;  %v3680_v16 = vld [vmem:[%s5601_s1 + $0x80] sm:$0xff]   ;;  %v3682_v18 = vld [vmem:[%s5601_s1 + $0xf8] sm:$0xff]  }
   0x7   :  { %2018 = vmatpush1.bf16.msra.mxu1 %v3668_v4  ;;  %1811 = vmatprep.subr.bf16.mxu0 %v4021_v0  ;;  %v3699_v19 = vld [vmem:[%s5602_s0 + $0x4] ss:$36 sps:$4 sm:$0xff]   ;;  %v3683_v20 = vld [vmem:[%s5601_s1 + $0x70] sm:$0xff]   ;;  %v3689_v27 = vld [vmem:[%s5601_s1 + $0x58] sm:$0xff]  }
   0x8   :  { %2019 = vmatprep.subr.bf16.mxu1 %v4021_v0  ;;  %v3702_v21 = vld [vmem:[%s5602_s0 + $0xc] ss:$36 sps:$4 sm:$0xff]   ;;  %1839 = vmatprep.mubr.bf16.mxu0 %v3699_v19  ;;  %v3687_v25 = vld [vmem:[%s5601_s1 + $0x60] sm:$0xff]   ;;  %v3690_v28 = vld [vmem:[%s5601_s1 + $0xd8] sm:$0xff]  }
   0x9   :  { %v3684_v22 = vld [vmem:[%s5601_s1 + $0xf0] sm:$0xff]   ;;  %2047 = vmatprep.mubr.bf16.mxu1 %v3702_v21  ;;  %v3685_v23 = vld [vmem:[%s5601_s1 + $0x68] sm:$0xff]   ;;  %v3688_v26 = vld [vmem:[%s5601_s1 + $0xe0] sm:$0xff]  }
   0xa   :  { %1812 = vmatpush1.bf16.msra.mxu0 %v3669_v5  ;;  %v3686_v24 = vld [vmem:[%s5601_s1 + $0xe8] sm:$0xff]   ;;  %v3691_v29 = vld [vmem:[%s5601_s1 + $0x50] sm:$0xff]   ;;  %v3695_v33 = vld [vmem:[%s5601_s1 + $0x40] sm:$0xff]  }
   0xb   :  { %2020 = vmatpush1.bf16.msra.mxu1 %v3670_v6  ;;  %1813 = vmatprep.subr.bf16.mxu0 %v4021_v0  ;;  %v3692_v30 = vld [vmem:[%s5601_s1 + $0xd0] sm:$0xff]   ;;  %v3693_v31 = vld [vmem:[%s5601_s1 + $0x48] sm:$0xff]   ;;  %v3696_v34 = vld [vmem:[%s5601_s1 + $0xc0] sm:$0xff]  }
   0xc   :  { %2021 = vmatprep.subr.bf16.mxu1 %v4021_v0  ;;  %v3694_v32 = vld [vmem:[%s5601_s1 + $0xc8] sm:$0xff]   ;;  %v3697_v35 = vld [vmem:[%s5602_s0] ss:$36 sps:$4 sm:$0xff]   ;;  %v3703_v37 = vld [vmem:[%s5601_s1 + $0x138] sm:$0xff]  }
   0xd   :  { %v3700_v36 = vld [vmem:[%s5602_s0 + $0x8] ss:$36 sps:$4 sm:$0xff]   ;;  %v3706_v39 = vld [vmem:[%s5602_s0 + $0x54] ss:$36 sps:$4 sm:$0xff]   ;;  %v3713_v46 = vld [vmem:[%s5602_s0 + $0x9c] ss:$36 sps:$4 sm:$0xff]  }
   0xe   :  { %1814 = vmatpush1.bf16.msra.mxu0 %v3671_v7  ;;  %v3704_v38 = vld [vmem:[%s5602_s0 + $0x4c] ss:$36 sps:$4 sm:$0xff]   ;;  %v3744_v40 = vld [vmem:[%s5601_s1 + $0x1b8] sm:$0xff]   ;;  %v3730_v50 = vld [vmem:[%s5601_s1 + $0x120] sm:$0xff]  }
   0xf   :  { %2022 = vmatpush1.bf16.msra.mxu1 %v3672_v8  ;;  %1815 = vmatprep.subr.bf16.mxu0 %v4021_v0  ;;  %v3710_v41 = vld [vmem:[%s5601_s1 + $0x130] sm:$0xff]   ;;  %v3708_v42 = vld [vmem:[%s5602_s0 + $0x48] ss:$36 sps:$4 sm:$0xff]   ;;  %v3716_v51 = vld [vmem:[%s5602_s0 + $0x98] ss:$36 sps:$4 sm:$0xff]  }
  0x10   :  { %2023 = vmatprep.subr.bf16.mxu1 %v4021_v0  ;;  %v3752_v43 = vld [vmem:[%s5601_s1 + $0x1b0] sm:$0xff]   ;;  %v3721_v47 = vld [vmem:[%s5601_s1 + $0x128] sm:$0xff]   ;;  %v3774_v52 = vld [vmem:[%s5601_s1 + $0x1a0] sm:$0xff]  }
  0x11   :  { %v3709_v44 = vld [vmem:[%s5602_s0 + $0x50] ss:$36 sps:$4 sm:$0xff]   ;;  %v3764_v48 = vld [vmem:[%s5601_s1 + $0x1a8] sm:$0xff]   ;;  %v3717_v53 = vld [vmem:[%s5602_s0 + $0xdc] ss:$36 sps:$4 sm:$0xff]  }
  0x12   :  { %1816 = vmatpush1.bf16.msra.mxu0 %v3673_v9  ;;  %v3711_v45 = vld [vmem:[%s5602_s0 + $0x94] ss:$36 sps:$4 sm:$0xff]   ;;  %v3719_v54 = vld [vmem:[%s5602_s0 + $0xe4] ss:$36 sps:$4 sm:$0xff]   ;;  %v3726_v62 = vld [vmem:[%s5602_s0 + $0x12c] ss:$36 sps:$4 sm:$0xff]  }
  0x13   :  { %2024 = vmatpush1.bf16.msra.mxu1 %v3674_v10  ;;  %1817 = vmatprep.subr.bf16.mxu0 %v4021_v0  ;;  %v3715_v49 = vld [vmem:[%s5602_s0 + $0x90] ss:$36 sps:$4 sm:$0xff]   ;;  %v3737_v55 = vld [vmem:[%s5601_s1 + $0x118] sm:$0xff]   ;;  %v3723_v59 = vld [vmem:[%s5602_s0 + $0xe0] ss:$36 sps:$4 sm:$0xff]  }
  0x14   :  { %2025 = vmatprep.subr.bf16.mxu1 %v4021_v0  ;;  %v3782_v56 = vld [vmem:[%s5601_s1 + $0x198] sm:$0xff]   ;;  %v3751_v58 = vld [vmem:[%s5601_s1 + $0x110] sm:$0xff]   ;;  %v3724_v60 = vld [vmem:[%s5602_s0 + $0x124] ss:$36 sps:$4 sm:$0xff]  }
  0x15   :  { %v3722_v57 = vld [vmem:[%s5602_s0 + $0xd8] ss:$36 sps:$4 sm:$0xff]   ;;  %v3796_v61 = vld [vmem:[%s5601_s1 + $0x190] sm:$0xff]   ;;  %v3759_v63 = vld [vmem:[%s5601_s1 + $0x108] sm:$0xff]  }
  0x16   :  { %1818 = vmatpush1.bf16.msra.mxu0 %v3675_v11  ;;  %v3804_v1 = vld [vmem:[%s5601_s1 + $0x188] sm:$0xff]   ;;  %v3728_v2 = vld [vmem:[%s5602_s0 + $0x120] ss:$36 sps:$4 sm:$0xff]   ;;  %v3733_v6 = vld [vmem:[%s5602_s0 + $0x174] ss:$36 sps:$4 sm:$0xff]  }
  0x17   :  { %2026 = vmatpush1.bf16.msra.mxu1 %v3676_v12  ;;  %1819 = vmatprep.subr.bf16.mxu0 %v4021_v0  ;;  %v3767_v3 = vld [vmem:[%s5601_s1 + $0x100] sm:$0xff]   ;;  %v3729_v4 = vld [vmem:[%s5602_s0 + $0x128] ss:$36 sps:$4 sm:$0xff]   ;;  %v3781_v8 = vld [vmem:[%s5601_s1 + $0x178] sm:$0xff]  }
  0x18   :  { %2027 = vmatprep.subr.bf16.mxu1 %v4021_v0  ;;  %v3731_v5 = vld [vmem:[%s5602_s0 + $0x16c] ss:$36 sps:$4 sm:$0xff]   ;;  %v3812_v7 = vld [vmem:[%s5601_s1 + $0x180] sm:$0xff]   ;;  %v3738_v12 = vld [vmem:[%s5602_s0 + $0x1b4] ss:$36 sps:$4 sm:$0xff]  }
  0x19   :  { %v3789_v9 = vld [vmem:[%s5601_s1 + $0x170] sm:$0xff]   ;;  %v3735_v10 = vld [vmem:[%s5602_s0 + $0x168] ss:$36 sps:$4 sm:$0xff]   ;;  %v3743_v19 = vld [vmem:[%s5602_s0 + $0x1b8] ss:$36 sps:$4 sm:$0xff]  }
  0x1a   :  { %1820 = vmatpush1.bf16.msra.mxu0 %v3677_v13  ;;  %v3736_v11 = vld [vmem:[%s5602_s0 + $0x170] ss:$36 sps:$4 sm:$0xff]   ;;  %v3826_v13 = vld [vmem:[%s5601_s1 + $0x1f8] sm:$0xff]   ;;  %v3747_v21 = vld [vmem:[%s5602_s0 + $0x204] ss:$36 sps:$4 sm:$0xff]  }
  0x1b   :  { %2028 = vmatpush1.bf16.msra.mxu1 %v3678_v14  ;;  %1821 = vmatprep.subr.bf16.mxu0 %v4021_v0  ;;  %v3740_v14 = vld [vmem:[%s5602_s0 + $0x1bc] ss:$36 sps:$4 sm:$0xff]  }
  0x1c   :  { %2029 = vmatprep.subr.bf16.mxu1 %v4021_v0 }
  0x1e   :  { %1822 = vmatpush1.bf16.msra.mxu0 %v3679_v15  ;;  %v3801_v15 = vld [vmem:[%s5601_s1 + $0x168] sm:$0xff]  }
  0x1f   :  { %2030 = vmatpush1.bf16.msra.mxu1 %v3680_v16  ;;  %1823 = vmatprep.subr.bf16.mxu0 %v4021_v0  ;;  %v3834_v16 = vld [vmem:[%s5601_s1 + $0x1f0] sm:$0xff]  }
  0x20   :  { %2031 = vmatprep.subr.bf16.mxu1 %v4021_v0 }
  0x22   :  { %1824 = vmatpush2.bf16.msra.mxu0 %v3681_v17  ;;  %v3742_v17 = vld [vmem:[%s5602_s0 + $0x1b0] ss:$36 sps:$4 sm:$0xff]  }
  0x23   :  { %2032 = vmatpush2.bf16.msra.mxu1 %v3682_v18  ;;  %1825 = vmatprep.subr.bf16.mxu0 %v4021_v0  ;;  %v3811_v18 = vld [vmem:[%s5601_s1 + $0x160] sm:$0xff]  }
  0x24   :  { %2033 = vmatprep.subr.bf16.mxu1 %v4021_v0 }
  0x26   :  { %1826 = vmatpush2.bf16.msra.mxu0 %v3683_v20  ;;  %v3745_v20 = vld [vmem:[%s5602_s0 + $0x1fc] ss:$36 sps:$4 sm:$0xff]  }
  0x27   :  { %2034 = vmatpush2.bf16.msra.mxu1 %v3684_v22  ;;  %1827 = vmatprep.subr.bf16.mxu0 %v4021_v0  ;;  %v3841_v22 = vld [vmem:[%s5601_s1 + $0x1e8] sm:$0xff]  }
  0x28   :  { %2035 = vmatprep.subr.bf16.mxu1 %v4021_v0 }
  0x2a   :  { %1828 = vmatpush2.bf16.msra.mxu0 %v3685_v23  ;;  %v3819_v23 = vld [vmem:[%s5601_s1 + $0x158] sm:$0xff]  }
  0x2b   :  { %2036 = vmatpush2.bf16.msra.mxu1 %v3686_v24  ;;  %1829 = vmatprep.subr.bf16.mxu0 %v4021_v0  ;;  %v3843_v24 = vld [vmem:[%s5601_s1 + $0x1e0] sm:$0xff]  }
  0x2c   :  { %2037 = vmatprep.subr.bf16.mxu1 %v4021_v0 }
  0x2e   :  { %1830 = vmatpush2.bf16.msra.mxu0 %v3687_v25  ;;  %v3749_v25 = vld [vmem:[%s5602_s0 + $0x1f8] ss:$36 sps:$4 sm:$0xff]  }
  0x2f   :  { %2038 = vmatpush2.bf16.msra.mxu1 %v3688_v26  ;;  %1831 = vmatprep.subr.bf16.mxu0 %v4021_v0  ;;  %v3833_v26 = vld [vmem:[%s5601_s1 + $0x150] sm:$0xff]  }
  0x30   :  { %2039 = vmatprep.subr.bf16.mxu1 %v4021_v0 }
  0x32   :  { %1832 = vmatpush2.bf16.msra.mxu0 %v3689_v27  ;;  %v3850_v27 = vld [vmem:[%s5601_s1 + $0x1d8] sm:$0xff]  }
  0x33   :  { %2040 = vmatpush2.bf16.msra.mxu1 %v3690_v28  ;;  %1833 = vmatprep.subr.bf16.mxu0 %v4021_v0  ;;  %v3750_v28 = vld [vmem:[%s5602_s0 + $0x200] ss:$36 sps:$4 sm:$0xff]  }
  0x34   :  { %2041 = vmatprep.subr.bf16.mxu1 %v4021_v0 }
  0x36   :  { %1834 = vmatpush2.bf16.msra.mxu0 %v3691_v29  ;;  %v3753_v29 = vld [vmem:[%s5602_s0 + $0x244] ss:$36 sps:$4 sm:$0xff]  }
  0x37   :  { %2042 = vmatpush2.bf16.msra.mxu1 %v3692_v30  ;;  %1835 = vmatprep.subr.bf16.mxu0 %v4021_v0  ;;  %v3755_v30 = vld [vmem:[%s5602_s0 + $0x24c] ss:$36 sps:$4 sm:$0xff]  }
  0x38   :  { %2043 = vmatprep.subr.bf16.mxu1 %v4021_v0 }
  0x3a   :  { %1836 = vmatpush2.bf16.msra.mxu0 %v3693_v31  ;;  %v3842_v31 = vld [vmem:[%s5601_s1 + $0x148] sm:$0xff]  }
  0x3b   :  { %2044 = vmatpush2.bf16.msra.mxu1 %v3694_v32  ;;  %1837 = vmatprep.subr.bf16.mxu0 %v4021_v0  ;;  %v3851_v32 = vld [vmem:[%s5601_s1 + $0x1d0] sm:$0xff]  }
  0x3c   :  { %2045 = vmatprep.subr.bf16.mxu1 %v4021_v0 }
  0x3e   :  { %1838 = vmatpush2.bf16.msra.mxu0 %v3695_v33  ;;  %v3852_v33 = vld [vmem:[%s5601_s1 + $0x140] sm:$0xff]  }
  0x3f   :  { %2046 = vmatpush2.bf16.msra.mxu1 %v3696_v34  ;;  %2223 = vmatprep.subr.bf16.mxu0 %v4021_v0  ;;  %v3857_v34 = vld [vmem:[%s5601_s1 + $0x1c8] sm:$0xff]  }
  0x40   :  { %2431 = vmatprep.subr.bf16.mxu1 %v4021_v0 }
  0x41   :  { %1840 = vmatmul.mubr.bf16.vlgmr.msra.gmra.mxu0 %v3697_v35  ;;  %v4403_v35 = vld [vmem:[%s5601_s1 + $0x238] sm:$0xff]  }
  0x42   :  { %2048 = vmatmul.mubr.bf16.vlgmr.msra.gmra.mxu1 %v3700_v36  ;;  %2224 = vmatpush1.bf16.msra.mxu0 %v3703_v37  ;;  %v3757_v36 = vld [vmem:[%s5602_s0 + $0x240] ss:$36 sps:$4 sm:$0xff]   ;;  %v3758_v37 = vld [vmem:[%s5602_s0 + $0x248] ss:$36 sps:$4 sm:$0xff]  }
  0x43   :  { %1847 = vmatprep.mubr.bf16.mxu0 %v3704_v38  ;;  %2055 = vmatprep.mubr.bf16.mxu1 %v3706_v39  ;;  %v3760_v38 = vld [vmem:[%s5602_s0 + $0x28c] ss:$36 sps:$4 sm:$0xff]   ;;  %v3762_v39 = vld [vmem:[%s5602_s0 + $0x294] ss:$36 sps:$4 sm:$0xff]  }
  0x44   :  { %2225 = vmatprep.subr.bf16.mxu0 %v4021_v0  ;;  %2432 = vmatpush1.bf16.msra.mxu1 %v3744_v40  ;;  %v3858_v40 = vld [vmem:[%s5601_s1 + $0x1c0] sm:$0xff]  }
  0x45   :  { %2433 = vmatprep.subr.bf16.mxu1 %v4021_v0 }
  0x46   :  { %2226 = vmatpush1.bf16.msra.mxu0 %v3710_v41  ;;  %v3765_v41 = vld [vmem:[%s5602_s0 + $0x288] ss:$36 sps:$4 sm:$0xff]  }
  0x47   :  { %2227 = vmatprep.subr.bf16.mxu0 %v4021_v0 }
  0x48   :  { %2434 = vmatpush1.bf16.msra.mxu1 %v3752_v43  ;;  %v3768_v43 = vld [vmem:[%s5602_s0 + $0x2d4] ss:$36 sps:$4 sm:$0xff]  }
  0x49   :  { %1848 = vmatmul.mubr.bf16.gmra.mxu0 %v3708_v42  ;;  %2435 = vmatprep.subr.bf16.mxu1 %v4021_v0  ;;  %v3766_v42 = vld [vmem:[%s5602_s0 + $0x290] ss:$36 sps:$4 sm:$0xff]  }
  0x4a   :  { %2056 = vmatmul.mubr.bf16.gmra.mxu1 %v3709_v44  ;;  %1855 = vmatprep.mubr.bf16.mxu0 %v3711_v45  ;;  %v3772_v44 = vld [vmem:[%s5602_s0 + $0x2d0] ss:$36 sps:$4 sm:$0xff]   ;;  %v3773_v45 = vld [vmem:[%s5602_s0 + $0x2d8] ss:$36 sps:$4 sm:$0xff]  }
  0x4b   :  { %2063 = vmatprep.mubr.bf16.mxu1 %v3713_v46  ;;  %2228 = vmatpush1.bf16.msra.mxu0 %v3721_v47  ;;  %v3775_v46 = vld [vmem:[%s5602_s0 + $0x31c] ss:$36 sps:$4 sm:$0xff]   ;;  %v3777_v47 = vld [vmem:[%s5602_s0 + $0x324] ss:$36 sps:$4 sm:$0xff]  }
  0x4c   :  { %2229 = vmatprep.subr.bf16.mxu0 %v4021_v0  ;;  %2436 = vmatpush1.bf16.msra.mxu1 %v3764_v48  ;;  %v3779_v48 = vld [vmem:[%s5602_s0 + $0x318] ss:$36 sps:$4 sm:$0xff]  }
  0x4d   :  { %2437 = vmatprep.subr.bf16.mxu1 %v4021_v0 }
  0x4f   :  { %2230 = vmatpush1.bf16.msra.mxu0 %v3730_v50  ;;  %v3783_v50 = vld [vmem:[%s5602_s0 + $0x364] ss:$36 sps:$4 sm:$0xff]  }
  0x50   :  { %2231 = vmatprep.subr.bf16.mxu0 %v4021_v0  ;;  %2438 = vmatpush1.bf16.msra.mxu1 %v3774_v52  ;;  %v3787_v52 = vld [vmem:[%s5602_s0 + $0x360] ss:$36 sps:$4 sm:$0xff]  }
  0x51   :  { %1856 = vmatmul.mubr.bf16.gmra.mxu0 %v3715_v49  ;;  %2439 = vmatprep.subr.bf16.mxu1 %v4021_v0  ;;  %v3780_v49 = vld [vmem:[%s5602_s0 + $0x320] ss:$36 sps:$4 sm:$0xff]  }
  0x52   :  { %2064 = vmatmul.mubr.bf16.gmra.mxu1 %v3716_v51  ;;  %1863 = vmatprep.mubr.bf16.mxu0 %v3717_v53  ;;  %v3785_v51 = vld [vmem:[%s5602_s0 + $0x36c] ss:$36 sps:$4 sm:$0xff]  }
  0x53   :  { %2071 = vmatprep.mubr.bf16.mxu1 %v3719_v54  ;;  %2232 = vmatpush1.bf16.msra.mxu0 %v3737_v55  ;;  %v3788_v53 = vld [vmem:[%s5602_s0 + $0x368] ss:$36 sps:$4 sm:$0xff]   ;;  %v3792_v55 = vld [vmem:[%s5602_s0 + $0x3b4] ss:$36 sps:$4 sm:$0xff]  }
  0x54   :  { %2233 = vmatprep.subr.bf16.mxu0 %v4021_v0  ;;  %2440 = vmatpush1.bf16.msra.mxu1 %v3782_v56  ;;  %v3790_v54 = vld [vmem:[%s5602_s0 + $0x3ac] ss:$36 sps:$4 sm:$0xff]  }
  0x55   :  { %2441 = vmatprep.subr.bf16.mxu1 %v4021_v0  ;;  %v3794_v56 = vld [vmem:[%s5602_s0 + $0x3a8] ss:$36 sps:$4 sm:$0xff]  }
  0x57   :  { %2234 = vmatpush1.bf16.msra.mxu0 %v3751_v58  ;;  %v3797_v58 = vld [vmem:[%s5602_s0 + $0x3f4] ss:$36 sps:$4 sm:$0xff]  }
  0x58   :  { %2235 = vmatprep.subr.bf16.mxu0 %v4021_v0  ;;  %2442 = vmatpush1.bf16.msra.mxu1 %v3796_v61  ;;  %v3803_v61 = vld [vmem:[%s5602_s0 + $0x3f8] ss:$36 sps:$4 sm:$0xff]  }
  0x59   :  { %1864 = vmatmul.mubr.bf16.gmra.mxu0 %v3722_v57  ;;  %2443 = vmatprep.subr.bf16.mxu1 %v4021_v0  ;;  %v3795_v57 = vld [vmem:[%s5602_s0 + $0x3b0] ss:$36 sps:$4 sm:$0xff]  }
  0x5a   :  { %2072 = vmatmul.mubr.bf16.gmra.mxu1 %v3723_v59  ;;  %1871 = vmatprep.mubr.bf16.mxu0 %v3724_v60  ;;  %v3799_v59 = vld [vmem:[%s5602_s0 + $0x3fc] ss:$36 sps:$4 sm:$0xff]   ;;  %v3802_v60 = vld [vmem:[%s5602_s0 + $0x3f0] ss:$36 sps:$4 sm:$0xff]  }
  0x5b   :  { %2079 = vmatprep.mubr.bf16.mxu1 %v3726_v62  ;;  %2236 = vmatpush1.bf16.msra.mxu0 %v3759_v63  ;;  %v3805_v62 = vld [vmem:[%s5602_s0 + $0x43c] ss:$36 sps:$4 sm:$0xff]   ;;  %v3807_v63 = vld [vmem:[%s5602_s0 + $0x444] ss:$36 sps:$4 sm:$0xff]  }
  0x5c   :  { %2237 = vmatprep.subr.bf16.mxu0 %v4021_v0  ;;  %2444 = vmatpush1.bf16.msra.mxu1 %v3804_v1  ;;  %v3809_v1 = vld [vmem:[%s5602_s0 + $0x438] ss:$36 sps:$4 sm:$0xff]  }
  0x5d   :  { %2445 = vmatprep.subr.bf16.mxu1 %v4021_v0 }
  0x5f   :  { %2238 = vmatpush1.bf16.msra.mxu0 %v3767_v3  ;;  %v3813_v3 = vld [vmem:[%s5602_s0 + $0x484] ss:$36 sps:$4 sm:$0xff]  }
  0x60   :  { %2239 = vmatprep.subr.bf16.mxu0 %v4021_v0  ;;  %2446 = vmatpush1.bf16.msra.mxu1 %v3812_v7  ;;  %v3820_v7 = vld [vmem:[%s5602_s0 + $0x4cc] ss:$36 sps:$4 sm:$0xff]  }
  0x61   :  { %1872 = vmatmul.mubr.bf16.gmra.mxu0 %v3728_v2  ;;  %2447 = vmatprep.subr.bf16.mxu1 %v4021_v0  ;;  %v3810_v2 = vld [vmem:[%s5602_s0 + $0x440] ss:$36 sps:$4 sm:$0xff]  }
  0x62   :  { %2080 = vmatmul.mubr.bf16.gmra.mxu1 %v3729_v4  ;;  %1879 = vmatprep.mubr.bf16.mxu0 %v3731_v5  ;;  %v3815_v4 = vld [vmem:[%s5602_s0 + $0x48c] ss:$36 sps:$4 sm:$0xff]   ;;  %v3817_v5 = vld [vmem:[%s5602_s0 + $0x480] ss:$36 sps:$4 sm:$0xff]  }
  0x63   :  { %2087 = vmatprep.mubr.bf16.mxu1 %v3733_v6  ;;  %2240 = vmatpush2.bf16.msra.mxu0 %v3781_v8  ;;  %v3818_v6 = vld [vmem:[%s5602_s0 + $0x488] ss:$36 sps:$4 sm:$0xff]   ;;  %v3822_v8 = vld [vmem:[%s5602_s0 + $0x4d4] ss:$36 sps:$4 sm:$0xff]  }
  0x64   :  { %2241 = vmatprep.subr.bf16.mxu0 %v4021_v0  ;;  %2448 = vmatpush2.bf16.msra.mxu1 %v3826_v13  ;;  %v3831_v13 = vld [vmem:[%s5602_s0 + $0x510] ss:$36 sps:$4 sm:$0xff]  }
  0x65   :  { %2449 = vmatprep.subr.bf16.mxu1 %v4021_v0 }
  0x67   :  { %2242 = vmatpush2.bf16.msra.mxu0 %v3789_v9  ;;  %v3824_v9 = vld [vmem:[%s5602_s0 + $0x4c8] ss:$36 sps:$4 sm:$0xff]  }
  0x68   :  { %2243 = vmatprep.subr.bf16.mxu0 %v4021_v0  ;;  %2450 = vmatpush2.bf16.msra.mxu1 %v3834_v16  ;;  %v3837_v16 = vld [vmem:[%s5602_s0 + $0x564] ss:$36 sps:$4 sm:$0xff]  }
  0x69   :  { %1880 = vmatmul.mubr.bf16.gmra.mxu0 %v3735_v10  ;;  %2451 = vmatprep.subr.bf16.mxu1 %v4021_v0  ;;  %v3825_v10 = vld [vmem:[%s5602_s0 + $0x4d0] ss:$36 sps:$4 sm:$0xff]  }
  0x6a   :  { %2088 = vmatmul.mubr.bf16.gmra.mxu1 %v3736_v11  ;;  %1887 = vmatprep.mubr.bf16.mxu0 %v3738_v12  ;;  %v3827_v11 = vld [vmem:[%s5602_s0 + $0x514] ss:$36 sps:$4 sm:$0xff]   ;;  %v3829_v12 = vld [vmem:[%s5602_s0 + $0x51c] ss:$36 sps:$4 sm:$0xff]  }
  0x6b   :  { %2095 = vmatprep.mubr.bf16.mxu1 %v3740_v14  ;;  %2244 = vmatpush2.bf16.msra.mxu0 %v3801_v15  ;;  %v3832_v14 = vld [vmem:[%s5602_s0 + $0x518] ss:$36 sps:$4 sm:$0xff]  }
  0x6c   :  { %2245 = vmatprep.subr.bf16.mxu0 %v4021_v0  ;;  %2452 = vmatpush2.bf16.msra.mxu1 %v3841_v22  ;;  %v3835_v15 = vld [vmem:[%s5602_s0 + $0x55c] ss:$36 sps:$4 sm:$0xff]   ;;  %v229_v22 = vld [vmem:[%s5602_s0 + $0x5f0] sm:$0x11] }
  0x6d   :  { %2453 = vmatprep.subr.bf16.mxu1 %v4021_v0 }
  0x6f   :  { %2246 = vmatpush2.bf16.msra.mxu0 %v3811_v18  ;;  %v3840_v18 = vld [vmem:[%s5602_s0 + $0x560] ss:$36 sps:$4 sm:$0xff]  }
  0x70   :  { %2247 = vmatprep.subr.bf16.mxu0 %v4021_v0  ;;  %2454 = vmatpush2.bf16.msra.mxu1 %v3843_v24  ;;  %v3849_v24 = vld [vmem:[%s5602_s0 + $0x5a8] ss:$36 sps:$4 sm:$0xff]  }
  0x71   :  { %1888 = vmatmul.mubr.bf16.gmra.mxu0 %v3742_v17  ;;  %2455 = vmatprep.subr.bf16.mxu1 %v4021_v0  ;;  %v3839_v17 = vld [vmem:[%s5602_s0 + $0x558] ss:$36 sps:$4 sm:$0xff]  }
  0x72   :  { %2096 = vmatmul.mubr.bf16.gmra.mxu1 %v3743_v19  ;;  %1895 = vmatprep.mubr.bf16.mxu0 %v3745_v20  ;;  %v3844_v19 = vld [vmem:[%s5602_s0 + $0x5a4] ss:$36 sps:$4 sm:$0xff]   ;;  %v3846_v20 = vld [vmem:[%s5602_s0 + $0x5ac] ss:$36 sps:$4 sm:$0xff]  }
  0x73   :  { %2103 = vmatprep.mubr.bf16.mxu1 %v3747_v21  ;;  %2248 = vmatpush2.bf16.msra.mxu0 %v3819_v23  ;;  %v228_v21 = vld [vmem:[%s5602_s0 + $0x5e8] sm:$0x11]  ;;  %v3848_v23 = vld [vmem:[%s5602_s0 + $0x5a0] ss:$36 sps:$4 sm:$0xff]  }
  0x74   :  { %2249 = vmatprep.subr.bf16.mxu0 %v4021_v0  ;;  %2456 = vmatpush2.bf16.msra.mxu1 %v3850_v27  ;;  %v3434_v27 = vcombine.low %v228_v21, %v228_v21 }
  0x75   :  { %2457 = vmatprep.subr.bf16.mxu1 %v4021_v0 }
  0x77   :  { %2250 = vmatpush2.bf16.msra.mxu0 %v3833_v26  ;;  %v3437_v26 = vcombine.high %v229_v22, %v229_v22 }
  0x78   :  { %2251 = vmatprep.subr.bf16.mxu0 %v4021_v0  ;;  %2458 = vmatpush2.bf16.msra.mxu1 %v3851_v32  ;;  %v3862_v32 = vld [vmem:[%s5602_s0 + $0x18] ss:$36 sps:$4 sm:$0xff]  }
  0x79   :  { %1896 = vmatmul.mubr.bf16.gmra.mxu0 %v3749_v25  ;;  %2459 = vmatprep.subr.bf16.mxu1 %v4021_v0  ;;  %v3435_v25 = vcombine.high %v228_v21, %v228_v21 }
  0x7a   :  { %2104 = vmatmul.mubr.bf16.gmra.mxu1 %v3750_v28  ;;  %1903 = vmatprep.mubr.bf16.mxu0 %v3753_v29  ;;  %v3436_v28 = vcombine.low %v229_v22, %v229_v22  ;;  %v3861_v29 = vld [vmem:[%s5602_s0 + $0x14] ss:$36 sps:$4 sm:$0xff]   ;;  %v3896_v22 = vld [vmem:[%s5602_s0 + $0x180] ss:$36 sps:$4 sm:$0xff]  }
  0x7b   :  { %2111 = vmatprep.mubr.bf16.mxu1 %v3755_v30  ;;  %2252 = vmatpush2.bf16.msra.mxu0 %v3842_v31  ;;  %v3864_v30 = vld [vmem:[%s5602_s0 + $0x1c] ss:$36 sps:$4 sm:$0xff]   ;;  %v3859_v31 = vld [vmem:[%s5602_s0 + $0x10] ss:$36 sps:$4 sm:$0xff]  }
  0x7c   :  { %2253 = vmatprep.subr.bf16.mxu0 %v4021_v0  ;;  %2460 = vmatpush2.bf16.msra.mxu1 %v3857_v34  ;;  %v3868_v34 = vld [vmem:[%s5602_s0 + $0x64] ss:$36 sps:$4 sm:$0xff]  }
  0x7d   :  { %2461 = vmatprep.subr.bf16.mxu1 %v4021_v0  ;;  %v3770_v0 = vld [vmem:[%s5602_s0 + $0x2dc] ss:$36 sps:$4 sm:$0xff]  }
  0x7f   :  { %2254 = vmatpush2.bf16.msra.mxu0 %v3852_v33  ;;  %v3866_v33 = vld [vmem:[%s5602_s0 + $0x5c] ss:$36 sps:$4 sm:$0xff]  }
  0x80   :  { %3588 = vmatprep.subr.bf16.mxu0 %v4403_v35  ;;  %2462 = vmatpush2.bf16.msra.mxu1 %v3858_v40  ;;  %v3872_v40 = vld [vmem:[%s5602_s0 + $0xa4] ss:$36 sps:$4 sm:$0xff]  }
  0x81   :  { %1904 = vmatmul.mubr.bf16.gmra.mxu0 %v3757_v36  ;;  %3648 = vmatprep.subr.bf16.mxu1 %v4403_v35  ;;  %v3878_v36 = vld [vmem:[%s5601_s1 + $0x230] sm:$0xff]  }
  0x82   :  { %2112 = vmatmul.mubr.bf16.gmra.mxu1 %v3758_v37  ;;  %1911 = vmatprep.mubr.bf16.mxu0 %v3760_v38  ;;  %v3897_v37 = vld [vmem:[%s5601_s1 + $0x228] sm:$0xff]   ;;  %v3870_v38 = vld [vmem:[%s5602_s0 + $0x58] ss:$36 sps:$4 sm:$0xff]  }
  0x83   :  { %2119 = vmatprep.mubr.bf16.mxu1 %v3762_v39  ;;  %v3871_v39 = vld [vmem:[%s5602_s0 + $0x60] ss:$36 sps:$4 sm:$0xff]  }
  0x89   :  { %1912 = vmatmul.mubr.bf16.gmra.mxu0 %v3765_v41  ;;  %v3874_v41 = vld [vmem:[%s5602_s0 + $0xac] ss:$36 sps:$4 sm:$0xff]  }
  0x8a   :  { %2120 = vmatmul.mubr.bf16.gmra.mxu1 %v3766_v42  ;;  %1919 = vmatprep.mubr.bf16.mxu0 %v3768_v43  ;;  %v3935_v42 = vld [vmem:[%s5601_s1 + $0x218] sm:$0xff]   ;;  %v3876_v43 = vld [vmem:[%s5602_s0 + $0xa0] ss:$36 sps:$4 sm:$0xff]  }
  0x8b   :  { %2127 = vmatprep.mubr.bf16.mxu1 %v3770_v0  ;;  %v3877_v0 = vld [vmem:[%s5602_s0 + $0xa8] ss:$36 sps:$4 sm:$0xff]  }
  0x91   :  { %1920 = vmatmul.mubr.bf16.gmra.mxu0 %v3772_v44  ;;  %v3879_v44 = vld [vmem:[%s5602_s0 + $0xec] ss:$36 sps:$4 sm:$0xff]  }
  0x92   :  { %2128 = vmatmul.mubr.bf16.gmra.mxu1 %v3773_v45  ;;  %1927 = vmatprep.mubr.bf16.mxu0 %v3775_v46  ;;  %v3881_v45 = vld [vmem:[%s5602_s0 + $0xf4] ss:$36 sps:$4 sm:$0xff]  }
  0x93   :  { %2135 = vmatprep.mubr.bf16.mxu1 %v3777_v47  ;;  %v3948_v46 = vld [vmem:[%s5601_s1 + $0x210] sm:$0xff]  }
  0x99   :  { %1928 = vmatmul.mubr.bf16.gmra.mxu0 %v3779_v48 }
  0x9a   :  { %2136 = vmatmul.mubr.bf16.gmra.mxu1 %v3780_v49  ;;  %1935 = vmatprep.mubr.bf16.mxu0 %v3783_v50 }
  0x9b   :  { %2143 = vmatprep.mubr.bf16.mxu1 %v3785_v51 }
  0xa1   :  { %1936 = vmatmul.mubr.bf16.gmra.mxu0 %v3787_v52  ;;  %v3967_v52 = vld [vmem:[%s5601_s1 + $0x208] sm:$0xff]  }
  0xa2   :  { %2144 = vmatmul.mubr.bf16.gmra.mxu1 %v3788_v53  ;;  %1943 = vmatprep.mubr.bf16.mxu0 %v3790_v54  ;;  %v3883_v54 = vld [vmem:[%s5602_s0 + $0xe8] ss:$36 sps:$4 sm:$0xff]  }
  0xa3   :  { %2151 = vmatprep.mubr.bf16.mxu1 %v3792_v55 }
  0xa9   :  { %1944 = vmatmul.mubr.bf16.gmra.mxu0 %v3794_v56  ;;  %v3884_v56 = vld [vmem:[%s5602_s0 + $0xf0] ss:$36 sps:$4 sm:$0xff]  }
  0xaa   :  { %2152 = vmatmul.mubr.bf16.gmra.mxu1 %v3795_v57  ;;  %1951 = vmatprep.mubr.bf16.mxu0 %v3797_v58  ;;  %v3885_v57 = vld [vmem:[%s5602_s0 + $0x134] ss:$36 sps:$4 sm:$0xff]  }
  0xab   :  { %2159 = vmatprep.mubr.bf16.mxu1 %v3799_v59 }
  0xb1   :  { %1952 = vmatmul.mubr.bf16.gmra.mxu0 %v3802_v60  ;;  %v3887_v60 = vld [vmem:[%s5602_s0 + $0x13c] ss:$36 sps:$4 sm:$0xff]  }
  0xb2   :  { %2160 = vmatmul.mubr.bf16.gmra.mxu1 %v3803_v61  ;;  %1959 = vmatprep.mubr.bf16.mxu0 %v3805_v62 }
  0xb3   :  { %2167 = vmatprep.mubr.bf16.mxu1 %v3807_v63 }
  0xb9   :  { %1960 = vmatmul.mubr.bf16.gmra.mxu0 %v3809_v1 }
  0xba   :  { %2168 = vmatmul.mubr.bf16.gmra.mxu1 %v3810_v2  ;;  %1967 = vmatprep.mubr.bf16.mxu0 %v3813_v3 }
  0xbb   :  { %2175 = vmatprep.mubr.bf16.mxu1 %v3815_v4  ;;  %v3986_v4 = vld [vmem:[%s5601_s1 + $0x200] sm:$0xff]  }
  0xc1   :  { %1968 = vmatmul.mubr.bf16.gmra.mxu0 %v3817_v5 }
  0xc2   :  { %2176 = vmatmul.mubr.bf16.gmra.mxu1 %v3818_v6  ;;  %1975 = vmatprep.mubr.bf16.mxu0 %v3820_v7  ;;  %v3889_v6 = vld [vmem:[%s5602_s0 + $0x130] ss:$36 sps:$4 sm:$0xff]  }
  0xc3   :  { %2183 = vmatprep.mubr.bf16.mxu1 %v3822_v8  ;;  %v3890_v8 = vld [vmem:[%s5602_s0 + $0x138] ss:$36 sps:$4 sm:$0xff]  }
  0xc9   :  { %1976 = vmatmul.mubr.bf16.gmra.mxu0 %v3824_v9  ;;  %v3891_v9 = vld [vmem:[%s5602_s0 + $0x17c] ss:$36 sps:$4 sm:$0xff]  }
  0xca   :  { %2184 = vmatmul.mubr.bf16.gmra.mxu1 %v3825_v10  ;;  %1983 = vmatprep.mubr.bf16.mxu0 %v3827_v11 }
  0xcb   :  { %2191 = vmatprep.mubr.bf16.mxu1 %v3829_v12  ;;  %v3893_v12 = vld [vmem:[%s5602_s0 + $0x184] ss:$36 sps:$4 sm:$0xff]  }
  0xd1   :  { %1984 = vmatmul.mubr.bf16.gmra.mxu0 %v3831_v13 }
  0xd2   :  { %2192 = vmatmul.mubr.bf16.gmra.mxu1 %v3832_v14  ;;  %1991 = vmatprep.mubr.bf16.mxu0 %v3835_v15 }
  0xd3   :  { %2199 = vmatprep.mubr.bf16.mxu1 %v3837_v16 }
  0xd9   :  { %1992 = vmatmul.mubr.bf16.gmra.mxu0 %v3839_v17 }
  0xda   :  { %2200 = vmatmul.mubr.bf16.gmra.mxu1 %v3840_v18  ;;  %1999 = vmatprep.mubr.bf16.mxu0 %v3844_v19 }
  0xdb   :  { %2207 = vmatprep.mubr.bf16.mxu1 %v3846_v20  ;;  %v3895_v20 = vld [vmem:[%s5602_s0 + $0x178] ss:$36 sps:$4 sm:$0xff]  }
  0xe1   :  { %2000 = vmatmul.mubr.bf16.gmra.mxu0 %v3848_v23  ;;  %v3900_v23 = vld [vmem:[%s5602_s0 + $0x1c4] ss:$36 sps:$4 sm:$0xff]  }
  0xe2   :  { %2208 = vmatmul.mubr.bf16.gmra.mxu1 %v3849_v24  ;;  %2007 = vmatprep.mubr.bf16.mxu0 %v3435_v25 }
  0xe3   :  { %2215 = vmatprep.mubr.bf16.mxu1 %v3437_v26  ;;  %v3903_v26 = vld [vmem:[%s5602_s0 + $0x1cc] ss:$36 sps:$4 sm:$0xff]  }
  0xe9   :  { %2008 = vmatmul.mubr.bf16.gmra.mxu0 %v3434_v27 }
  0xea   :  { %2216 = vmatmul.mubr.bf16.gmra.mxu1 %v3436_v28  ;;  %2255 = vmatprep.mubr.bf16.mxu0 %v3861_v29 }
  0xeb   :  { %2463 = vmatprep.mubr.bf16.mxu1 %v3864_v30 }
  0xf1   :  { %2256 = vmatmul.mubr.bf16.vlgmr.msra.gmra.mxu0 %v3859_v31 }
  0xf2   :  { %2464 = vmatmul.mubr.bf16.vlgmr.msra.gmra.mxu1 %v3862_v32  ;;  %3589 = vmatpush3.bf16.msra.mxu0 %v4403_v35 }
  0xf3   :  { %2263 = vmatprep.mubr.bf16.mxu0 %v3866_v33  ;;  %2471 = vmatprep.mubr.bf16.mxu1 %v3868_v34  ;;  %v3898_v34 = vld [vmem:[%s5602_s0 + $0x1c0] ss:$36 sps:$4 sm:$0xff]  }
  0xf4   :  { %3590 = vmatprep.subr.bf16.mxu0 %v3878_v36  ;;  %3656 = vmatpush3.bf16.msra.mxu1 %v4403_v35  ;;  %v3916_v35 = vld [vmem:[%s5601_s1 + $0x220] sm:$0xff]  }
  0xf5   :  { %3649 = vmatprep.subr.bf16.mxu1 %v3878_v36 }
  0xf6   :  { %3591 = vmatpush3.bf16.msra.mxu0 %v3878_v36 }
  0xf7   :  { %3592 = vmatprep.subr.bf16.mxu0 %v3897_v37 }
  0xf8   :  { %3657 = vmatpush3.bf16.msra.mxu1 %v3878_v36 }
  0xf9   :  { %2264 = vmatmul.mubr.bf16.gmra.mxu0 %v3870_v38  ;;  %3650 = vmatprep.subr.bf16.mxu1 %v3897_v37  ;;  %v3906_v38 = vld [vmem:[%s5602_s0 + $0x20c] ss:$36 sps:$4 sm:$0xff]  }
  0xfa   :  { %2472 = vmatmul.mubr.bf16.gmra.mxu1 %v3871_v39  ;;  %2271 = vmatprep.mubr.bf16.mxu0 %v3872_v40 }
  0xfb   :  { %2479 = vmatprep.mubr.bf16.mxu1 %v3874_v41  ;;  %3593 = vmatpush3.bf16.msra.mxu0 %v3897_v37  ;;  %v3909_v41 = vld [vmem:[%s5602_s0 + $0x214] ss:$36 sps:$4 sm:$0xff]  }
  0xfc   :  { %3594 = vmatprep.subr.bf16.mxu0 %v3916_v35  ;;  %3658 = vmatpush3.bf16.msra.mxu1 %v3897_v37  ;;  %v3901_v37 = vld [vmem:[%s5602_s0 + $0x1c8] ss:$36 sps:$4 sm:$0xff]  }
  0xfd   :  { %3651 = vmatprep.subr.bf16.mxu1 %v3916_v35 }
  0xff   :  { %3595 = vmatpush3.bf16.msra.mxu0 %v3916_v35 }
 0x100   :  { %3596 = vmatprep.subr.bf16.mxu0 %v3935_v42  ;;  %3659 = vmatpush3.bf16.msra.mxu1 %v3916_v35 }
 0x101   :  { %v1841_v47 = vpop.f32.mrf.mxu0  ;;  %2272 = vmatmul.mubr.bf16.gmra.mxu0 %v3876_v43  ;;  %3652 = vmatprep.subr.bf16.mxu1 %v3935_v42 }
 0x102   :  { %v2049_v48 = vpop.f32.mrf.mxu1  ;;  %2480 = vmatmul.mubr.bf16.gmra.mxu1 %v3877_v0  ;;  %2279 = vmatprep.mubr.bf16.mxu0 %v3879_v44 }
 0x103   :  { %v4627_v49 = vadd.f32 %v2049_v48, %v1841_v47  ;;  %v1843_v50 = vpop.f32.mrf.mxu0  ;;  %2487 = vmatprep.mubr.bf16.mxu1 %v3881_v45  ;;  %3597 = vmatpush3.bf16.msra.mxu0 %v3935_v42  ;;  %v3904_v47 = vld [vmem:[%s5602_s0 + $0x208] ss:$36 sps:$4 sm:$0xff]  }
 0x104   :  { %v2051_v51 = vpop.f32.mrf.mxu1  ;;  %3598 = vmatprep.subr.bf16.mxu0 %v3948_v46  ;;  %3660 = vmatpush3.bf16.msra.mxu1 %v3935_v42  ;;  %v3907_v50 = vld [vmem:[%s5602_s0 + $0x210] ss:$36 sps:$4 sm:$0xff]  }
 0x105   :  { %v1844_v53 = vpop.f32.mrf.mxu0  ;;  %3653 = vmatprep.subr.bf16.mxu1 %v3948_v46  ;;  %v3912_v51 = vld [vmem:[%s5602_s0 + $0x254] ss:$36 sps:$4 sm:$0xff]  }
 0x106   :  { %v2052_v55 = vpop.f32.mrf.mxu1 }
 0x107   :  { %v4641_v58 = vadd.f32 %v2052_v55, %v1844_v53  ;;  %v1846_v59 = vpop.f32.mrf.mxu0  ;;  %3599 = vmatpush3.bf16.msra.mxu0 %v3948_v46 }
 0x108   :  { %v2054_v61 = vpop.f32.mrf.mxu1  ;;  %3600 = vmatprep.subr.bf16.mxu0 %v3967_v52  ;;  %3661 = vmatpush3.bf16.msra.mxu1 %v3948_v46 }
 0x109   :  { %v1849_v62 = vpop.f32.mrf.mxu0  ;;  %2280 = vmatmul.mubr.bf16.gmra.mxu0 %v3883_v54  ;;  %3654 = vmatprep.subr.bf16.mxu1 %v3967_v52  ;;  %v3915_v54 = vld [vmem:[%s5602_s0 + $0x25c] ss:$36 sps:$4 sm:$0xff]  }
 0x10a   :  { %v2057_v63 = vpop.f32.mrf.mxu1  ;;  %2488 = vmatmul.mubr.bf16.gmra.mxu1 %v3884_v56  ;;  %2287 = vmatprep.mubr.bf16.mxu0 %v3885_v57 }
 0x10b   :  { %v4646_v1 = vadd.f32 %v2057_v63, %v1849_v62  ;;  %v1851_v2 = vpop.f32.mrf.mxu0  ;;  %2495 = vmatprep.mubr.bf16.mxu1 %v3887_v60  ;;  %3601 = vmatpush3.bf16.msra.mxu0 %v3967_v52  ;;  %v3910_v63 = vld [vmem:[%s5602_s0 + $0x250] ss:$36 sps:$4 sm:$0xff]  }
 0x10c   :  { %v2059_v3 = vpop.f32.mrf.mxu1  ;;  %3662 = vmatpush3.bf16.msra.mxu1 %v3967_v52  ;;  %3602 = vmatprep.subr.bf16.mxu0 %v3986_v4 }
 0x10d   :  { %v1852_v5 = vpop.f32.mrf.mxu0  ;;  %3655 = vmatprep.subr.bf16.mxu1 %v3986_v4  ;;  %v3913_v3 = vld [vmem:[%s5602_s0 + $0x258] ss:$36 sps:$4 sm:$0xff]  }
 0x10e   :  { %v2060_v7 = vpop.f32.mrf.mxu1 }
 0x10f   :  { %v4660_v10 = vadd.f32 %v2060_v7, %v1852_v5  ;;  %v1854_v11 = vpop.f32.mrf.mxu0  ;;  %3603 = vmatpush3.bf16.msra.mxu0 %v3986_v4  ;;  %v3922_v7 = vld [vmem:[%s5602_s0 + $0x2a4] ss:$36 sps:$4 sm:$0xff]  }
 0x110   :  { %v2062_v13 = vpop.f32.mrf.mxu1  ;;  %3663 = vmatpush3.bf16.msra.mxu1 %v3986_v4  ;;  %v3919_v4 = vld [vmem:[%s5602_s0 + $0x29c] ss:$36 sps:$4 sm:$0xff]  }
 0x111   :  { %v1857_v14 = vpop.f32.mrf.mxu0  ;;  %2288 = vmatmul.mubr.bf16.gmra.mxu0 %v3889_v6 }
 0x112   :  { %v2065_v15 = vpop.f32.mrf.mxu1  ;;  %2496 = vmatmul.mubr.bf16.gmra.mxu1 %v3890_v8  ;;  %2295 = vmatprep.mubr.bf16.mxu0 %v3891_v9 }
 0x113   :  { %v4665_v16 = vadd.f32 %v2065_v15, %v1857_v14  ;;  %v1859_v17 = vpop.f32.mrf.mxu0  ;;  %2503 = vmatprep.mubr.bf16.mxu1 %v3893_v12 }
 0x114   :  { %v2067_v18 = vpop.f32.mrf.mxu1  ;;  %v3917_v17 = vld [vmem:[%s5602_s0 + $0x298] ss:$36 sps:$4 sm:$0xff]  }
 0x115   :  { %v1860_v19 = vpop.f32.mrf.mxu0 }
 0x116   :  { %v2068_v21 = vpop.f32.mrf.mxu1 }
 0x117   :  { %v4676_v24 = vadd.f32 %v2068_v21, %v1860_v19  ;;  %v1862_v25 = vpop.f32.mrf.mxu0  ;;  %v3920_v19 = vld [vmem:[%s5602_s0 + $0x2a0] ss:$36 sps:$4 sm:$0xff]  }
 0x118   :  { %v2070_v27 = vpop.f32.mrf.mxu1 }
 0x119   :  { %v1865_v28 = vpop.f32.mrf.mxu0  ;;  %2296 = vmatmul.mubr.bf16.gmra.mxu0 %v3895_v20  ;;  %v3925_v20 = vld [vmem:[%s5602_s0 + $0x2e4] ss:$36 sps:$4 sm:$0xff]  }
 0x11a   :  { %v2073_v29 = vpop.f32.mrf.mxu1  ;;  %2504 = vmatmul.mubr.bf16.gmra.mxu1 %v3896_v22  ;;  %2303 = vmatprep.mubr.bf16.mxu0 %v3900_v23  ;;  %v3928_v23 = vld [vmem:[%s5602_s0 + $0x2ec] ss:$36 sps:$4 sm:$0xff]  }
 0x11b   :  { %v4681_v30 = vadd.f32 %v2073_v29, %v1865_v28  ;;  %v1867_v31 = vpop.f32.mrf.mxu0  ;;  %2511 = vmatprep.mubr.bf16.mxu1 %v3903_v26 }
 0x11c   :  { %v2075_v32 = vpop.f32.mrf.mxu1 }
 0x11d   :  { %v1868_v33 = vpop.f32.mrf.mxu0 }
 0x11e   :  { %v2076_v36 = vpop.f32.mrf.mxu1 }
 0x11f   :  { %v4692_v39 = vadd.f32 %v2076_v36, %v1868_v33  ;;  %v1870_v40 = vpop.f32.mrf.mxu0  ;;  %v3923_v33 = vld [vmem:[%s5602_s0 + $0x2e0] ss:$36 sps:$4 sm:$0xff]   ;;  %v3926_v36 = vld [vmem:[%s5602_s0 + $0x2e8] ss:$36 sps:$4 sm:$0xff]  }
 0x120   :  { %v2078_v35 = vpop.f32.mrf.mxu1 }
 0x121   :  { %v1873_v42 = vpop.f32.mrf.mxu0  ;;  %2304 = vmatmul.mubr.bf16.gmra.mxu0 %v3898_v34 }
 0x122   :  { %v2081_v43 = vpop.f32.mrf.mxu1  ;;  %2512 = vmatmul.mubr.bf16.gmra.mxu1 %v3901_v37  ;;  %2311 = vmatprep.mubr.bf16.mxu0 %v3906_v38  ;;  %v3931_v37 = vld [vmem:[%s5602_s0 + $0x32c] ss:$36 sps:$4 sm:$0xff]  }
 0x123   :  { %v4697_v0 = vadd.f32 %v2081_v43, %v1873_v42  ;;  %v1875_v44 = vpop.f32.mrf.mxu0  ;;  %2519 = vmatprep.mubr.bf16.mxu1 %v3909_v41  ;;  %v3934_v41 = vld [vmem:[%s5602_s0 + $0x334] ss:$36 sps:$4 sm:$0xff]  }
 0x124   :  { %v2083_v45 = vpop.f32.mrf.mxu1 }
 0x125   :  { %v1876_v46 = vpop.f32.mrf.mxu0 }
 0x126   :  { %v2084_v48 = vpop.f32.mrf.mxu1 }
 0x127   :  { %v4708_v52 = vadd.f32 %v2084_v48, %v1876_v46  ;;  %v1878_v53 = vpop.f32.mrf.mxu0  ;;  %v3929_v48 = vld [vmem:[%s5602_s0 + $0x328] ss:$36 sps:$4 sm:$0xff]  }
 0x128   :  { %v2086_v55 = vpop.f32.mrf.mxu1  ;;  %v3938_v53 = vld [vmem:[%s5602_s0 + $0x374] ss:$36 sps:$4 sm:$0xff]  }
 0x129   :  { %v1881_v56 = vpop.f32.mrf.mxu0  ;;  %2312 = vmatmul.mubr.bf16.gmra.mxu0 %v3904_v47 }
 0x12a   :  { %v2089_v57 = vpop.f32.mrf.mxu1  ;;  %2520 = vmatmul.mubr.bf16.gmra.mxu1 %v3907_v50  ;;  %2319 = vmatprep.mubr.bf16.mxu0 %v3912_v51  ;;  %v3932_v51 = vld [vmem:[%s5602_s0 + $0x330] ss:$36 sps:$4 sm:$0xff]  }
 0x12b   :  { %v4713_v59 = vadd.f32 %v2089_v57, %v1881_v56  ;;  %v1883_v60 = vpop.f32.mrf.mxu0  ;;  %2527 = vmatprep.mubr.bf16.mxu1 %v3915_v54  ;;  %v3941_v56 = vld [vmem:[%s5602_s0 + $0x37c] ss:$36 sps:$4 sm:$0xff]  }
 0x12c   :  { %v2091_v61 = vpop.f32.mrf.mxu1 }
 0x12d   :  { %v1884_v62 = vpop.f32.mrf.mxu0 }
 0x12e   :  { %v2092_v2 = vpop.f32.mrf.mxu1 }
 0x12f   :  { %v4724_v5 = vadd.f32 %v2092_v2, %v1884_v62  ;;  %v1886_v6 = vpop.f32.mrf.mxu0 }
 0x130   :  { %v2094_v8 = vpop.f32.mrf.mxu1 }
 0x131   :  { %v1889_v9 = vpop.f32.mrf.mxu0  ;;  %2320 = vmatmul.mubr.bf16.gmra.mxu0 %v3910_v63  ;;  %v3944_v8 = vld [vmem:[%s5602_s0 + $0x3bc] ss:$36 sps:$4 sm:$0xff]  }
 0x132   :  { %v2097_v11 = vpop.f32.mrf.mxu1  ;;  %2528 = vmatmul.mubr.bf16.gmra.mxu1 %v3913_v3  ;;  %2327 = vmatprep.mubr.bf16.mxu0 %v3919_v4  ;;  %v3936_v4 = vld [vmem:[%s5602_s0 + $0x370] ss:$36 sps:$4 sm:$0xff]  }
 0x133   :  { %v4729_v12 = vadd.f32 %v2097_v11, %v1889_v9  ;;  %v1891_v13 = vpop.f32.mrf.mxu0  ;;  %2535 = vmatprep.mubr.bf16.mxu1 %v3922_v7  ;;  %v3939_v7 = vld [vmem:[%s5602_s0 + $0x378] ss:$36 sps:$4 sm:$0xff]  }
 0x134   :  { %v2099_v14 = vpop.f32.mrf.mxu1  ;;  %v3947_v13 = vld [vmem:[%s5602_s0 + $0x3c4] ss:$36 sps:$4 sm:$0xff]  }
 0x135   :  { %v1892_v15 = vpop.f32.mrf.mxu0 }
 0x136   :  { %v2100_v18 = vpop.f32.mrf.mxu1 }
 0x137   :  { %v4740_v21 = vadd.f32 %v2100_v18, %v1892_v15  ;;  %v1894_v22 = vpop.f32.mrf.mxu0 }
 0x138   :  { %v2102_v25 = vpop.f32.mrf.mxu1 }
 0x139   :  { %v1897_v26 = vpop.f32.mrf.mxu0  ;;  %2328 = vmatmul.mubr.bf16.gmra.mxu0 %v3917_v17 }
 0x13a   :  { %v2105_v27 = vpop.f32.mrf.mxu1  ;;  %2536 = vmatmul.mubr.bf16.gmra.mxu1 %v3920_v19  ;;  %2335 = vmatprep.mubr.bf16.mxu0 %v3925_v20 }
 0x13b   :  { %v4745_v28 = vadd.f32 %v2105_v27, %v1897_v26  ;;  %v1899_v29 = vpop.f32.mrf.mxu0  ;;  %2543 = vmatprep.mubr.bf16.mxu1 %v3928_v23  ;;  %v3942_v23 = vld [vmem:[%s5602_s0 + $0x3b8] ss:$36 sps:$4 sm:$0xff]   ;;  %v3945_v26 = vld [vmem:[%s5602_s0 + $0x3c0] ss:$36 sps:$4 sm:$0xff]  }
 0x13c   :  { %v2107_v31 = vpop.f32.mrf.mxu1  ;;  %v3951_v27 = vld [vmem:[%s5602_s0 + $0x404] ss:$36 sps:$4 sm:$0xff]  }
 0x13d   :  { %v1900_v32 = vpop.f32.mrf.mxu0 }
 0x13e   :  { %v2108_v34 = vpop.f32.mrf.mxu1 }
 0x13f   :  { %v4756_v38 = vadd.f32 %v2108_v34, %v1900_v32  ;;  %v1902_v40 = vpop.f32.mrf.mxu0  ;;  %v3954_v32 = vld [vmem:[%s5602_s0 + $0x40c] ss:$36 sps:$4 sm:$0xff]  }
 0x140   :  { %v2110_v35 = vpop.f32.mrf.mxu1 }
 0x141   :  { %v1905_v42 = vpop.f32.mrf.mxu0  ;;  %2336 = vmatmul.mubr.bf16.gmra.mxu0 %v3923_v33 }
 0x142   :  { %v2113_v43 = vpop.f32.mrf.mxu1  ;;  %2544 = vmatmul.mubr.bf16.gmra.mxu1 %v3926_v36  ;;  %2343 = vmatprep.mubr.bf16.mxu0 %v3931_v37 }
 0x143   :  { %v4761_v44 = vadd.f32 %v2113_v43, %v1905_v42  ;;  %v1907_v45 = vpop.f32.mrf.mxu0  ;;  %2551 = vmatprep.mubr.bf16.mxu1 %v3934_v41  ;;  %v3949_v42 = vld [vmem:[%s5602_s0 + $0x400] ss:$36 sps:$4 sm:$0xff]  }
 0x144   :  { %v2115_v46 = vpop.f32.mrf.mxu1  ;;  %v3952_v45 = vld [vmem:[%s5602_s0 + $0x408] ss:$36 sps:$4 sm:$0xff]  }
 0x145   :  { %v1908_v47 = vpop.f32.mrf.mxu0  ;;  %v3957_v46 = vld [vmem:[%s5602_s0 + $0x44c] ss:$36 sps:$4 sm:$0xff]  }
 0x146   :  { %v2116_v50 = vpop.f32.mrf.mxu1 }
 0x147   :  { %v4772_v54 = vadd.f32 %v2116_v50, %v1908_v47  ;;  %v1910_v55 = vpop.f32.mrf.mxu0  ;;  %v3960_v50 = vld [vmem:[%s5602_s0 + $0x454] ss:$36 sps:$4 sm:$0xff]  }
 0x148   :  { %v2118_v57 = vpop.f32.mrf.mxu1 }
 0x149   :  { %v1913_v60 = vpop.f32.mrf.mxu0  ;;  %2344 = vmatmul.mubr.bf16.gmra.mxu0 %v3929_v48 }
 0x14a   :  { %v2121_v61 = vpop.f32.mrf.mxu1  ;;  %2552 = vmatmul.mubr.bf16.gmra.mxu1 %v3932_v51  ;;  %2351 = vmatprep.mubr.bf16.mxu0 %v3938_v53 }
 0x14b   :  { %v4777_v62 = vadd.f32 %v2121_v61, %v1913_v60  ;;  %v1915_v63 = vpop.f32.mrf.mxu0  ;;  %2559 = vmatprep.mubr.bf16.mxu1 %v3941_v56 }
 0x14c   :  { %v2123_v2 = vpop.f32.mrf.mxu1  ;;  %v3955_v63 = vld [vmem:[%s5602_s0 + $0x448] ss:$36 sps:$4 sm:$0xff]  }
 0x14d   :  { %v1916_v3 = vpop.f32.mrf.mxu0 }
 0x14e   :  { %v2124_v6 = vpop.f32.mrf.mxu1 }
 0x14f   :  { %v4788_v9 = vadd.f32 %v2124_v6, %v1916_v3  ;;  %v1918_v11 = vpop.f32.mrf.mxu0  ;;  %v3958_v3 = vld [vmem:[%s5602_s0 + $0x450] ss:$36 sps:$4 sm:$0xff]  }
 0x150   :  { %v2126_v14 = vpop.f32.mrf.mxu1 }
 0x151   :  { %v1921_v15 = vpop.f32.mrf.mxu0  ;;  %2352 = vmatmul.mubr.bf16.gmra.mxu0 %v3936_v4  ;;  %v3963_v4 = vld [vmem:[%s5602_s0 + $0x494] ss:$36 sps:$4 sm:$0xff]  }
 0x152   :  { %v2129_v17 = vpop.f32.mrf.mxu1  ;;  %2560 = vmatmul.mubr.bf16.gmra.mxu1 %v3939_v7  ;;  %2359 = vmatprep.mubr.bf16.mxu0 %v3944_v8  ;;  %v3966_v8 = vld [vmem:[%s5602_s0 + $0x49c] ss:$36 sps:$4 sm:$0xff]  }
 0x153   :  { %v4793_v18 = vadd.f32 %v2129_v17, %v1921_v15  ;;  %v1923_v19 = vpop.f32.mrf.mxu0  ;;  %2567 = vmatprep.mubr.bf16.mxu1 %v3947_v13 }
 0x154   :  { %v2131_v20 = vpop.f32.mrf.mxu1 }
 0x155   :  { %v1924_v22 = vpop.f32.mrf.mxu0 }
 0x156   :  { %v2132_v25 = vpop.f32.mrf.mxu1 }
 0x157   :  { %v4804_v29 = vadd.f32 %v2132_v25, %v1924_v22  ;;  %v1926_v31 = vpop.f32.mrf.mxu0  ;;  %v3961_v22 = vld [vmem:[%s5602_s0 + $0x490] ss:$36 sps:$4 sm:$0xff]   ;;  %v3964_v25 = vld [vmem:[%s5602_s0 + $0x498] ss:$36 sps:$4 sm:$0xff]  }
 0x158   :  { %v2134_v33 = vpop.f32.mrf.mxu1 }
 0x159   :  { %v1929_v34 = vpop.f32.mrf.mxu0  ;;  %2360 = vmatmul.mubr.bf16.gmra.mxu0 %v3942_v23 }
 0x15a   :  { %v2137_v36 = vpop.f32.mrf.mxu1  ;;  %2568 = vmatmul.mubr.bf16.gmra.mxu1 %v3945_v26  ;;  %2367 = vmatprep.mubr.bf16.mxu0 %v3951_v27  ;;  %v3970_v26 = vld [vmem:[%s5602_s0 + $0x4dc] ss:$36 sps:$4 sm:$0xff]  }
 0x15b   :  { %v4809_v37 = vadd.f32 %v2137_v36, %v1929_v34  ;;  %v1931_v40 = vpop.f32.mrf.mxu0  ;;  %2575 = vmatprep.mubr.bf16.mxu1 %v3954_v32  ;;  %v3973_v32 = vld [vmem:[%s5602_s0 + $0x4e4] ss:$36 sps:$4 sm:$0xff]  }
 0x15c   :  { %v2139_v41 = vpop.f32.mrf.mxu1 }
 0x15d   :  { %v1932_v35 = vpop.f32.mrf.mxu0 }
 0x15e   :  { %v2140_v43 = vpop.f32.mrf.mxu1 }
 0x15f   :  { %v4820_v47 = vadd.f32 %v2140_v43, %v1932_v35  ;;  %v1934_v48 = vpop.f32.mrf.mxu0  ;;  %v3968_v43 = vld [vmem:[%s5602_s0 + $0x4d8] ss:$36 sps:$4 sm:$0xff]  }
 0x160   :  { %v2142_v51 = vpop.f32.mrf.mxu1  ;;  %v3976_v48 = vld [vmem:[%s5602_s0 + $0x524] ss:$36 sps:$4 sm:$0xff]  }
 0x161   :  { %v1937_v53 = vpop.f32.mrf.mxu0  ;;  %2368 = vmatmul.mubr.bf16.gmra.mxu0 %v3949_v42 }
 0x162   :  { %v2145_v55 = vpop.f32.mrf.mxu1  ;;  %2576 = vmatmul.mubr.bf16.gmra.mxu1 %v3952_v45  ;;  %2375 = vmatprep.mubr.bf16.mxu0 %v3957_v46  ;;  %v3971_v46 = vld [vmem:[%s5602_s0 + $0x4e0] ss:$36 sps:$4 sm:$0xff]  }
 0x163   :  { %v4825_v56 = vadd.f32 %v2145_v55, %v1937_v53  ;;  %v1939_v57 = vpop.f32.mrf.mxu0  ;;  %2583 = vmatprep.mubr.bf16.mxu1 %v3960_v50  ;;  %v3979_v53 = vld [vmem:[%s5602_s0 + $0x52c] ss:$36 sps:$4 sm:$0xff]  }
 0x164   :  { %v2147_v60 = vpop.f32.mrf.mxu1 }
 0x165   :  { %v1940_v61 = vpop.f32.mrf.mxu0 }
 0x166   :  { %v2148_v2 = vpop.f32.mrf.mxu1 }
 0x167   :  { %v4836_v6 = vadd.f32 %v2148_v2, %v1940_v61  ;;  %v1942_v7 = vpop.f32.mrf.mxu0 }
 0x168   :  { %v2150_v11 = vpop.f32.mrf.mxu1 }
 0x169   :  { %v1945_v13 = vpop.f32.mrf.mxu0  ;;  %2376 = vmatmul.mubr.bf16.gmra.mxu0 %v3955_v63  ;;  %v3982_v11 = vld [vmem:[%s5602_s0 + $0x56c] ss:$36 sps:$4 sm:$0xff]  }
 0x16a   :  { %v2153_v14 = vpop.f32.mrf.mxu1  ;;  %2584 = vmatmul.mubr.bf16.gmra.mxu1 %v3958_v3  ;;  %2383 = vmatprep.mubr.bf16.mxu0 %v3963_v4  ;;  %v3974_v4 = vld [vmem:[%s5602_s0 + $0x520] ss:$36 sps:$4 sm:$0xff]  }
 0x16b   :  { %v4841_v15 = vadd.f32 %v2153_v14, %v1945_v13  ;;  %v1947_v17 = vpop.f32.mrf.mxu0  ;;  %2591 = vmatprep.mubr.bf16.mxu1 %v3966_v8  ;;  %v3977_v8 = vld [vmem:[%s5602_s0 + $0x528] ss:$36 sps:$4 sm:$0xff]  }
 0x16c   :  { %v2155_v19 = vpop.f32.mrf.mxu1  ;;  %v3985_v17 = vld [vmem:[%s5602_s0 + $0x574] ss:$36 sps:$4 sm:$0xff]  }
 0x16d   :  { %v1948_v20 = vpop.f32.mrf.mxu0 }
 0x16e   :  { %v2156_v23 = vpop.f32.mrf.mxu1 }
 0x16f   :  { %v4852_v27 = vadd.f32 %v2156_v23, %v1948_v20  ;;  %v1950_v31 = vpop.f32.mrf.mxu0 }
 0x170   :  { %v2158_v33 = vpop.f32.mrf.mxu1 }
 0x171   :  { %v1953_v34 = vpop.f32.mrf.mxu0  ;;  %2384 = vmatmul.mubr.bf16.gmra.mxu0 %v3961_v22 }
 0x172   :  { %v2161_v36 = vpop.f32.mrf.mxu1  ;;  %2592 = vmatmul.mubr.bf16.gmra.mxu1 %v3964_v25  ;;  %2391 = vmatprep.mubr.bf16.mxu0 %v3970_v26 }
 0x173   :  { %v4857_v40 = vadd.f32 %v2161_v36, %v1953_v34  ;;  %v1955_v41 = vpop.f32.mrf.mxu0  ;;  %2599 = vmatprep.mubr.bf16.mxu1 %v3973_v32  ;;  %v3980_v32 = vld [vmem:[%s5602_s0 + $0x568] ss:$36 sps:$4 sm:$0xff]   ;;  %v3983_v34 = vld [vmem:[%s5602_s0 + $0x570] ss:$36 sps:$4 sm:$0xff]  }
 0x174   :  { %v2163_v35 = vpop.f32.mrf.mxu1  ;;  %v3989_v36 = vld [vmem:[%s5602_s0 + $0x5b4] ss:$36 sps:$4 sm:$0xff]  }
 0x175   :  { %v1956_v42 = vpop.f32.mrf.mxu0 }
 0x176   :  { %v2164_v45 = vpop.f32.mrf.mxu1 }
 0x177   :  { %v4868_v50 = vadd.f32 %v2164_v45, %v1956_v42  ;;  %v1958_v51 = vpop.f32.mrf.mxu0  ;;  %v3992_v42 = vld [vmem:[%s5602_s0 + $0x5bc] ss:$36 sps:$4 sm:$0xff]  }
 0x178   :  { %v2166_v55 = vpop.f32.mrf.mxu1 }
 0x179   :  { %v1961_v57 = vpop.f32.mrf.mxu0  ;;  %2392 = vmatmul.mubr.bf16.gmra.mxu0 %v3968_v43 }
 0x17a   :  { %v2169_v60 = vpop.f32.mrf.mxu1  ;;  %2600 = vmatmul.mubr.bf16.gmra.mxu1 %v3971_v46  ;;  %2399 = vmatprep.mubr.bf16.mxu0 %v3976_v48 }
 0x17b   :  { %v4873_v61 = vadd.f32 %v2169_v60, %v1961_v57  ;;  %v1963_v63 = vpop.f32.mrf.mxu0  ;;  %2607 = vmatprep.mubr.bf16.mxu1 %v3979_v53  ;;  %v230_v53 = vld [vmem:[%s5602_s0 + $0x5f8] sm:$0x11]  ;;  %v231_v57 = vld [vmem:[%s5602_s0 + $0x600] sm:$0x11] }
 0x17c   :  { %v2171_v2 = vpop.f32.mrf.mxu1  ;;  %v3987_v63 = vld [vmem:[%s5602_s0 + $0x5b0] ss:$36 sps:$4 sm:$0xff]  }
 0x17d   :  { %v1964_v3 = vpop.f32.mrf.mxu0 }
 0x17e   :  { %v2172_v7 = vpop.f32.mrf.mxu1 }
 0x17f   :  { %v4884_v13 = vadd.f32 %v2172_v7, %v1964_v3  ;;  %v1966_v14 = vpop.f32.mrf.mxu0  ;;  %v3990_v3 = vld [vmem:[%s5602_s0 + $0x5b8] ss:$36 sps:$4 sm:$0xff]  }
 0x180   :  { %v2174_v19 = vpop.f32.mrf.mxu1 }
 0x181   :  { %v1969_v20 = vpop.f32.mrf.mxu0  ;;  %2400 = vmatmul.mubr.bf16.gmra.mxu0 %v3974_v4  ;;  %v3439_v4 = vcombine.high %v230_v53, %v230_v53 }
 0x182   :  { %v2177_v22 = vpop.f32.mrf.mxu1  ;;  %2608 = vmatmul.mubr.bf16.gmra.mxu1 %v3977_v8  ;;  %2407 = vmatprep.mubr.bf16.mxu0 %v3982_v11  ;;  %v3441_v11 = vcombine.high %v231_v57, %v231_v57 }
 0x183   :  { %v4889_v23 = vadd.f32 %v2177_v22, %v1969_v20  ;;  %v1971_v25 = vpop.f32.mrf.mxu0  ;;  %2615 = vmatprep.mubr.bf16.mxu1 %v3985_v17 }
 0x184   :  { %v2179_v26 = vpop.f32.mrf.mxu1 }
 0x185   :  { %v1972_v31 = vpop.f32.mrf.mxu0 }
 0x186   :  { %v2180_v33 = vpop.f32.mrf.mxu1 }
 0x187   :  { %v4900_v41 = vadd.f32 %v2180_v33, %v1972_v31  ;;  %v1974_v35 = vpop.f32.mrf.mxu0  ;;  %v3438_v31 = vcombine.low %v230_v53, %v230_v53  ;;  %v3440_v33 = vcombine.low %v231_v57, %v231_v57 }
 0x188   :  { %v2182_v43 = vpop.f32.mrf.mxu1 }
 0x189   :  { %v1977_v45 = vpop.f32.mrf.mxu0  ;;  %2408 = vmatmul.mubr.bf16.gmra.mxu0 %v3980_v32 }
 0x18a   :  { %v2185_v46 = vpop.f32.mrf.mxu1  ;;  %2616 = vmatmul.mubr.bf16.gmra.mxu1 %v3983_v34  ;;  %2415 = vmatprep.mubr.bf16.mxu0 %v3989_v36  ;;  %v3997_v34 = vld [vmem:[%s5602_s0 + $0x20] ss:$36 sps:$4 sm:$0xff]  }
 0x18b   :  { %v4905_v48 = vadd.f32 %v2185_v46, %v1977_v45  ;;  %v1979_v51 = vpop.f32.mrf.mxu0  ;;  %2623 = vmatprep.mubr.bf16.mxu1 %v3992_v42  ;;  %v3998_v42 = vld [vmem:[%s5602_s0 + $0x380] ss:$36 sps:$4 sm:$0xff]  }
 0x18c   :  { %v2187_v55 = vpop.f32.mrf.mxu1 }
 0x18d   :  { %v1980_v60 = vpop.f32.mrf.mxu0 }
 0x18e   :  { %v2188_v2 = vpop.f32.mrf.mxu1 }
 0x18f   :  { %v4919_v7 = vadd.f32 %v2188_v2, %v1980_v60  ;;  %v1982_v8 = vpop.f32.mrf.mxu0  ;;  %v3999_v60 = vld [vmem:[%s5602_s0 + $0x68] ss:$36 sps:$4 sm:$0xff]  }
 0x190   :  { %v2190_v14 = vpop.f32.mrf.mxu1  ;;  %v4000_v2 = vld [vmem:[%s5602_s0 + $0x3c8] ss:$36 sps:$4 sm:$0xff]  }
 0x191   :  { %v1985_v17 = vpop.f32.mrf.mxu0  ;;  %2416 = vmatmul.mubr.bf16.gmra.mxu0 %v3987_v63 }
 0x192   :  { %v2193_v19 = vpop.f32.mrf.mxu1  ;;  %2624 = vmatmul.mubr.bf16.gmra.mxu1 %v3990_v3  ;;  %2423 = vmatprep.mubr.bf16.mxu0 %v3439_v4  ;;  %v4001_v3 = vld [vmem:[%s5602_s0 + $0xb0] ss:$36 sps:$4 sm:$0xff]  }
 0x193   :  { %v4921_v20 = vadd.f32 %v2193_v19, %v1985_v17  ;;  %v1987_v22 = vpop.f32.mrf.mxu0  ;;  %2631 = vmatprep.mubr.bf16.mxu1 %v3441_v11  ;;  %v4002_v11 = vld [vmem:[%s5602_s0 + $0x410] ss:$36 sps:$4 sm:$0xff]  }
 0x194   :  { %v2195_v25 = vpop.f32.mrf.mxu1 }
 0x195   :  { %v1988_v26 = vpop.f32.mrf.mxu0 }
 0x196   :  { %v2196_v32 = vpop.f32.mrf.mxu1 }
 0x197   :  { %v4926_v36 = vadd.f32 %v2196_v32, %v1988_v26  ;;  %v1990_v35 = vpop.f32.mrf.mxu0  ;;  %v4003_v32 = vld [vmem:[%s5602_s0 + $0xf8] ss:$36 sps:$4 sm:$0xff]  }
 0x198   :  { %v2198_v43 = vpop.f32.mrf.mxu1  ;;  %v4005_v35 = vld [vmem:[%s5602_s0 + $0x140] ss:$36 sps:$4 sm:$0xff]  }
 0x199   :  { %v1993_v45 = vpop.f32.mrf.mxu0  ;;  %2424 = vmatmul.mubr.bf16.gmra.mxu0 %v3438_v31 }
 0x19a   :  { %v2201_v46 = vpop.f32.mrf.mxu1  ;;  %2632 = vmatmul.mubr.bf16.gmra.mxu1 %v3440_v33  ;;  %3604 = vmatprep.mubr.bf16.mxu0 %v3997_v34  ;;  %v4004_v34 = vld [vmem:[%s5602_s0 + $0x458] ss:$36 sps:$4 sm:$0xff]  }
 0x19b   :  { %v4931_v51 = vadd.f32 %v2201_v46, %v1993_v45  ;;  %v1995_v53 = vpop.f32.mrf.mxu0  ;;  %3628 = vmatprep.mubr.bf16.mxu1 %v3998_v42  ;;  %v4006_v45 = vld [vmem:[%s5602_s0 + $0x4a0] ss:$36 sps:$4 sm:$0xff]  }
 0x19c   :  { %v2203_v55 = vpop.f32.mrf.mxu1 }
 0x19d   :  { %v1996_v57 = vpop.f32.mrf.mxu0 }
 0x19e   :  { %v2204_v63 = vpop.f32.mrf.mxu1 }
 0x19f   :  { %v4942_v4 = vadd.f32 %v2204_v63, %v1996_v57  ;;  %v1998_v8 = vpop.f32.mrf.mxu0 }
 0x1a0   :  { %v2206_v14 = vpop.f32.mrf.mxu1 }
 0x1a1   :  { %v2001_v17 = vpop.f32.mrf.mxu0  ;;  %3605 = vmatmul.mubr.bf16.vlgmr.msra.gmra.mxu0 %v3999_v60  ;;  %v4009_v14 = vld [vmem:[%s5602_s0 + $0x1d0] ss:$36 sps:$4 sm:$0xff]  }
 0x1a2   :  { %v2209_v19 = vpop.f32.mrf.mxu1  ;;  %3629 = vmatmul.mubr.bf16.vlgmr.msra.gmra.mxu1 %v4000_v2  ;;  %3608 = vmatprep.mubr.bf16.mxu0 %v4001_v3  ;;  %v4007_v3 = vld [vmem:[%s5602_s0 + $0x188] ss:$36 sps:$4 sm:$0xff]  }
 0x1a3   :  { %v4947_v22 = vadd.f32 %v2209_v19, %v2001_v17  ;;  %v2003_v25 = vpop.f32.mrf.mxu0  ;;  %3632 = vmatprep.mubr.bf16.mxu1 %v4002_v11  ;;  %v4008_v11 = vld [vmem:[%s5602_s0 + $0x4e8] ss:$36 sps:$4 sm:$0xff]   ;;  %v4010_v19 = vld [vmem:[%s5602_s0 + $0x530] ss:$36 sps:$4 sm:$0xff]  }
 0x1a4   :  { %v2211_v26 = vpop.f32.mrf.mxu1 }
 0x1a5   :  { %v2004_v31 = vpop.f32.mrf.mxu0 }
 0x1a6   :  { %v2212_v33 = vpop.f32.mrf.mxu1 }
 0x1a7   :  { %v4958_v42 = vadd.f32 %v2212_v33, %v2004_v31  ;;  %v2006_v43 = vpop.f32.mrf.mxu0 }
 0x1a8   :  { %v2214_v46 = vpop.f32.mrf.mxu1 }
 0x1a9   :  { %v2009_v53 = vpop.f32.mrf.mxu0  ;;  %3609 = vmatmul.mubr.bf16.gmra.mxu0 %v4003_v32 }
 0x1aa   :  { %v2217_v55 = vpop.f32.mrf.mxu1  ;;  %3633 = vmatmul.mubr.bf16.gmra.mxu1 %v4004_v34  ;;  %3612 = vmatprep.mubr.bf16.mxu0 %v4005_v35 }
 0x1ab   :  { %v4963_v57 = vadd.f32 %v2217_v55, %v2009_v53  ;;  %v2011_v60 = vpop.f32.mrf.mxu0  ;;  %3636 = vmatprep.mubr.bf16.mxu1 %v4006_v45  ;;  %v4011_v45 = vld [vmem:[%s5602_s0 + $0x218] ss:$36 sps:$4 sm:$0xff]   ;;  %v4013_v55 = vld [vmem:[%s5602_s0 + $0x260] ss:$36 sps:$4 sm:$0xff]  }
 0x1ac   :  { %v2219_v63 = vpop.f32.mrf.mxu1 }
 0x1ad   :  { %v2012_v2 = vpop.f32.mrf.mxu0  ;;  %v4014_v63 = vld [vmem:[%s5602_s0 + $0x5c0] ss:$36 sps:$4 sm:$0xff]  }
 0x1ae   :  { %v2220_v8 = vpop.f32.mrf.mxu1 }
 0x1af   :  { %v2013_v17 = vpop.f32.mrf.mxu0 }
 0x1b0   :  { %v2221_v25 = vpop.f32.mrf.mxu1 }
 0x1b1   :  { %v2257_v26 = vpop.f32.mrf.mxu0  ;;  %3613 = vmatmul.mubr.bf16.gmra.mxu0 %v4007_v3 }
 0x1b2   :  { %v2258_v31 = vadd.f32 %v2257_v26, %v4627_v49  ;;  %v2465_v32 = vpop.f32.mrf.mxu1  ;;  %3637 = vmatmul.mubr.bf16.gmra.mxu1 %v4008_v11  ;;  %3616 = vmatprep.mubr.bf16.mxu0 %v4009_v14  ;;  %v4012_v49 = vld [vmem:[%s5602_s0 + $0x578] ss:$36 sps:$4 sm:$0xff]   ;;  %v4015_v26 = vld [vmem:[%s5602_s0 + $0x2a8] ss:$36 sps:$4 sm:$0xff]  }
 0x1b3   :  { %v2259_v33 = vpop.f32.mrf.mxu0  ;;  %3640 = vmatprep.mubr.bf16.mxu1 %v4010_v19 }
 0x1b4   :  { %v4978_v34 = vadd.f32 %v2465_v32, %v2258_v31  ;;  %v2467_v35 = vpop.f32.mrf.mxu1  ;;  %v4017_v33 = vld [vmem:[%s5602_s0 + $0x2f0] ss:$36 sps:$4 sm:$0xff]  }
 0x1b5   :  { %v2260_v43 = vpop.f32.mrf.mxu0 }
 0x1b6   :  { %v2261_v46 = vadd.f32 %v2260_v43, %v4641_v58  ;;  %v2468_v53 = vpop.f32.mrf.mxu1 }
 0x1b7   :  { %v2262_v60 = vpop.f32.mrf.mxu0 }
 0x1b8   :  { %v4993_v2 = vadd.f32 %v2468_v53, %v2261_v46  ;;  %v2470_v3 = vpop.f32.mrf.mxu1 }
 0x1b9   :  { %v2265_v8 = vpop.f32.mrf.mxu0  ;;  %3617 = vmatmul.mubr.bf16.gmra.mxu0 %v4011_v45  ;;  %v4018_v3 = vld [vmem:[%s5602_s0 + $0x338] ss:$36 sps:$4 sm:$0xff]  }
 0x1ba   :  { %v2266_v58 = vadd.f32 %v2265_v8, %v4646_v1  ;;  %v2473_v11 = vpop.f32.mrf.mxu1  ;;  %3641 = vmatmul.mubr.bf16.gmra.mxu1 %v4012_v49  ;;  %3620 = vmatprep.mubr.bf16.mxu0 %v4013_v55  ;;  %v4016_v1 = vld [vmem:[%s5602_s0 + $0x608] ss:$0 sps:$4 sm:$0x11]  }
 0x1bb   :  { %v2267_v14 = vpop.f32.mrf.mxu0  ;;  %3644 = vmatprep.mubr.bf16.mxu1 %v4014_v63 }
 0x1bc   :  { %v4996_v17 = vadd.f32 %v2473_v11, %v2266_v58  ;;  %v2475_v19 = vpop.f32.mrf.mxu1 }
 0x1bd   :  { %v2268_v25 = vpop.f32.mrf.mxu0 }
 0x1be   :  { %v2269_v31 = vadd.f32 %v2268_v25, %v4660_v10  ;;  %v2476_v32 = vpop.f32.mrf.mxu1 }
 0x1bf   :  { %v2270_v35 = vpop.f32.mrf.mxu0 }
 0x1c0   :  { %v5008_v43 = vadd.f32 %v2476_v32, %v2269_v31  ;;  %v2478_v45 = vpop.f32.mrf.mxu1 }
 0x1c1   :  { %v2273_v46 = vpop.f32.mrf.mxu0  ;;  %3621 = vmatmul.mubr.bf16.gmra.mxu0 %v4015_v26 }
 0x1c2   :  { %v2274_v53 = vadd.f32 %v2273_v46, %v4665_v16  ;;  %v2481_v49 = vpop.f32.mrf.mxu1  ;;  %3645 = vmatmul.mubr.bf16.gmra.mxu1 %v4016_v1  ;;  %3624 = vmatprep.mubr.bf16.mxu0 %v4017_v33 }
 0x1c3   :  { %v2275_v10 = vpop.f32.mrf.mxu0 }
 0x1c4   :  { %v5011_v55 = vadd.f32 %v2481_v49, %v2274_v53  ;;  %v2483_v60 = vpop.f32.mrf.mxu1 }
 0x1c5   :  { %v2276_v63 = vpop.f32.mrf.mxu0 }
 0x1c6   :  { %v2277_v8 = vadd.f32 %v2276_v63, %v4676_v24  ;;  %v2484_v58 = vpop.f32.mrf.mxu1 }
 0x1c7   :  { %v2278_v11 = vpop.f32.mrf.mxu0 }
 0x1c8   :  { %v5017_v14 = vadd.f32 %v2484_v58, %v2277_v8  ;;  %v2486_v19 = vpop.f32.mrf.mxu1 }
 0x1c9   :  { %v2281_v16 = vpop.f32.mrf.mxu0  ;;  %3625 = vmatmul.mubr.bf16.gmra.mxu0 %v4018_v3 }
 0x1ca   :  { %v2282_v25 = vadd.f32 %v2281_v16, %v4681_v30  ;;  %v2489_v26 = vpop.f32.mrf.mxu1 }
 0x1cb   :  { %v2283_v31 = vpop.f32.mrf.mxu0 }
 0x1cc   :  { %v5020_v32 = vadd.f32 %v2489_v26, %v2282_v25  ;;  %v2491_v1 = vpop.f32.mrf.mxu1 }
 0x1cd   :  { %v2284_v33 = vpop.f32.mrf.mxu0 }
 0x1ce   :  { %v2285_v35 = vadd.f32 %v2284_v33, %v4692_v39  ;;  %v2492_v45 = vpop.f32.mrf.mxu1 }
 0x1cf   :  { %v2286_v46 = vpop.f32.mrf.mxu0 }
 0x1d0   :  { %v5023_v24 = vadd.f32 %v2492_v45, %v2285_v35  ;;  %v2494_v53 = vpop.f32.mrf.mxu1 }
 0x1d1   :  { %v2289_v49 = vpop.f32.mrf.mxu0 }
 0x1d2   :  { %v2290_v10 = vadd.f32 %v2289_v49, %v4697_v0  ;;  %v2497_v60 = vpop.f32.mrf.mxu1 }
 0x1d3   :  { %v2291_v63 = vpop.f32.mrf.mxu0 }
 0x1d4   :  { %v5026_v3 = vadd.f32 %v2497_v60, %v2290_v10  ;;  %v2499_v30 = vpop.f32.mrf.mxu1 }
 0x1d5   :  { %v2292_v8 = vpop.f32.mrf.mxu0 }
 0x1d6   :  { %v2293_v58 = vadd.f32 %v2292_v8, %v4708_v52  ;;  %v2500_v11 = vpop.f32.mrf.mxu1 }
 0x1d7   :  { %v2294_v19 = vpop.f32.mrf.mxu0 }
 0x1d8   :  { %v5029_v16 = vadd.f32 %v2500_v11, %v2293_v58  ;;  %v2502_v39 = vpop.f32.mrf.mxu1 }
 0x1d9   :  { %v2297_v25 = vpop.f32.mrf.mxu0 }
 0x1da   :  { %v2298_v26 = vadd.f32 %v2297_v25, %v4713_v59  ;;  %v2505_v31 = vpop.f32.mrf.mxu1 }
 0x1db   :  { %v2299_v1 = vpop.f32.mrf.mxu0 }
 0x1dc   :  { %v5032_v33 = vadd.f32 %v2505_v31, %v2298_v26  ;;  %v2507_v0 = vpop.f32.mrf.mxu1 }
 0x1dd   :  { %v2300_v35 = vpop.f32.mrf.mxu0 }
 0x1de   :  { %v2301_v45 = vadd.f32 %v2300_v35, %v4724_v5  ;;  %v2508_v46 = vpop.f32.mrf.mxu1 }
 0x1df   :  { %v2302_v53 = vpop.f32.mrf.mxu0 }
 0x1e0   :  { %v5035_v49 = vadd.f32 %v2508_v46, %v2301_v45  ;;  %v2510_v52 = vpop.f32.mrf.mxu1 }
 0x1e1   :  { %v2305_v10 = vpop.f32.mrf.mxu0 }
 0x1e2   :  { %v2306_v60 = vadd.f32 %v2305_v10, %v4729_v12  ;;  %v2513_v63 = vpop.f32.mrf.mxu1 }
 0x1e3   :  { %v2307_v30 = vpop.f32.mrf.mxu0 }
 0x1e4   :  { %v5038_v8 = vadd.f32 %v2513_v63, %v2306_v60  ;;  %v2515_v59 = vpop.f32.mrf.mxu1 }
 0x1e5   :  { %v2308_v58 = vpop.f32.mrf.mxu0 }
 0x1e6   :  { %v2309_v11 = vadd.f32 %v2308_v58, %v4740_v21  ;;  %v2516_v19 = vpop.f32.mrf.mxu1 }
 0x1e7   :  { %v2310_v39 = vpop.f32.mrf.mxu0 }
 0x1e8   :  { %v5041_v25 = vadd.f32 %v2516_v19, %v2309_v11  ;;  %v2518_v5 = vpop.f32.mrf.mxu1 }
 0x1e9   :  { %v2313_v26 = vpop.f32.mrf.mxu0 }
 0x1ea   :  { %v2314_v31 = vadd.f32 %v2313_v26, %v4745_v28  ;;  %v2521_v1 = vpop.f32.mrf.mxu1 }
 0x1eb   :  { %v2315_v0 = vpop.f32.mrf.mxu0 }
 0x1ec   :  { %v5044_v35 = vadd.f32 %v2521_v1, %v2314_v31  ;;  %v2523_v12 = vpop.f32.mrf.mxu1 }
 0x1ed   :  { %v2316_v45 = vpop.f32.mrf.mxu0 }
 0x1ee   :  { %v2317_v46 = vadd.f32 %v2316_v45, %v4756_v38  ;;  %v2524_v53 = vpop.f32.mrf.mxu1 }
 0x1ef   :  { %v2318_v52 = vpop.f32.mrf.mxu0 }
 0x1f0   :  { %v5047_v10 = vadd.f32 %v2524_v53, %v2317_v46  ;;  %v2526_v21 = vpop.f32.mrf.mxu1 }
 0x1f1   :  { %v2321_v60 = vpop.f32.mrf.mxu0 }
 0x1f2   :  { %v2322_v63 = vadd.f32 %v2321_v60, %v4761_v44  ;;  %v2529_v30 = vpop.f32.mrf.mxu1 }
 0x1f3   :  { %v2323_v59 = vpop.f32.mrf.mxu0 }
 0x1f4   :  { %v5050_v58 = vadd.f32 %v2529_v30, %v2322_v63  ;;  %v2531_v28 = vpop.f32.mrf.mxu1 }
 0x1f5   :  { %v2324_v11 = vpop.f32.mrf.mxu0 }
 0x1f6   :  { %v2325_v19 = vadd.f32 %v2324_v11, %v4772_v54  ;;  %v2532_v39 = vpop.f32.mrf.mxu1 }
 0x1f7   :  { %v2326_v5 = vpop.f32.mrf.mxu0 }
 0x1f8   :  { %v5053_v26 = vadd.f32 %v2532_v39, %v2325_v19  ;;  %v2534_v38 = vpop.f32.mrf.mxu1 }
 0x1f9   :  { %v2329_v31 = vpop.f32.mrf.mxu0 }
 0x1fa   :  { %v2330_v1 = vadd.f32 %v2329_v31, %v4777_v62  ;;  %v2537_v0 = vpop.f32.mrf.mxu1 }
 0x1fb   :  { %v2331_v12 = vpop.f32.mrf.mxu0 }
 0x1fc   :  { %v5056_v45 = vadd.f32 %v2537_v0, %v2330_v1  ;;  %v2539_v44 = vpop.f32.mrf.mxu1 }
 0x1fd   :  { %v2332_v46 = vpop.f32.mrf.mxu0 }
 0x1fe   :  { %v2333_v53 = vadd.f32 %v2332_v46, %v4788_v9  ;;  %v2540_v52 = vpop.f32.mrf.mxu1 }
 0x1ff   :  { %v2334_v21 = vpop.f32.mrf.mxu0 }
 0x200   :  { %v5059_v60 = vadd.f32 %v2540_v52, %v2333_v53  ;;  %v2542_v54 = vpop.f32.mrf.mxu1 }
 0x201   :  { %v2337_v63 = vpop.f32.mrf.mxu0 }
 0x202   :  { %v2338_v30 = vadd.f32 %v2337_v63, %v4793_v18  ;;  %v2545_v59 = vpop.f32.mrf.mxu1 }
 0x203   :  { %v2339_v28 = vpop.f32.mrf.mxu0 }
 0x204   :  { %v5062_v11 = vadd.f32 %v2545_v59, %v2338_v30  ;;  %v2547_v62 = vpop.f32.mrf.mxu1 }
 0x205   :  { %v2340_v19 = vpop.f32.mrf.mxu0 }
 0x206   :  { %v2341_v39 = vadd.f32 %v2340_v19, %v4804_v29  ;;  %v2548_v5 = vpop.f32.mrf.mxu1 }
 0x207   :  { %v2342_v38 = vpop.f32.mrf.mxu0 }
 0x208   :  { %v5065_v31 = vadd.f32 %v2548_v5, %v2341_v39  ;;  %v2550_v9 = vpop.f32.mrf.mxu1 }
 0x209   :  { %v2345_v1 = vpop.f32.mrf.mxu0 }
 0x20a   :  { %v2346_v0 = vadd.f32 %v2345_v1, %v4809_v37  ;;  %v2553_v12 = vpop.f32.mrf.mxu1 }
 0x20b   :  { %v2347_v44 = vpop.f32.mrf.mxu0 }
 0x20c   :  { %v5068_v46 = vadd.f32 %v2553_v12, %v2346_v0  ;;  %v2555_v18 = vpop.f32.mrf.mxu1 }
 0x20d   :  { %v2348_v53 = vpop.f32.mrf.mxu0 }
 0x20e   :  { %v2349_v52 = vadd.f32 %v2348_v53, %v4820_v47  ;;  %v2556_v21 = vpop.f32.mrf.mxu1 }
 0x20f   :  { %v2350_v54 = vpop.f32.mrf.mxu0 }
 0x210   :  { %v5071_v63 = vadd.f32 %v2556_v21, %v2349_v52  ;;  %v2558_v29 = vpop.f32.mrf.mxu1 }
 0x211   :  { %v2353_v30 = vpop.f32.mrf.mxu0 }
 0x212   :  { %v2354_v59 = vadd.f32 %v2353_v30, %v4825_v56  ;;  %v2561_v28 = vpop.f32.mrf.mxu1 }
 0x213   :  { %v2355_v62 = vpop.f32.mrf.mxu0 }
 0x214   :  { %v5074_v19 = vadd.f32 %v2561_v28, %v2354_v59  ;;  %v2563_v37 = vpop.f32.mrf.mxu1 }
 0x215   :  { %v2356_v39 = vpop.f32.mrf.mxu0 }
 0x216   :  { %v2357_v5 = vadd.f32 %v2356_v39, %v4836_v6  ;;  %v2564_v38 = vpop.f32.mrf.mxu1 }
 0x217   :  { %v2358_v9 = vpop.f32.mrf.mxu0 }
 0x218   :  { %v5077_v1 = vadd.f32 %v2564_v38, %v2357_v5  ;;  %v2566_v47 = vpop.f32.mrf.mxu1 }
 0x219   :  { %v2361_v0 = vpop.f32.mrf.mxu0 }
 0x21a   :  { %v2362_v12 = vadd.f32 %v2361_v0, %v4841_v15  ;;  %v2569_v44 = vpop.f32.mrf.mxu1 }
 0x21b   :  { %v2363_v18 = vpop.f32.mrf.mxu0 }
 0x21c   :  { %v5080_v53 = vadd.f32 %v2569_v44, %v2362_v12  ;;  %v2571_v56 = vpop.f32.mrf.mxu1 }
 0x21d   :  { %v2364_v52 = vpop.f32.mrf.mxu0 }
 0x21e   :  { %v2365_v21 = vadd.f32 %v2364_v52, %v4852_v27  ;;  %v2572_v54 = vpop.f32.mrf.mxu1 }
 0x21f   :  { %v2366_v29 = vpop.f32.mrf.mxu0 }
 0x220   :  { %v5083_v30 = vadd.f32 %v2572_v54, %v2365_v21  ;;  %v2574_v6 = vpop.f32.mrf.mxu1 }
 0x221   :  { %v2369_v59 = vpop.f32.mrf.mxu0 }
 0x222   :  { %v2370_v28 = vadd.f32 %v2369_v59, %v4857_v40  ;;  %v2577_v62 = vpop.f32.mrf.mxu1 }
 0x223   :  { %v2371_v37 = vpop.f32.mrf.mxu0 }
 0x224   :  { %v5086_v39 = vadd.f32 %v2577_v62, %v2370_v28  ;;  %v2579_v15 = vpop.f32.mrf.mxu1 }
 0x225   :  { %v2372_v5 = vpop.f32.mrf.mxu0 }
 0x226   :  { %v2373_v38 = vadd.f32 %v2372_v5, %v4868_v50  ;;  %v2580_v9 = vpop.f32.mrf.mxu1 }
 0x227   :  { %v2374_v47 = vpop.f32.mrf.mxu0 }
 0x228   :  { %v5089_v0 = vadd.f32 %v2580_v9, %v2373_v38  ;;  %v2582_v27 = vpop.f32.mrf.mxu1 }
 0x229   :  { %v2377_v12 = vpop.f32.mrf.mxu0 }
 0x22a   :  { %v2378_v44 = vadd.f32 %v2377_v12, %v4873_v61  ;;  %v2585_v18 = vpop.f32.mrf.mxu1 }
 0x22b   :  { %v2379_v56 = vpop.f32.mrf.mxu0 }
 0x22c   :  { %v5092_v52 = vadd.f32 %v2585_v18, %v2378_v44  ;;  %v2587_v40 = vpop.f32.mrf.mxu1 }
 0x22d   :  { %v2380_v21 = vpop.f32.mrf.mxu0 }
 0x22e   :  { %v2381_v54 = vadd.f32 %v2380_v21, %v4884_v13  ;;  %v2588_v29 = vpop.f32.mrf.mxu1 }
 0x22f   :  { %v2382_v6 = vpop.f32.mrf.mxu0 }
 0x230   :  { %v5095_v59 = vadd.f32 %v2588_v29, %v2381_v54  ;;  %v2590_v50 = vpop.f32.mrf.mxu1 }
 0x231   :  { %v2385_v28 = vpop.f32.mrf.mxu0 }
 0x232   :  { %v2386_v62 = vadd.f32 %v2385_v28, %v4889_v23  ;;  %v2593_v37 = vpop.f32.mrf.mxu1 }
 0x233   :  { %v2387_v15 = vpop.f32.mrf.mxu0 }
 0x234   :  { %v5098_v5 = vadd.f32 %v2593_v37, %v2386_v62  ;;  %v2595_v61 = vpop.f32.mrf.mxu1 }
 0x235   :  { %v2388_v38 = vpop.f32.mrf.mxu0 }
 0x236   :  { %v2389_v9 = vadd.f32 %v2388_v38, %v4900_v41  ;;  %v2596_v47 = vpop.f32.mrf.mxu1 }
 0x237   :  { %v2390_v27 = vpop.f32.mrf.mxu0 }
 0x238   :  { %v5101_v12 = vadd.f32 %v2596_v47, %v2389_v9  ;;  %v2598_v13 = vpop.f32.mrf.mxu1 }
 0x239   :  { %v2393_v44 = vpop.f32.mrf.mxu0 }
 0x23a   :  { %v2394_v18 = vadd.f32 %v2393_v44, %v4905_v48  ;;  %v2601_v56 = vpop.f32.mrf.mxu1 }
 0x23b   :  { %v2395_v40 = vpop.f32.mrf.mxu0 }
 0x23c   :  { %v5104_v21 = vadd.f32 %v2601_v56, %v2394_v18  ;;  %v2603_v23 = vpop.f32.mrf.mxu1 }
 0x23d   :  { %v2396_v54 = vpop.f32.mrf.mxu0 }
 0x23e   :  { %v2397_v29 = vadd.f32 %v2396_v54, %v4919_v7  ;;  %v2604_v6 = vpop.f32.mrf.mxu1 }
 0x23f   :  { %v2398_v50 = vpop.f32.mrf.mxu0 }
 0x240   :  { %v5107_v28 = vadd.f32 %v2604_v6, %v2397_v29  ;;  %v2606_v41 = vpop.f32.mrf.mxu1 }
 0x241   :  { %v2401_v62 = vpop.f32.mrf.mxu0 }
 0x242   :  { %v2402_v37 = vadd.f32 %v2401_v62, %v4921_v20  ;;  %v2609_v15 = vpop.f32.mrf.mxu1 }
 0x243   :  { %v2403_v61 = vpop.f32.mrf.mxu0 }
 0x244   :  { %v5110_v38 = vadd.f32 %v2609_v15, %v2402_v37  ;;  %v2611_v48 = vpop.f32.mrf.mxu1 }
 0x245   :  { %v2404_v9 = vpop.f32.mrf.mxu0 }
 0x246   :  { %v2405_v47 = vadd.f32 %v2404_v9, %v4926_v36  ;;  %v2612_v27 = vpop.f32.mrf.mxu1 }
 0x247   :  { %v2406_v13 = vpop.f32.mrf.mxu0 }
 0x248   :  { %v5113_v44 = vadd.f32 %v2612_v27, %v2405_v47  ;;  %v2614_v7 = vpop.f32.mrf.mxu1 }
 0x249   :  { %v2409_v18 = vpop.f32.mrf.mxu0 }
 0x24a   :  { %v2410_v56 = vadd.f32 %v2409_v18, %v4931_v51  ;;  %v2617_v40 = vpop.f32.mrf.mxu1 }
 0x24b   :  { %v2411_v23 = vpop.f32.mrf.mxu0 }
 0x24c   :  { %v5116_v54 = vadd.f32 %v2617_v40, %v2410_v56  ;;  %v2619_v20 = vpop.f32.mrf.mxu1 }
 0x24d   :  { %v2412_v29 = vpop.f32.mrf.mxu0 }
 0x24e   :  { %v2413_v6 = vadd.f32 %v2412_v29, %v4942_v4  ;;  %v2620_v50 = vpop.f32.mrf.mxu1 }
 0x24f   :  { %v2414_v41 = vpop.f32.mrf.mxu0 }
 0x250   :  { %v5119_v62 = vadd.f32 %v2620_v50, %v2413_v6  ;;  %v2622_v36 = vpop.f32.mrf.mxu1 }
 0x251   :  { %v2417_v37 = vpop.f32.mrf.mxu0 }
 0x252   :  { %v2418_v15 = vadd.f32 %v2417_v37, %v4947_v22  ;;  %v2625_v61 = vpop.f32.mrf.mxu1 }
 0x253   :  { %v2419_v48 = vpop.f32.mrf.mxu0 }
 0x254   :  { %v5122_v9 = vadd.f32 %v2625_v61, %v2418_v15  ;;  %v2627_v51 = vpop.f32.mrf.mxu1 }
 0x255   :  { %v2420_v47 = vpop.f32.mrf.mxu0 }
 0x256   :  { %v2421_v27 = vadd.f32 %v2420_v47, %v4958_v42  ;;  %v2628_v13 = vpop.f32.mrf.mxu1 }
 0x257   :  { %v2422_v7 = vpop.f32.mrf.mxu0 }
 0x258   :  { %v5125_v18 = vadd.f32 %v2628_v13, %v2421_v27  ;;  %v2630_v4 = vpop.f32.mrf.mxu1 }
 0x259   :  { %v2425_v56 = vpop.f32.mrf.mxu0 }
 0x25a   :  { %v2426_v40 = vadd.f32 %v2425_v56, %v4963_v57  ;;  %v2633_v23 = vpop.f32.mrf.mxu1 }
 0x25b   :  { %v2427_v20 = vpop.f32.mrf.mxu0 }
 0x25c   :  { %v5128_v29 = vadd.f32 %v2633_v23, %v2426_v40  ;;  %v2635_v22 = vpop.f32.mrf.mxu1 }
 0x25d   :  { %v2428_v6 = vpop.f32.mrf.mxu0 }
 0x25e   :  { %v2636_v50 = vpop.f32.mrf.mxu1 }
 0x25f   :  { %v2429_v41 = vpop.f32.mrf.mxu0 }
 0x260   :  { %v2637_v36 = vpop.f32.mrf.mxu1 }
 0x261   :  { %v3606_v37 = vpop.f32.mrf.mxu0 }
 0x262   :  { %v3630_v15 = vpop.f32.mrf.mxu1 }
 0x263   :  { %v5131_v42 = vadd.f32 %v3630_v15, %v5080_v53  ;;  %v2673_v61 = vpop.f32.mrf.mxu0 }
 0x264   :  { %v2769_v48 = vpop.f32.mrf.mxu1  ;;  %v5140_v7 = vadd.f32 %v2673_v61, %v4978_v34 }
 0x265   :  { %v5134_v51 = vadd.f32 %v2769_v48, %v5074_v19  ;;  %v3607_v57 = vpop.f32.mrf.mxu0  ;;  %v5149_v19 = vadd.f32 %v3606_v37, %v4996_v17 }
 0x266   :  { %v3631_v47 = vpop.f32.mrf.mxu1  ;;  %v5157_v22 = vadd.f32 %v3607_v57, %v5008_v43 }
 0x267   :  { %v5137_v27 = vadd.f32 %v3631_v47, %v5083_v30  ;;  %v2676_v13 = vpop.f32.mrf.mxu0 }
 0x268   :  { %v5143_v4 = vadd.f32 %v2676_v13, %v4993_v2  ;;  %v2772_v56 = vpop.f32.mrf.mxu1 }
 0x269   :  { %v5146_v53 = vadd.f32 %v2772_v56, %v5077_v1  ;;  %v3610_v40 = vpop.f32.mrf.mxu0 }
 0x26a   :  { %v2847_v23 = vadd.f32 %v5143_v4, %v5140_v7  ;;  %v3634_v30 = vpop.f32.mrf.mxu1 }
 0x26b   :  { %v5154_v20 = vadd.f32 %v3634_v30, %v5092_v52  ;;  %v2689_v34 = vpop.f32.mrf.mxu0 }
 0x26c   :  { %v2848_v2 = vadd.f32 %v2847_v23, %v5149_v19  ;;  %v2785_v6 = vpop.f32.mrf.mxu1  ;;  %v5164_v17 = vadd.f32 %v2689_v34, %v5011_v55  ;;  %v5178_v55 = vadd.f32 %v3610_v40, %v5020_v32 }
 0x26d   :  { %v5161_v1 = vadd.f32 %v2785_v6, %v5086_v39  ;;  %v3611_v50 = vpop.f32.mrf.mxu0 }
 0x26e   :  { %v2849_v41 = vadd.f32 %v2848_v2, %v5157_v22  ;;  %v3635_v36 = vpop.f32.mrf.mxu1  ;;  %v5185_v56 = vadd.f32 %v3611_v50, %v5023_v24 }
 0x26f   :  { %v5168_v52 = vadd.f32 %v3635_v36, %v5095_v59  ;;  %v2692_v37 = vpop.f32.mrf.mxu0 }
 0x270   :  { %v2850_v43 = vadd.f32 %v2849_v41, %v5164_v17  ;;  %v5172_v15 = vadd.f32 %v2692_v37, %v5017_v14  ;;  %v2788_v61 = vpop.f32.mrf.mxu1 }
 0x271   :  { %v5175_v39 = vadd.f32 %v2788_v61, %v5089_v0  ;;  %v3614_v48 = vpop.f32.mrf.mxu0 }
 0x272   :  { %v2851_v57 = vadd.f32 %v2850_v43, %v5172_v15  ;;  %v3638_v47 = vpop.f32.mrf.mxu1 }
 0x273   :  { %v5182_v59 = vadd.f32 %v3638_v47, %v5104_v21  ;;  %v2705_v13 = vpop.f32.mrf.mxu0 }
 0x274   :  { %v2852_v14 = vadd.f32 %v2851_v57, %v5178_v55  ;;  %v2801_v23 = vpop.f32.mrf.mxu1  ;;  %v5192_v32 = vadd.f32 %v2705_v13, %v5026_v3  ;;  %v5206_v3 = vadd.f32 %v3614_v48, %v5032_v33 }
 0x275   :  { %v5189_v0 = vadd.f32 %v2801_v23, %v5098_v5  ;;  %v3615_v30 = vpop.f32.mrf.mxu0 }
 0x276   :  { %v2853_v40 = vadd.f32 %v2852_v14, %v5185_v56  ;;  %v3639_v34 = vpop.f32.mrf.mxu1  ;;  %v5213_v61 = vadd.f32 %v3615_v30, %v5035_v49 }
 0x277   :  { %v5196_v21 = vadd.f32 %v3639_v34, %v5107_v28  ;;  %v2708_v2 = vpop.f32.mrf.mxu0 }
 0x278   :  { %v2854_v24 = vadd.f32 %v2853_v40, %v5192_v32  ;;  %v5200_v6 = vadd.f32 %v2708_v2, %v5029_v16  ;;  %v2804_v50 = vpop.f32.mrf.mxu1 }
 0x279   :  { %v5203_v5 = vadd.f32 %v2804_v50, %v5101_v12  ;;  %v3618_v41 = vpop.f32.mrf.mxu0 }
 0x27a   :  { %v2855_v36 = vadd.f32 %v2854_v24, %v5200_v6  ;;  %v3642_v37 = vpop.f32.mrf.mxu1 }
 0x27b   :  { %v5210_v28 = vadd.f32 %v3642_v37, %v5116_v54  ;;  %v2721_v43 = vpop.f32.mrf.mxu0 }
 0x27c   :  { %v2856_v16 = vadd.f32 %v2855_v36, %v5206_v3  ;;  %v2817_v57 = vpop.f32.mrf.mxu1  ;;  %v5220_v33 = vadd.f32 %v2721_v43, %v5038_v8  ;;  %v5234_v8 = vadd.f32 %v3618_v41, %v5044_v35 }
 0x27d   :  { %v5217_v12 = vadd.f32 %v2817_v57, %v5110_v38  ;;  %v3619_v47 = vpop.f32.mrf.mxu0 }
 0x27e   :  { %v2857_v48 = vadd.f32 %v2856_v16, %v5213_v61  ;;  %v3643_v13 = vpop.f32.mrf.mxu1  ;;  %v5241_v50 = vadd.f32 %v3619_v47, %v5047_v10 }
 0x27f   :  { %v5224_v54 = vadd.f32 %v3643_v13, %v5119_v62  ;;  %v2724_v14 = vpop.f32.mrf.mxu0 }
 0x280   :  { %v2858_v49 = vadd.f32 %v2857_v48, %v5220_v33  ;;  %v5228_v23 = vadd.f32 %v2724_v14, %v5041_v25  ;;  %v2820_v30 = vpop.f32.mrf.mxu1 }
 0x281   :  { %v5231_v38 = vadd.f32 %v2820_v30, %v5113_v44  ;;  %v3622_v40 = vpop.f32.mrf.mxu0 }
 0x282   :  { %v2859_v34 = vadd.f32 %v2858_v49, %v5228_v23  ;;  %v3646_v2 = vpop.f32.mrf.mxu1  ;;  %v5256_v47 = vadd.f32 %v3622_v40, %v5056_v45 }
 0x283   :  { %v5238_v62 = vadd.f32 %v3646_v2, %v5128_v29  ;;  %v2737_v24 = vpop.f32.mrf.mxu0 }
 0x284   :  { %v2860_v25 = vadd.f32 %v2859_v34, %v5234_v8  ;;  %v2833_v36 = vpop.f32.mrf.mxu1  ;;  %v5248_v35 = vadd.f32 %v2737_v24, %v5050_v58 }
 0x285   :  { %v5245_v44 = vadd.f32 %v2833_v36, %v5122_v9  ;;  %v3623_v37 = vpop.f32.mrf.mxu0 }
 0x286   :  { %v2861_v41 = vadd.f32 %v2860_v25, %v5241_v50  ;;  %v3647_v43 = vpop.f32.mrf.mxu1  ;;  %v5260_v13 = vadd.f32 %v3623_v37, %v5059_v60 }
 0x287   :  { %v2740_v16 = vpop.f32.mrf.mxu0 }
 0x288   :  { %v2862_v29 = vadd.f32 %v2861_v41, %v5248_v35  ;;  %v5253_v57 = vadd.f32 %v2740_v16, %v5053_v26 }
 0x289   :  { %v3626_v10 = vpop.f32.mrf.mxu0 }
 0x28a   :  { %v2863_v9 = vadd.f32 %v2862_v29, %v5253_v57  ;;  %v2762_v40 = vadd.f32 %v3626_v10, %v5068_v46 }
 0x28b   :  { %v2753_v48 = vpop.f32.mrf.mxu0 }
 0x28c   :  { %v2864_v58 = vadd.f32 %v2863_v9, %v5256_v47  ;;  %v5264_v49 = vadd.f32 %v2753_v48, %v5062_v11 }
 0x28d   :  { %v3627_v14 = vpop.f32.mrf.mxu0 }
 0x28e   :  { %v2865_v30 = vadd.f32 %v2864_v58, %v5260_v13  ;;  %v2765_v24 = vadd.f32 %v3627_v14, %v5071_v63 }
 0x28f   :  { %v2756_v26 = vpop.f32.mrf.mxu0 }
 0x290   :  { %v2866_v34 = vadd.f32 %v2865_v30, %v5264_v49  ;;  %v2757_v45 = vadd.f32 %v2756_v26, %v5065_v31  ;;  %v2836_v30 = vpop.f32.mrf.mxu1 }
 0x292   :  { %v2867_v2 = vadd.f32 %v2866_v34, %v2757_v45  ;;  %v2837_v34 = vadd.f32 %v2836_v30, %v5125_v18 }
 0x294   :  { %v2868_v60 = vadd.f32 %v2867_v2, %v2762_v40 }
 0x296   :  { %v2869_v25 = vadd.f32 %v2868_v60, %v2765_v24 }
 0x298   :  { %v2870_v36 = vadd.f32 %v2869_v25, %v5134_v51  ;;  %v2889_v25 = vsel %vm2888_vm0, %v5238_v62, 0.0 }
 0x29a   :  { %v2871_v37 = vadd.f32 %v2870_v36, %v5146_v53 }
 0x29c   :  { %v2872_v11 = vadd.f32 %v2871_v37, %v5131_v42 }
 0x29e   :  { %v2873_v41 = vadd.f32 %v2872_v11, %v5137_v27 }
 0x2a0   :  { %v2874_v43 = vadd.f32 %v2873_v41, %v5161_v1 }
 0x2a2   :  { %v2875_v16 = vadd.f32 %v2874_v43, %v5175_v39 }
 0x2a4   :  { %v2876_v31 = vadd.f32 %v2875_v16, %v5154_v20 }
 0x2a6   :  { %v2877_v46 = vadd.f32 %v2876_v31, %v5168_v52 }
 0x2a8   :  { %v2878_v63 = vadd.f32 %v2877_v46, %v5189_v0 }
 0x2aa   :  { %v2879_v29 = vadd.f32 %v2878_v63, %v5203_v5 }
 0x2ac   :  { %v2880_v10 = vadd.f32 %v2879_v29, %v5182_v59 }
 0x2ae   :  { %v2881_v9 = vadd.f32 %v2880_v10, %v5196_v21 }
 0x2b0   :  { %v2882_v48 = vadd.f32 %v2881_v9, %v5217_v12 }
 0x2b2   :  { %v2883_v58 = vadd.f32 %v2882_v48, %v5231_v38 }
 0x2b4   :  { %v2884_v14 = vadd.f32 %v2883_v58, %v5210_v28 }
 0x2b6   :  { %v2885_v26 = vadd.f32 %v2884_v14, %v5224_v54 }
 0x2b8   :  { %v2886_v2 = vadd.f32 %v2885_v26, %v5245_v44 }
 0x2ba   :  { %v2887_v60 = vadd.f32 %v2886_v2, %v2837_v34 }
 0x2bc   :  { %v2890_v36 = vadd.f32 %v2889_v25, %v2887_v60 }
 0x2be   :  { %v2891_v37 = vrot.slane %v2890_v36, 4 }
 0x2c0   :  { %v2892_v11 = vadd.f32 %v2891_v37, %v2890_v36 }
 0x2c2   :  { %v2893_v41 = vrot.slane %v2892_v11, 2 }
 0x2c4   :  { %v2894_v43 = vadd.f32 %v2893_v41, %v2892_v11 }
 0x2c6   :  { %v2895_v16 = vrot.slane %v2894_v43, 1 }
 0x2c8   :  { %v2896_v31 = vadd.f32 %v2895_v16, %v2894_v43 }
 0x2ca   :  { %v5291_v46 = vmul.f32 0.00295858, %v2896_v31 }
 0x2cc   :  { %v5294_v63 = vsub.f32 %v2757_v45, %v5291_v46  ;;  %v5297_v18 = vsub.f32 %v2762_v40, %v5291_v46  ;;  %v5300_v29 = vsub.f32 %v2765_v24, %v5291_v46  ;;  %v5304_v10 = vsub.f32 %v5134_v51, %v5291_v46 }
 0x2cd   :  { %v5308_v9 = vsub.f32 %v5146_v53, %v5291_v46  ;;  %v5312_v48 = vsub.f32 %v5131_v42, %v5291_v46  ;;  %v5316_v45 = vsub.f32 %v5137_v27, %v5291_v46  ;;  %v5320_v40 = vsub.f32 %v5161_v1, %v5291_v46 }
 0x2ce   :  { %v5324_v51 = vsub.f32 %v5175_v39, %v5291_v46  ;;  %v5328_v53 = vsub.f32 %v5154_v20, %v5291_v46  ;;  %v5332_v42 = vsub.f32 %v5168_v52, %v5291_v46  ;;  %v5336_v27 = vsub.f32 %v5189_v0, %v5291_v46 }
 0x2cf   :  { %v5340_v1 = vsub.f32 %v5203_v5, %v5291_v46  ;;  %v5344_v39 = vsub.f32 %v5182_v59, %v5291_v46  ;;  %v5348_v20 = vsub.f32 %v5196_v21, %v5291_v46  ;;  %v5352_v52 = vsub.f32 %v5217_v12, %v5291_v46 }
 0x2d0   :  { %v5356_v0 = vsub.f32 %v5231_v38, %v5291_v46  ;;  %v5360_v5 = vsub.f32 %v5210_v28, %v5291_v46  ;;  %v5364_v59 = vsub.f32 %v5224_v54, %v5291_v46  ;;  %v5368_v21 = vsub.f32 %v5245_v44, %v5291_v46 }
 0x2d1   :  { %v5371_v24 = vsub.f32 %v2837_v34, %v5291_v46  ;;  %v5375_v12 = vsub.f32 %v5140_v7, %v5291_v46  ;;  %v5379_v38 = vsub.f32 %v5143_v4, %v5291_v46  ;;  %v5383_v28 = vsub.f32 %v5149_v19, %v5291_v46 }
 0x2d2   :  { %v5391_v58 = vsub.f32 %v5157_v22, %v5291_v46  ;;  %v5395_v7 = vsub.f32 %v5164_v17, %v5291_v46  ;;  %v5401_v19 = vsub.f32 %v5172_v15, %v5291_v46  ;;  %v5407_v22 = vsub.f32 %v5178_v55, %v5291_v46 }
 0x2d3   :  { %v2942_v54 = vmul.f32 %v5375_v12, %v5375_v12  ;;  %v2943_v44 = vmul.f32 %v5379_v38, %v5379_v38  ;;  %v2944_v4 = vmul.f32 %v5383_v28, %v5383_v28  ;;  %v5413_v2 = vsub.f32 %v5185_v56, %v5291_v46 }
 0x2d4   :  { %v2945_v30 = vmul.f32 %v5391_v58, %v5391_v58  ;;  %v2946_v17 = vmul.f32 %v5395_v7, %v5395_v7  ;;  %v2947_v15 = vmul.f32 %v5401_v19, %v5401_v19  ;;  %v5419_v25 = vsub.f32 %v5192_v32, %v5291_v46 }
 0x2d5   :  { %v2985_v14 = vadd.f32 %v2943_v44, %v2942_v54  ;;  %v2948_v55 = vmul.f32 %v5407_v22, %v5407_v22  ;;  %v5425_v37 = vsub.f32 %v5200_v6, %v5291_v46  ;;  %v2949_v56 = vmul.f32 %v5413_v2, %v5413_v2 }
 0x2d6   :  { %v5431_v41 = vsub.f32 %v5206_v3, %v5291_v46  ;;  %v2950_v32 = vmul.f32 %v5419_v25, %v5419_v25  ;;  %v5437_v16 = vsub.f32 %v5213_v61, %v5291_v46  ;;  %v5443_v54 = vsub.f32 %v5220_v33, %v5291_v46 }
 0x2d7   :  { %v2986_v26 = vadd.f32 %v2985_v14, %v2944_v4  ;;  %v2951_v6 = vmul.f32 %v5425_v37, %v5425_v37  ;;  %v5449_v4 = vsub.f32 %v5228_v23, %v5291_v46 }
 0x2d8   :  { %v2952_v3 = vmul.f32 %v5431_v41, %v5431_v41  ;;  %v2953_v61 = vmul.f32 %v5437_v16, %v5437_v16  ;;  %v2954_v33 = vmul.f32 %v5443_v54, %v5443_v54 }
 0x2d9   :  { %v2987_v34 = vadd.f32 %v2986_v26, %v2945_v30  ;;  %v5455_v30 = vsub.f32 %v5234_v8, %v5291_v46  ;;  %v2955_v23 = vmul.f32 %v5449_v4, %v5449_v4 }
 0x2db   :  { %v2988_v60 = vadd.f32 %v2987_v34, %v2946_v17  ;;  %v5461_v17 = vsub.f32 %v5241_v50, %v5291_v46  ;;  %v2956_v8 = vmul.f32 %v5455_v30, %v5455_v30 }
 0x2dd   :  { %v2989_v36 = vadd.f32 %v2988_v60, %v2947_v15  ;;  %v5467_v15 = vsub.f32 %v5248_v35, %v5291_v46  ;;  %v2957_v50 = vmul.f32 %v5461_v17, %v5461_v17 }
 0x2df   :  { %v2990_v11 = vadd.f32 %v2989_v36, %v2948_v55  ;;  %v5473_v55 = vsub.f32 %v5253_v57, %v5291_v46  ;;  %v2958_v35 = vmul.f32 %v5467_v15, %v5467_v15 }
 0x2e1   :  { %v2991_v43 = vadd.f32 %v2990_v11, %v2949_v56  ;;  %v5479_v56 = vsub.f32 %v5256_v47, %v5291_v46  ;;  %v2959_v57 = vmul.f32 %v5473_v55, %v5473_v55 }
 0x2e3   :  { %v2992_v31 = vadd.f32 %v2991_v43, %v2950_v32  ;;  %v5485_v32 = vsub.f32 %v5260_v13, %v5291_v46  ;;  %v2960_v47 = vmul.f32 %v5479_v56, %v5479_v56 }
 0x2e5   :  { %v2993_v44 = vadd.f32 %v2992_v31, %v2951_v6  ;;  %v5491_v6 = vsub.f32 %v5264_v49, %v5291_v46  ;;  %v2964_v49 = vmul.f32 %v5297_v18, %v5297_v18 }
 0x2e7   :  { %v2994_v14 = vadd.f32 %v2993_v44, %v2952_v3  ;;  %v2961_v3 = vmul.f32 %v5485_v32, %v5485_v32  ;;  %v2962_v13 = vmul.f32 %v5491_v6, %v5491_v6 }
 0x2e9   :  { %v2995_v26 = vadd.f32 %v2994_v14, %v2953_v61  ;;  %v2963_v14 = vmul.f32 %v5294_v63, %v5294_v63 }
 0x2eb   :  { %v2996_v34 = vadd.f32 %v2995_v26, %v2954_v33 }
 0x2ed   :  { %v2997_v60 = vadd.f32 %v2996_v34, %v2955_v23  ;;  %v2965_v23 = vmul.f32 %v5300_v29, %v5300_v29 }
 0x2ef   :  { %v2998_v36 = vadd.f32 %v2997_v60, %v2956_v8  ;;  %v2966_v8 = vmul.f32 %v5304_v10, %v5304_v10 }
 0x2f1   :  { %v2999_v11 = vadd.f32 %v2998_v36, %v2957_v50  ;;  %v2967_v50 = vmul.f32 %v5308_v9, %v5308_v9 }
 0x2f3   :  { %v3000_v43 = vadd.f32 %v2999_v11, %v2958_v35  ;;  %v2968_v35 = vmul.f32 %v5312_v48, %v5312_v48 }
 0x2f5   :  { %v3001_v31 = vadd.f32 %v3000_v43, %v2959_v57  ;;  %v2969_v57 = vmul.f32 %v5316_v45, %v5316_v45 }
 0x2f7   :  { %v3002_v44 = vadd.f32 %v3001_v31, %v2960_v47  ;;  %v2970_v47 = vmul.f32 %v5320_v40, %v5320_v40 }
 0x2f9   :  { %v3003_v61 = vadd.f32 %v3002_v44, %v2961_v3  ;;  %v2971_v3 = vmul.f32 %v5324_v51, %v5324_v51 }
 0x2fb   :  { %v3004_v33 = vadd.f32 %v3003_v61, %v2962_v13  ;;  %v2972_v13 = vmul.f32 %v5328_v53, %v5328_v53 }
 0x2fd   :  { %v3005_v26 = vadd.f32 %v3004_v33, %v2963_v14  ;;  %v2973_v14 = vmul.f32 %v5332_v42, %v5332_v42 }
 0x2ff   :  { %v3006_v34 = vadd.f32 %v3005_v26, %v2964_v49  ;;  %v2974_v49 = vmul.f32 %v5336_v27, %v5336_v27 }
 0x301   :  { %v3007_v60 = vadd.f32 %v3006_v34, %v2965_v23  ;;  %v2975_v23 = vmul.f32 %v5340_v1, %v5340_v1 }
 0x303   :  { %v3008_v36 = vadd.f32 %v3007_v60, %v2966_v8  ;;  %v2976_v8 = vmul.f32 %v5344_v39, %v5344_v39 }
 0x305   :  { %v3009_v11 = vadd.f32 %v3008_v36, %v2967_v50  ;;  %v2977_v50 = vmul.f32 %v5348_v20, %v5348_v20 }
 0x307   :  { %v3010_v43 = vadd.f32 %v3009_v11, %v2968_v35  ;;  %v2978_v35 = vmul.f32 %v5352_v52, %v5352_v52 }
 0x309   :  { %v3011_v31 = vadd.f32 %v3010_v43, %v2969_v57  ;;  %v2979_v57 = vmul.f32 %v5356_v0, %v5356_v0  ;;  %v2983_v0 = vmul.f32 %v5371_v24, %v5371_v24 }
 0x30b   :  { %v3012_v44 = vadd.f32 %v3011_v31, %v2970_v47  ;;  %v2980_v47 = vmul.f32 %v5360_v5, %v5360_v5 }
 0x30d   :  { %v3013_v61 = vadd.f32 %v3012_v44, %v2971_v3  ;;  %v2941_v3 = vsub.f32 %v5238_v62, %v5291_v46  ;;  %v2981_v44 = vmul.f32 %v5364_v59, %v5364_v59 }
 0x30f   :  { %v3014_v33 = vadd.f32 %v3013_v61, %v2972_v13  ;;  %v2982_v61 = vmul.f32 %v5368_v21, %v5368_v21 }
 0x311   :  { %v3015_v26 = vadd.f32 %v3014_v33, %v2973_v14  ;;  %v2984_v14 = vmul.f32 %v2941_v3, %v2941_v3 }
 0x313   :  { %v3016_v34 = vadd.f32 %v3015_v26, %v2974_v49  ;;  %v3026_v5 = vsel %vm2888_vm0, %v2984_v14, 0.0 }
 0x315   :  { %v3017_v60 = vadd.f32 %v3016_v34, %v2975_v23 }
 0x317   :  { %v3018_v36 = vadd.f32 %v3017_v60, %v2976_v8 }
 0x319   :  { %v3019_v11 = vadd.f32 %v3018_v36, %v2977_v50 }
 0x31b   :  { %v3020_v43 = vadd.f32 %v3019_v11, %v2978_v35 }
 0x31d   :  { %v3021_v31 = vadd.f32 %v3020_v43, %v2979_v57 }
 0x31f   :  { %v3022_v13 = vadd.f32 %v3021_v31, %v2980_v47 }
 0x321   :  { %v3023_v52 = vadd.f32 %v3022_v13, %v2981_v44 }
 0x323   :  { %v3024_v33 = vadd.f32 %v3023_v52, %v2982_v61 }
 0x325   :  { %v3025_v49 = vadd.f32 %v3024_v33, %v2983_v0 }
 0x327   :  { %v3027_v26 = vadd.f32 %v3026_v5, %v3025_v49 }
 0x329   :  { %v3028_v23 = vrot.slane %v3027_v26, 4 }
 0x32b   :  { %v3029_v34 = vadd.f32 %v3028_v23, %v3027_v26 }
 0x32d   :  { %v3030_v62 = vrot.slane %v3029_v34, 2 }
 0x32f   :  { %v3031_v46 = vadd.f32 %v3030_v62, %v3029_v34 }
 0x331   :  { %v3032_v8 = vrot.slane %v3031_v46, 1 }
 0x333   :  { %v3033_v59 = vadd.f32 %v3032_v8, %v3031_v46 }
 0x335   :  { %v3034_v60 = vmul.f32 0.00295858, %v3033_v59 }
 0x337   :  { %v3035_v50 = vadd.f32 1e-05, %v3034_v60 }
 0x339   :  { %4019 = vrsqrt.f32 %v3035_v50 }
 0x346   :  { %v4020_v21 = vpop.eup %4019 }
 0x347   :  { %v3037_v36 = vmul.f32 %v4020_v21, %v5375_v12  ;;  %v3038_v35 = vmul.f32 %v4020_v21, %v5379_v38  ;;  %v3039_v24 = vmul.f32 %v4020_v21, %v5383_v28  ;;  %v3040_v11 = vmul.f32 %v4020_v21, %v5391_v58 }
 0x348   :  { %v3041_v57 = vmul.f32 %v4020_v21, %v5395_v7  ;;  %v3042_v43 = vmul.f32 %v4020_v21, %v5401_v19  ;;  %v3043_v47 = vmul.f32 %v4020_v21, %v5407_v22  ;;  %v3044_v31 = vmul.f32 %v4020_v21, %v5413_v2 }
 0x349   :  { %v3045_v3 = vmul.f32 %v4020_v21, %v5419_v25  ;;  %v3046_v44 = vmul.f32 %v4020_v21, %v5425_v37  ;;  %v3047_v12 = vmul.f32 %v4020_v21, %v5431_v41  ;;  %v3048_v38 = vmul.f32 %v4020_v21, %v5437_v16 }
 0x34a   :  { %v3049_v28 = vmul.f32 %v4020_v21, %v5443_v54  ;;  %v3050_v58 = vmul.f32 %v4020_v21, %v5449_v4  ;;  %v3051_v7 = vmul.f32 %v4020_v21, %v5455_v30  ;;  %v3052_v19 = vmul.f32 %v4020_v21, %v5461_v17 }
 0x34b   :  { %v3053_v22 = vmul.f32 %v4020_v21, %v5467_v15  ;;  %v3054_v2 = vmul.f32 %v4020_v21, %v5473_v55  ;;  %v3055_v25 = vmul.f32 %v4020_v21, %v5479_v56  ;;  %v3056_v37 = vmul.f32 %v4020_v21, %v5485_v32  ;;  %v3515_v56 = vld [vmem:[%s5603_s2] ss:$0 sm:$0xff] }
 0x34c   :  { %v3057_v41 = vmul.f32 %v4020_v21, %v5491_v6  ;;  %v3058_v16 = vmul.f32 %v4020_v21, %v5294_v63  ;;  %v3059_v54 = vmul.f32 %v4020_v21, %v5297_v18  ;;  %v3060_v4 = vmul.f32 %v4020_v21, %v5300_v29 }
 0x34d   :  { %v3061_v30 = vmul.f32 %v4020_v21, %v5304_v10  ;;  %v3062_v17 = vmul.f32 %v4020_v21, %v5308_v9  ;;  %v3063_v15 = vmul.f32 %v4020_v21, %v5312_v48  ;;  %v3064_v55 = vmul.f32 %v4020_v21, %v5316_v45 }
 0x34e   :  { %v3065_v32 = vmul.f32 %v4020_v21, %v5320_v40  ;;  %v3066_v63 = vmul.f32 %v4020_v21, %v5324_v51  ;;  %v3067_v18 = vmul.f32 %v4020_v21, %v5328_v53  ;;  %v3068_v29 = vmul.f32 %v4020_v21, %v5332_v42 }
 0x34f   :  { %v3069_v10 = vmul.f32 %v4020_v21, %v5336_v27  ;;  %v3070_v9 = vmul.f32 %v4020_v21, %v5340_v1  ;;  %v3071_v48 = vmul.f32 %v4020_v21, %v5344_v39  ;;  %v3072_v45 = vmul.f32 %v4020_v21, %v5348_v20 }
 0x350   :  { %v3080_v6 = vmul.f32 %v3515_v56, %v3037_v36  ;;  %v3081_v13 = vmul.f32 %v3515_v56, %v3038_v35  ;;  %v3082_v61 = vmul.f32 %v3515_v56, %v3039_v24  ;;  %v3083_v52 = vmul.f32 %v3515_v56, %v3040_v11  ;;  %v3516_v35 = vld [vmem:[%s5604_s3] ss:$0 sm:$0xff] }
 0x351   :  { %v3084_v14 = vmul.f32 %v3515_v56, %v3041_v57  ;;  %v3085_v40 = vmul.f32 %v3515_v56, %v3042_v43  ;;  %v3086_v0 = vmul.f32 %v3515_v56, %v3043_v47  ;;  %v3087_v51 = vmul.f32 %v3515_v56, %v3044_v31 }
 0x352   :  { %v3088_v33 = vmul.f32 %v3515_v56, %v3045_v3  ;;  %v3089_v53 = vmul.f32 %v3515_v56, %v3046_v44  ;;  %v3090_v49 = vmul.f32 %v3515_v56, %v3047_v12  ;;  %v3091_v42 = vmul.f32 %v3515_v56, %v3048_v38 }
 0x353   :  { %v3092_v5 = vmul.f32 %v3515_v56, %v3049_v28  ;;  %v3093_v27 = vmul.f32 %v3515_v56, %v3050_v58  ;;  %v3094_v26 = vmul.f32 %v3515_v56, %v3051_v7  ;;  %v3095_v1 = vmul.f32 %v3515_v56, %v3052_v19 }
 0x354   :  { %v3096_v23 = vmul.f32 %v3515_v56, %v3053_v22  ;;  %v3097_v39 = vmul.f32 %v3515_v56, %v3054_v2  ;;  %v3098_v34 = vmul.f32 %v3515_v56, %v3055_v25  ;;  %v3099_v20 = vmul.f32 %v3515_v56, %v3056_v37 }
 0x355   :  { %v3100_v62 = vmul.f32 %v3515_v56, %v3057_v41  ;;  %v3101_v46 = vmul.f32 %v3515_v56, %v3058_v16  ;;  %v3102_v8 = vmul.f32 %v3515_v56, %v3059_v54  ;;  %v3103_v59 = vmul.f32 %v3515_v56, %v3060_v4 }
 0x356   :  { %v3104_v60 = vmul.f32 %v3515_v56, %v3061_v30  ;;  %v3105_v50 = vmul.f32 %v3515_v56, %v3062_v17  ;;  %v3106_v21 = vmul.f32 %v3515_v56, %v3063_v15  ;;  %v3107_v36 = vmul.f32 %v3515_v56, %v3064_v55 }
 0x357   :  { %v3108_v24 = vmul.f32 %v3515_v56, %v3065_v32  ;;  %v3109_v11 = vmul.f32 %v3515_v56, %v3066_v63  ;;  %v3110_v57 = vmul.f32 %v3515_v56, %v3067_v18  ;;  %v3111_v43 = vmul.f32 %v3515_v56, %v3068_v29 }
 0x358   :  { %v3112_v47 = vmul.f32 %v3515_v56, %v3069_v10  ;;  %v3113_v31 = vmul.f32 %v3515_v56, %v3070_v9  ;;  %v3114_v3 = vmul.f32 %v3515_v56, %v3071_v48  ;;  %v3115_v44 = vmul.f32 %v3515_v56, %v3072_v45 }
 0x359   :  { %v3123_v12 = vadd.f32 %v3516_v35, %v3080_v6  ;;  %v3124_v38 = vadd.f32 %v3516_v35, %v3081_v13  ;;  %v3125_v28 = vadd.f32 %v3516_v35, %v3082_v61  ;;  %v3126_v58 = vadd.f32 %v3516_v35, %v3083_v52 }
 0x35a   :  { %v3127_v7 = vadd.f32 %v3516_v35, %v3084_v14  ;;  %v3128_v19 = vadd.f32 %v3516_v35, %v3085_v40  ;;  %v3129_v22 = vadd.f32 %v3516_v35, %v3086_v0  ;;  %v3130_v2 = vadd.f32 %v3516_v35, %v3087_v51 }
 0x35b   :  { %v3131_v25 = vadd.f32 %v3516_v35, %v3088_v33  ;;  %v3132_v37 = vadd.f32 %v3516_v35, %v3089_v53  ;;  %v3133_v41 = vadd.f32 %v3516_v35, %v3090_v49  ;;  %v3134_v16 = vadd.f32 %v3516_v35, %v3091_v42 }
 0x35c   :  { %v3135_v54 = vadd.f32 %v3516_v35, %v3092_v5  ;;  %v3136_v4 = vadd.f32 %v3516_v35, %v3093_v27  ;;  %v3137_v30 = vadd.f32 %v3516_v35, %v3094_v26  ;;  %v3138_v17 = vadd.f32 %v3516_v35, %v3095_v1 }
 0x35d   :  { %v3139_v15 = vadd.f32 %v3516_v35, %v3096_v23  ;;  %v3140_v55 = vadd.f32 %v3516_v35, %v3097_v39  ;;  %v3141_v32 = vadd.f32 %v3516_v35, %v3098_v34  ;;  %v3142_v56 = vadd.f32 %v3516_v35, %v3099_v20 }
 0x35e   :  { %v3143_v63 = vadd.f32 %v3516_v35, %v3100_v62  ;;  %v3144_v18 = vadd.f32 %v3516_v35, %v3101_v46  ;;  %v3145_v29 = vadd.f32 %v3516_v35, %v3102_v8  ;;  %v3146_v10 = vadd.f32 %v3516_v35, %v3103_v59 }
 0x35f   :  { %v3147_v9 = vadd.f32 %v3516_v35, %v3104_v60  ;;  %v3148_v48 = vadd.f32 %v3516_v35, %v3105_v50  ;;  %v3149_v45 = vadd.f32 %v3516_v35, %v3106_v21  ;;  %v3150_v6 = vadd.f32 %v3516_v35, %v3107_v36 }
 0x360   :  { %v3151_v13 = vadd.f32 %v3516_v35, %v3108_v24  ;;  %v3152_v61 = vadd.f32 %v3516_v35, %v3109_v11  ;;  %v3153_v52 = vadd.f32 %v3516_v35, %v3110_v57  ;;  %v3154_v14 = vadd.f32 %v3516_v35, %v3111_v43 }
 0x361   :  { %v3155_v40 = vadd.f32 %v3516_v35, %v3112_v47  ;;  %v3156_v0 = vadd.f32 %v3516_v35, %v3113_v31  ;;  %v3157_v51 = vadd.f32 %v3516_v35, %v3114_v3  ;;  %v3158_v33 = vadd.f32 %v3516_v35, %v3115_v44 }
 0x362   :  { %v3159_v53 = vmax.f32 %v3123_v12, %v3132_v37  ;;  %v3160_v49 = vmax.f32 %v3124_v38, %v3133_v41  ;;  %v3161_v42 = vmax.f32 %v3125_v28, %v3134_v16  ;;  %v3162_v5 = vmax.f32 %v3126_v58, %v3135_v54 }
 0x363   :  { %v3163_v27 = vmax.f32 %v3127_v7, %v3136_v4  ;;  %v3164_v26 = vmax.f32 %v3128_v19, %v3137_v30  ;;  %v3165_v1 = vmax.f32 %v3129_v22, %v3138_v17  ;;  %v3166_v23 = vmax.f32 %v3130_v2, %v3139_v15 }
 0x364   :  { %v3167_v39 = vmax.f32 %v3131_v25, %v3140_v55  ;;  %v3168_v34 = vmax.f32 %v3141_v32, %v3150_v6  ;;  %v3169_v20 = vmax.f32 %v3142_v56, %v3151_v13  ;;  %v3170_v62 = vmax.f32 %v3143_v63, %v3152_v61 }
 0x365   :  { %v3171_v46 = vmax.f32 %v3144_v18, %v3153_v52  ;;  %v3172_v8 = vmax.f32 %v3145_v29, %v3154_v14  ;;  %v3173_v59 = vmax.f32 %v3146_v10, %v3155_v40  ;;  %v3174_v60 = vmax.f32 %v3147_v9, %v3156_v0 }
 0x366   :  { %v3175_v50 = vmax.f32 %v3148_v48, %v3157_v51  ;;  %v3176_v21 = vmax.f32 %v3149_v45, %v3158_v33  ;;  %v3177_v36 = vmax.f32 %v3159_v53, %v3168_v34  ;;  %v3178_v35 = vmax.f32 %v3160_v49, %v3169_v20 }
 0x367   :  { %v3179_v24 = vmax.f32 %v3161_v42, %v3170_v62  ;;  %v3180_v11 = vmax.f32 %v3162_v5, %v3171_v46  ;;  %v3181_v57 = vmax.f32 %v3163_v27, %v3172_v8  ;;  %v3182_v43 = vmax.f32 %v3164_v26, %v3173_v59 }
 0x368   :  { %v3183_v47 = vmax.f32 %v3165_v1, %v3174_v60  ;;  %v3184_v31 = vmax.f32 %v3166_v23, %v3175_v50  ;;  %v3185_v3 = vmax.f32 %v3167_v39, %v3176_v21  ;;  %v3186_v44 = vmax.f32 %v3177_v36, 0.0 }
 0x369   :  { %v3187_v12 = vmax.f32 %v3178_v35, 0.0  ;;  %v3188_v38 = vmax.f32 %v3179_v24, 0.0  ;;  %v3189_v28 = vmax.f32 %v3180_v11, 0.0  ;;  %v3190_v58 = vmax.f32 %v3181_v57, 0.0 }
 0x36a   :  { %v3191_v7 = vmax.f32 %v3182_v43, 0.0  ;;  %v3192_v19 = vmax.f32 %v3183_v47, 0.0  ;;  %v3193_v22 = vmax.f32 %v3184_v31, 0.0  ;;  %v3194_v2 = vmax.f32 %v3185_v3, 0.0 }
 0x36b   :  { %v3538_v25 = vpack.c.bf16 %v3187_v12, %v3186_v44  ;;  %v3543_v37 = vpack.c.bf16 %v3189_v28, %v3188_v38 }
 0x36c   :  { %v3534_v41 = vpack.c.bf16 %v3194_v2, %v3194_v2  ;;  %v3548_v16 = vpack.c.bf16 %v3191_v7, %v3190_v58  ;;  %v3553_v54 = vpack.c.bf16 %v3193_v22, %v3192_v19 }
 0x36d   :  { %3539 = vst [vmem:[%s5605_s4] sm:$0xff] %v3538_v25   ;;  %3555 = vst [vmem:[%s5605_s4 + $0x8] sm:$0xff] %v3543_v37  }
 0x36e   :  { %3556 = vst [vmem:[%s5605_s4 + $0x10] sm:$0xff] %v3548_v16   ;;  %3557 = vst [vmem:[%s5605_s4 + $0x18] sm:$0xff] %v3553_v54  }
 0x36f   :  { %3240 = vst [vmem:[%s5605_s4 + $0x20] sm:$0xf] %v3534_v41 }

</bundles_post_ra>
